<compile_context>
chip_gen: v7x
topology: tpu7x:2x2x1
jax: 0.10.0
libtpu: 0.0.40
codegen_flags: <defaults>
</compile_context>

<pallas_src>
import math

import jax
import jax.numpy as jnp
from jax.experimental import pallas as pl
from jax.experimental.pallas import tpu as pltpu

# Keep the pure-JAX reference matmuls at full f32 precision so the numerical
# comparison against the MXU kernel is apples-to-apples.
jax.config.update("jax_default_matmul_precision", "highest")


def gmc_forward_kernel(uin_ref, vin_ref,              # node features [Nu,D], [Nv,D]
                       usup_ref, vsup_ref,            # supports [S,Nu,Nv], [S,Nv,Nu]
                       wenc_ref,                      # stacked encoder weight [D, S*Og]
                       uside_ref, vside_ref,          # side features [Nu,Ds], [Nv,Ds]
                       w1u_ref, b1u_ref, w1v_ref, b1v_ref,   # dense1
                       w2u_ref, w2v_ref,              # dense2 [G+Hs, He]
                       decw_ref, cls_ref,             # decoder [B,He,He], [B,Cpad]
                       uidx_ref, vidx_ref,            # edge endpoints [E,1] int32
                       out_ref):                      # [E, Cpad]
    f32 = jnp.float32
    S, Nu, Nv = usup_ref.shape
    G = wenc_ref.shape[1]
    Og = G // S
    B = decw_ref.shape[0]
    E, C_pad = out_ref.shape

    # ---- StackGCNEncoder: one fat input projection per side (batched over S) ----
    wenc = wenc_ref[...]
    tmp_u = jnp.dot(uin_ref[...], wenc, preferred_element_type=f32)   # [Nu, G]
    tmp_v = jnp.dot(vin_ref[...], wenc, preferred_element_type=f32)   # [Nv, G]

    # ---- dense1 on side features (bias + ReLU) ----
    u_side = jnp.maximum(
        jnp.dot(uside_ref[...], w1u_ref[...], preferred_element_type=f32)
        + b1u_ref[...], 0.0)                                          # [Nu, Hs]
    v_side = jnp.maximum(
        jnp.dot(vside_ref[...], w1v_ref[...], preferred_element_type=f32)
        + b1v_ref[...], 0.0)                                          # [Nv, Hs]

    # ---- dense2, with both concats folded into row-blocks of W2 ----
    # user_feat = [relu(cat_s usup_s @ tmp_v_s) | u_side];  user_embed = user_feat @ W2
    #   == sum_s relu(usup_s @ tmp_v_s) @ W2[s*Og:(s+1)*Og] + u_side @ W2[G:]
    w2u = w2u_ref[...]
    w2v = w2v_ref[...]
    u_emb = jnp.dot(u_side, w2u[G:, :], preferred_element_type=f32)   # [Nu, He]
    v_emb = jnp.dot(v_side, w2v[G:, :], preferred_element_type=f32)   # [Nv, He]
    for s in range(S):                                 # S is small & static (5)
        lo = s * Og
        tv = tmp_v[:, lo:lo + Og]
        tu = tmp_u[:, lo:lo + Og]
        u_gcn_s = jnp.maximum(
            jnp.dot(usup_ref[s], tv, preferred_element_type=f32), 0.0)   # [Nu, Og]
        v_gcn_s = jnp.maximum(
            jnp.dot(vsup_ref[s], tu, preferred_element_type=f32), 0.0)   # [Nv, Og]
        u_emb = u_emb + jnp.dot(u_gcn_s, w2u[lo:lo + Og, :],
                                preferred_element_type=f32)
        v_emb = v_emb + jnp.dot(v_gcn_s, w2v[lo:lo + Og, :],
                                preferred_element_type=f32)

    # ---- Decoder: gather edge endpoints via one-hot matmuls on the MXU ----
    sel_u = jnp.where(
        jax.lax.broadcasted_iota(jnp.int32, (E, Nu), 1) == uidx_ref[...],
        jnp.float32(1.0), jnp.float32(0.0))                           # [E, Nu]
    sel_v = jnp.where(
        jax.lax.broadcasted_iota(jnp.int32, (E, Nv), 1) == vidx_ref[...],
        jnp.float32(1.0), jnp.float32(0.0))                           # [E, Nv]
    u_e = jnp.dot(sel_u, u_emb, preferred_element_type=f32)           # [E, He]
    v_e = jnp.dot(sel_v, v_emb, preferred_element_type=f32)           # [E, He]

    cls = cls_ref[...]                                                # [B, Cpad]
    logits = jnp.zeros((E, C_pad), f32)
    for b in range(B):
        t = jnp.dot(u_e, decw_ref[b], preferred_element_type=f32)     # [E, He]
        s_b = jnp.sum(t * v_e, axis=1, keepdims=True)                 # [E, 1]
        logits = logits + s_b * cls[b:b + 1, :]                       # [E, Cpad]

    # Decoder activation is identity (lambda x: x) in GraphMatrixCompletion.
    out_ref[...] = logits


def graph_matrix_completion_forward(params, user_supports, item_supports,
                                    user_inputs, item_inputs,
                                    user_side_inputs, item_side_inputs,
                                    user_edge_idx, item_edge_idx, num_classes):
    f32 = jnp.float32
    enc_w = params["enc_w"]                           # [S, D, Og]
    S, D, Og = enc_w.shape
    G = S * Og
    Nu = user_inputs.shape[0]
    Nv = item_inputs.shape[0]
    Ds = user_side_inputs.shape[1]
    Hs = params["w1_user"].shape[1]
    He = params["w2_user"].shape[1]
    B = params["dec_w"].shape[0]
    C = num_classes
    E = user_edge_idx.shape[0]

    # Stack per-support encoder weights into one [D, S*Og] matrix (wrapper-side
    # layout plumbing) so the input projection is a single MXU matmul per side.
    wenc = jnp.transpose(enc_w, (1, 0, 2)).reshape(D, G)

    # Lane-dense output: zero-pad the classifier columns to 128 lanes, slice after.
    C_pad = max(128, ((C + 127) // 128) * 128)
    cls_pad = jnp.zeros((B, C_pad), f32).at[:, :C].set(params["dec_cls"])

    uidx = user_edge_idx.astype(jnp.int32).reshape(E, 1)
    vidx = item_edge_idx.astype(jnp.int32).reshape(E, 1)

    args = (
        user_inputs.astype(f32), item_inputs.astype(f32),
        user_supports.astype(f32), item_supports.astype(f32),
        wenc.astype(f32),
        user_side_inputs.astype(f32), item_side_inputs.astype(f32),
        params["w1_user"].astype(f32), params["b1_user"].astype(f32),
        params["w1_item"].astype(f32), params["b1_item"].astype(f32),
        params["w2_user"].astype(f32), params["w2_item"].astype(f32),
        params["dec_w"].astype(f32), cls_pad,
        uidx, vidx,
    )

    def _full_block(shape):
        nd = len(shape)
        return pl.BlockSpec(tuple(shape), lambda i, _nd=nd: (0,) * _nd)

    in_specs = [_full_block(a.shape) for a in args]
    out_specs = _full_block((E, C_pad))

    flops = int(2 * (
        (Nu + Nv) * D * G                 # encoder input projections
        + S * Nu * Nv * Og * 2            # per-support aggregation (both sides)
        + (Nu + Nv) * Ds * Hs             # dense1
        + (Nu + Nv) * (G + Hs) * He       # dense2 (folded)
        + E * (Nu + Nv) * He              # one-hot edge gathers
        + B * (E * He * He + E * He + E * C_pad)   # decoder basis + classifier
    ))
    bytes_accessed = int(sum(a.size * a.dtype.itemsize for a in args) + E * C_pad * 4)

    logits_pad = pl.pallas_call(
        gmc_forward_kernel,
        out_shape=jax.ShapeDtypeStruct((E, C_pad), f32),
        grid=(1,),                        # whole (small) problem in a single step
        in_specs=in_specs,
        out_specs=out_specs,
        compiler_params=pltpu.CompilerParams(
            dimension_semantics=("arbitrary",)),
        cost_estimate=pl.CostEstimate(
            flops=flops, transcendentals=0, bytes_accessed=bytes_accessed),
    )(*args)
    return logits_pad[:, :C]


def reference_forward(params, user_supports, item_supports,
                      user_inputs, item_inputs,
                      user_side_inputs, item_side_inputs,
                      user_edge_idx, item_edge_idx):
    """Pure-JAX mirror of GraphMatrixCompletion.forward (eval mode)."""
    enc_w = params["enc_w"]
    S = enc_w.shape[0]
    u_hidden, v_hidden = [], []
    for s in range(S):                       # StackGCNEncoder
        tmp_u = user_inputs @ enc_w[s]
        tmp_v = item_inputs @ enc_w[s]
        u_hidden.append(user_supports[s] @ tmp_v)
        v_hidden.append(item_supports[s] @ tmp_u)
    user_gcn = jax.nn.relu(jnp.concatenate(u_hidden, axis=1))
    item_gcn = jax.nn.relu(jnp.concatenate(v_hidden, axis=1))

    user_side = jax.nn.relu(user_side_inputs @ params["w1_user"] + params["b1_user"])
    item_side = jax.nn.relu(item_side_inputs @ params["w1_item"] + params["b1_item"])

    user_feat = jnp.concatenate([user_gcn, user_side], axis=1)
    item_feat = jnp.concatenate([item_gcn, item_side], axis=1)
    user_embed = user_feat @ params["w2_user"]      # dense2: no bias, identity act
    item_embed = item_feat @ params["w2_item"]

    u_e = user_embed[user_edge_idx]                 # Decoder
    v_e = item_embed[item_edge_idx]
    basis = []
    for b in range(params["dec_w"].shape[0]):
        t = u_e @ params["dec_w"][b]
        basis.append(jnp.sum(t * v_e, axis=1, keepdims=True))
    basis = jnp.concatenate(basis, axis=1)
    return basis @ params["dec_cls"]                # identity activation


if __name__ == "__main__":
    # Small shapes consistent with the module's constructor / forward.
    S = 5            # num_support
    C = 5            # num_classes
    B = 3            # num_basis
    D = 32           # input_dim (node features)
    G = 80           # gcn_hidden_dim (divisible by num_support -> Og = 16)
    Ds = 24          # side_feat_dim
    Hs = 16          # side_hidden_dim
    He = 32          # encode_hidden_dim
    Nu, Nv, E = 16, 24, 64

    key = jax.random.PRNGKey(0)
    ks = jax.random.split(key, 16)

    def kuni(k, shape, fan_in):
        bound = math.sqrt(6.0 / fan_in)    # kaiming-uniform-style init (harness only)
        return jax.random.uniform(k, shape, jnp.float32, minval=-bound, maxval=bound)

    params = dict(
        enc_w=kuni(ks[0], (S, D, G // S), D),              # StackGCNEncoder.weight
        w1_user=kuni(ks[1], (Ds, Hs), Ds),                 # dense1 (bias=True)
        b1_user=kuni(ks[2], (1, Hs), Ds),
        w1_item=kuni(ks[3], (Ds, Hs), Ds),
        b1_item=kuni(ks[4], (1, Hs), Ds),
        w2_user=kuni(ks[5], (G + Hs, He), G + Hs),         # dense2 (bias=False)
        w2_item=kuni(ks[6], (G + Hs, He), G + Hs),
        dec_w=kuni(ks[7], (B, He, He), He),                # Decoder.weight
        dec_cls=kuni(ks[8], (B, C), B),                    # Decoder.weight_classifier
    )

    user_inputs = jax.random.normal(ks[9], (Nu, D), jnp.float32)
    item_inputs = jax.random.normal(ks[10], (Nv, D), jnp.float32)
    user_side_inputs = jax.random.normal(ks[11], (Nu, Ds), jnp.float32)
    item_side_inputs = jax.random.normal(ks[12], (Nv, Ds), jnp.float32)

    # Dense stand-ins for the normalized sparse rating adjacencies.
    user_supports = jax.random.uniform(ks[13], (S, Nu, Nv), jnp.float32) / Nv
    item_supports = jax.random.uniform(ks[14], (S, Nv, Nu), jnp.float32) / Nu

    idx_key_u, idx_key_v = jax.random.split(ks[15])
    user_edge_idx = jax.random.randint(idx_key_u, (E,), 0, Nu, jnp.int32)
    item_edge_idx = jax.random.randint(idx_key_v, (E,), 0, Nv, jnp.int32)

    edge_logits = graph_matrix_completion_forward(
        params, user_supports, item_supports, user_inputs, item_inputs,
        user_side_inputs, item_side_inputs, user_edge_idx, item_edge_idx, C)
    jax.block_until_ready(edge_logits)

    ref_logits = reference_forward(
        params, user_supports, item_supports, user_inputs, item_inputs,
        user_side_inputs, item_side_inputs, user_edge_idx, item_edge_idx)

    assert edge_logits.shape == (E, C)
    assert jnp.allclose(edge_logits, ref_logits, atol=2e-3, rtol=2e-3), (
        "max abs diff = %f" % float(jnp.max(jnp.abs(edge_logits - ref_logits))))

    print("KERNEL_OK")
</pallas_src>

<mosaic_0001>
module attributes {stable_mosaic.version = 11 : i64} {
  func.func @gmc_forward_kernel(%arg0: i32, %arg1: memref<16x32xf32, #tpu.memory_space<vmem>>, %arg2: memref<24x32xf32, #tpu.memory_space<vmem>>, %arg3: memref<5x16x24xf32, #tpu.memory_space<vmem>>, %arg4: memref<5x24x16xf32, #tpu.memory_space<vmem>>, %arg5: memref<32x80xf32, #tpu.memory_space<vmem>>, %arg6: memref<16x24xf32, #tpu.memory_space<vmem>>, %arg7: memref<24x24xf32, #tpu.memory_space<vmem>>, %arg8: memref<24x16xf32, #tpu.memory_space<vmem>>, %arg9: memref<1x16xf32, #tpu.memory_space<vmem>>, %arg10: memref<24x16xf32, #tpu.memory_space<vmem>>, %arg11: memref<1x16xf32, #tpu.memory_space<vmem>>, %arg12: memref<96x32xf32, #tpu.memory_space<vmem>>, %arg13: memref<96x32xf32, #tpu.memory_space<vmem>>, %arg14: memref<3x32x32xf32, #tpu.memory_space<vmem>>, %arg15: memref<3x128xf32, #tpu.memory_space<vmem>>, %arg16: memref<64x1xi32, #tpu.memory_space<vmem>>, %arg17: memref<64x1xi32, #tpu.memory_space<vmem>>, %arg18: memref<64x128xf32, #tpu.memory_space<vmem>>) attributes {dimension_semantics = [#tpu.dimension_semantics<arbitrary>], iteration_bounds = array<i64: 1>, scalar_prefetch = 0 : i64, scratch_operands = 0 : i64, tpu.core_type = #tpu.core_type<tc>, window_params = [{pipeline_mode = #tpu.pipeline_mode<synchronous>, transform_indices = @transform_0, window_bounds = array<i64: 16, 32>}, {pipeline_mode = #tpu.pipeline_mode<synchronous>, transform_indices = @transform_1, window_bounds = array<i64: 24, 32>}, {pipeline_mode = #tpu.pipeline_mode<synchronous>, transform_indices = @transform_2, window_bounds = array<i64: 5, 16, 24>}, {pipeline_mode = #tpu.pipeline_mode<synchronous>, transform_indices = @transform_3, window_bounds = array<i64: 5, 24, 16>}, {pipeline_mode = #tpu.pipeline_mode<synchronous>, transform_indices = @transform_4, window_bounds = array<i64: 32, 80>}, {pipeline_mode = #tpu.pipeline_mode<synchronous>, transform_indices = @transform_5, window_bounds = array<i64: 16, 24>}, {pipeline_mode = #tpu.pipeline_mode<synchronous>, transform_indices = @transform_6, window_bounds = array<i64: 24, 24>}, {pipeline_mode = #tpu.pipeline_mode<synchronous>, transform_indices = @transform_7, window_bounds = array<i64: 24, 16>}, {pipeline_mode = #tpu.pipeline_mode<synchronous>, transform_indices = @transform_8, window_bounds = array<i64: 1, 16>}, {pipeline_mode = #tpu.pipeline_mode<synchronous>, transform_indices = @transform_9, window_bounds = array<i64: 24, 16>}, {pipeline_mode = #tpu.pipeline_mode<synchronous>, transform_indices = @transform_10, window_bounds = array<i64: 1, 16>}, {pipeline_mode = #tpu.pipeline_mode<synchronous>, transform_indices = @transform_11, window_bounds = array<i64: 96, 32>}, {pipeline_mode = #tpu.pipeline_mode<synchronous>, transform_indices = @transform_12, window_bounds = array<i64: 96, 32>}, {pipeline_mode = #tpu.pipeline_mode<synchronous>, transform_indices = @transform_13, window_bounds = array<i64: 3, 32, 32>}, {pipeline_mode = #tpu.pipeline_mode<synchronous>, transform_indices = @transform_14, window_bounds = array<i64: 3, 128>}, {pipeline_mode = #tpu.pipeline_mode<synchronous>, transform_indices = @transform_15, window_bounds = array<i64: 64, 1>}, {pipeline_mode = #tpu.pipeline_mode<synchronous>, transform_indices = @transform_16, window_bounds = array<i64: 64, 1>}, {pipeline_mode = #tpu.pipeline_mode<synchronous>, transform_indices = @transform_17, window_bounds = array<i64: 64, 128>}]} {
    %c0 = arith.constant 0 : index
    %c0_0 = arith.constant 0 : index
    %0 = vector.load %arg5[%c0, %c0_0] : memref<32x80xf32, #tpu.memory_space<vmem>>, vector<32x80xf32>
    %c0_1 = arith.constant 0 : index
    %c0_2 = arith.constant 0 : index
    %1 = vector.load %arg1[%c0_1, %c0_2] : memref<16x32xf32, #tpu.memory_space<vmem>>, vector<16x32xf32>
    %cst = arith.constant dense<0.000000e+00> : vector<16x80xf32>
    %2 = tpu.matmul %1, %0, %cst {dimension_numbers = #tpu.dot_dimension_numbers<[1], [0], [0], [1], [0, 0, 1, 1], [], []>, precision = #tpu.contract_precision<fp32>} : vector<16x32xf32>, vector<32x80xf32>, vector<16x80xf32> -> vector<16x80xf32>
    %c0_3 = arith.constant 0 : index
    %c0_4 = arith.constant 0 : index
    %3 = vector.load %arg2[%c0_3, %c0_4] : memref<24x32xf32, #tpu.memory_space<vmem>>, vector<24x32xf32>
    %cst_5 = arith.constant dense<0.000000e+00> : vector<24x80xf32>
    %4 = tpu.matmul %3, %0, %cst_5 {dimension_numbers = #tpu.dot_dimension_numbers<[1], [0], [0], [1], [0, 0, 1, 1], [], []>, precision = #tpu.contract_precision<fp32>} : vector<24x32xf32>, vector<32x80xf32>, vector<24x80xf32> -> vector<24x80xf32>
    %c0_6 = arith.constant 0 : index
    %c0_7 = arith.constant 0 : index
    %5 = vector.load %arg6[%c0_6, %c0_7] : memref<16x24xf32, #tpu.memory_space<vmem>>, vector<16x24xf32>
    %c0_8 = arith.constant 0 : index
    %c0_9 = arith.constant 0 : index
    %6 = vector.load %arg8[%c0_8, %c0_9] : memref<24x16xf32, #tpu.memory_space<vmem>>, vector<24x16xf32>
    %cst_10 = arith.constant dense<0.000000e+00> : vector<16x16xf32>
    %7 = tpu.matmul %5, %6, %cst_10 {dimension_numbers = #tpu.dot_dimension_numbers<[1], [0], [0], [1], [0, 0, 1, 1], [], []>, precision = #tpu.contract_precision<fp32>} : vector<16x24xf32>, vector<24x16xf32>, vector<16x16xf32> -> vector<16x16xf32>
    %c0_11 = arith.constant 0 : index
    %c0_12 = arith.constant 0 : index
    %8 = vector.load %arg9[%c0_11, %c0_12] : memref<1x16xf32, #tpu.memory_space<vmem>>, vector<1x16xf32>
    %9 = vector.broadcast %8 : vector<1x16xf32> to vector<16x16xf32>
    %10 = arith.addf %7, %9 : vector<16x16xf32>
    %cst_13 = arith.constant 0.000000e+00 : f32
    %11 = vector.broadcast %cst_13 : f32 to vector<16x16xf32>
    %12 = arith.maximumf %10, %11 : vector<16x16xf32>
    %c0_14 = arith.constant 0 : index
    %c0_15 = arith.constant 0 : index
    %13 = vector.load %arg7[%c0_14, %c0_15] : memref<24x24xf32, #tpu.memory_space<vmem>>, vector<24x24xf32>
    %c0_16 = arith.constant 0 : index
    %c0_17 = arith.constant 0 : index
    %14 = vector.load %arg10[%c0_16, %c0_17] : memref<24x16xf32, #tpu.memory_space<vmem>>, vector<24x16xf32>
    %cst_18 = arith.constant dense<0.000000e+00> : vector<24x16xf32>
    %15 = tpu.matmul %13, %14, %cst_18 {dimension_numbers = #tpu.dot_dimension_numbers<[1], [0], [0], [1], [0, 0, 1, 1], [], []>, precision = #tpu.contract_precision<fp32>} : vector<24x24xf32>, vector<24x16xf32>, vector<24x16xf32> -> vector<24x16xf32>
    %c0_19 = arith.constant 0 : index
    %c0_20 = arith.constant 0 : index
    %16 = vector.load %arg11[%c0_19, %c0_20] : memref<1x16xf32, #tpu.memory_space<vmem>>, vector<1x16xf32>
    %17 = vector.broadcast %16 : vector<1x16xf32> to vector<24x16xf32>
    %18 = arith.addf %15, %17 : vector<24x16xf32>
    %cst_21 = arith.constant 0.000000e+00 : f32
    %19 = vector.broadcast %cst_21 : f32 to vector<24x16xf32>
    %20 = arith.maximumf %18, %19 : vector<24x16xf32>
    %c0_22 = arith.constant 0 : index
    %c0_23 = arith.constant 0 : index
    %21 = vector.load %arg12[%c0_22, %c0_23] : memref<96x32xf32, #tpu.memory_space<vmem>>, vector<96x32xf32>
    %c0_24 = arith.constant 0 : index
    %c0_25 = arith.constant 0 : index
    %22 = vector.load %arg13[%c0_24, %c0_25] : memref<96x32xf32, #tpu.memory_space<vmem>>, vector<96x32xf32>
    %23 = vector.extract_strided_slice %21 {offsets = [80, 0], sizes = [16, 32], strides = [1, 1]} : vector<96x32xf32> to vector<16x32xf32>
    %cst_26 = arith.constant dense<0.000000e+00> : vector<16x32xf32>
    %24 = tpu.matmul %12, %23, %cst_26 {dimension_numbers = #tpu.dot_dimension_numbers<[1], [0], [0], [1], [0, 0, 1, 1], [], []>, precision = #tpu.contract_precision<fp32>} : vector<16x16xf32>, vector<16x32xf32>, vector<16x32xf32> -> vector<16x32xf32>
    %25 = vector.extract_strided_slice %22 {offsets = [80, 0], sizes = [16, 32], strides = [1, 1]} : vector<96x32xf32> to vector<16x32xf32>
    %cst_27 = arith.constant dense<0.000000e+00> : vector<24x32xf32>
    %26 = tpu.matmul %20, %25, %cst_27 {dimension_numbers = #tpu.dot_dimension_numbers<[1], [0], [0], [1], [0, 0, 1, 1], [], []>, precision = #tpu.contract_precision<fp32>} : vector<24x16xf32>, vector<16x32xf32>, vector<24x32xf32> -> vector<24x32xf32>
    %27 = vector.extract_strided_slice %4 {offsets = [0, 0], sizes = [24, 16], strides = [1, 1]} : vector<24x80xf32> to vector<24x16xf32>
    %28 = vector.extract_strided_slice %2 {offsets = [0, 0], sizes = [16, 16], strides = [1, 1]} : vector<16x80xf32> to vector<16x16xf32>
    %c0_28 = arith.constant 0 : index
    %c0_29 = arith.constant 0 : index
    %c0_30 = arith.constant 0 : index
    %29 = vector.load %arg3[%c0_28, %c0_29, %c0_30] : memref<5x16x24xf32, #tpu.memory_space<vmem>>, vector<1x16x24xf32>
    %30 = vector.shape_cast %29 : vector<1x16x24xf32> to vector<16x24xf32>
    %cst_31 = arith.constant dense<0.000000e+00> : vector<16x16xf32>
    %31 = tpu.matmul %30, %27, %cst_31 {dimension_numbers = #tpu.dot_dimension_numbers<[1], [0], [0], [1], [0, 0, 1, 1], [], []>, precision = #tpu.contract_precision<fp32>} : vector<16x24xf32>, vector<24x16xf32>, vector<16x16xf32> -> vector<16x16xf32>
    %cst_32 = arith.constant 0.000000e+00 : f32
    %32 = vector.broadcast %cst_32 : f32 to vector<16x16xf32>
    %33 = arith.maximumf %31, %32 : vector<16x16xf32>
    %c0_33 = arith.constant 0 : index
    %c0_34 = arith.constant 0 : index
    %c0_35 = arith.constant 0 : index
    %34 = vector.load %arg4[%c0_33, %c0_34, %c0_35] : memref<5x24x16xf32, #tpu.memory_space<vmem>>, vector<1x24x16xf32>
    %35 = vector.shape_cast %34 : vector<1x24x16xf32> to vector<24x16xf32>
    %cst_36 = arith.constant dense<0.000000e+00> : vector<24x16xf32>
    %36 = tpu.matmul %35, %28, %cst_36 {dimension_numbers = #tpu.dot_dimension_numbers<[1], [0], [0], [1], [0, 0, 1, 1], [], []>, precision = #tpu.contract_precision<fp32>} : vector<24x16xf32>, vector<16x16xf32>, vector<24x16xf32> -> vector<24x16xf32>
    %cst_37 = arith.constant 0.000000e+00 : f32
    %37 = vector.broadcast %cst_37 : f32 to vector<24x16xf32>
    %38 = arith.maximumf %36, %37 : vector<24x16xf32>
    %39 = vector.extract_strided_slice %21 {offsets = [0, 0], sizes = [16, 32], strides = [1, 1]} : vector<96x32xf32> to vector<16x32xf32>
    %cst_38 = arith.constant dense<0.000000e+00> : vector<16x32xf32>
    %40 = tpu.matmul %33, %39, %cst_38 {dimension_numbers = #tpu.dot_dimension_numbers<[1], [0], [0], [1], [0, 0, 1, 1], [], []>, precision = #tpu.contract_precision<fp32>} : vector<16x16xf32>, vector<16x32xf32>, vector<16x32xf32> -> vector<16x32xf32>
    %41 = arith.addf %24, %40 : vector<16x32xf32>
    %42 = vector.extract_strided_slice %22 {offsets = [0, 0], sizes = [16, 32], strides = [1, 1]} : vector<96x32xf32> to vector<16x32xf32>
    %cst_39 = arith.constant dense<0.000000e+00> : vector<24x32xf32>
    %43 = tpu.matmul %38, %42, %cst_39 {dimension_numbers = #tpu.dot_dimension_numbers<[1], [0], [0], [1], [0, 0, 1, 1], [], []>, precision = #tpu.contract_precision<fp32>} : vector<24x16xf32>, vector<16x32xf32>, vector<24x32xf32> -> vector<24x32xf32>
    %44 = arith.addf %26, %43 : vector<24x32xf32>
    %45 = vector.extract_strided_slice %4 {offsets = [0, 16], sizes = [24, 16], strides = [1, 1]} : vector<24x80xf32> to vector<24x16xf32>
    %46 = vector.extract_strided_slice %2 {offsets = [0, 16], sizes = [16, 16], strides = [1, 1]} : vector<16x80xf32> to vector<16x16xf32>
    %c1 = arith.constant 1 : index
    %c0_40 = arith.constant 0 : index
    %c0_41 = arith.constant 0 : index
    %47 = vector.load %arg3[%c1, %c0_40, %c0_41] : memref<5x16x24xf32, #tpu.memory_space<vmem>>, vector<1x16x24xf32>
    %48 = vector.shape_cast %47 : vector<1x16x24xf32> to vector<16x24xf32>
    %cst_42 = arith.constant dense<0.000000e+00> : vector<16x16xf32>
    %49 = tpu.matmul %48, %45, %cst_42 {dimension_numbers = #tpu.dot_dimension_numbers<[1], [0], [0], [1], [0, 0, 1, 1], [], []>, precision = #tpu.contract_precision<fp32>} : vector<16x24xf32>, vector<24x16xf32>, vector<16x16xf32> -> vector<16x16xf32>
    %cst_43 = arith.constant 0.000000e+00 : f32
    %50 = vector.broadcast %cst_43 : f32 to vector<16x16xf32>
    %51 = arith.maximumf %49, %50 : vector<16x16xf32>
    %c1_44 = arith.constant 1 : index
    %c0_45 = arith.constant 0 : index
    %c0_46 = arith.constant 0 : index
    %52 = vector.load %arg4[%c1_44, %c0_45, %c0_46] : memref<5x24x16xf32, #tpu.memory_space<vmem>>, vector<1x24x16xf32>
    %53 = vector.shape_cast %52 : vector<1x24x16xf32> to vector<24x16xf32>
    %cst_47 = arith.constant dense<0.000000e+00> : vector<24x16xf32>
    %54 = tpu.matmul %53, %46, %cst_47 {dimension_numbers = #tpu.dot_dimension_numbers<[1], [0], [0], [1], [0, 0, 1, 1], [], []>, precision = #tpu.contract_precision<fp32>} : vector<24x16xf32>, vector<16x16xf32>, vector<24x16xf32> -> vector<24x16xf32>
    %cst_48 = arith.constant 0.000000e+00 : f32
    %55 = vector.broadcast %cst_48 : f32 to vector<24x16xf32>
    %56 = arith.maximumf %54, %55 : vector<24x16xf32>
    %57 = vector.extract_strided_slice %21 {offsets = [16, 0], sizes = [16, 32], strides = [1, 1]} : vector<96x32xf32> to vector<16x32xf32>
    %cst_49 = arith.constant dense<0.000000e+00> : vector<16x32xf32>
    %58 = tpu.matmul %51, %57, %cst_49 {dimension_numbers = #tpu.dot_dimension_numbers<[1], [0], [0], [1], [0, 0, 1, 1], [], []>, precision = #tpu.contract_precision<fp32>} : vector<16x16xf32>, vector<16x32xf32>, vector<16x32xf32> -> vector<16x32xf32>
    %59 = arith.addf %41, %58 : vector<16x32xf32>
    %60 = vector.extract_strided_slice %22 {offsets = [16, 0], sizes = [16, 32], strides = [1, 1]} : vector<96x32xf32> to vector<16x32xf32>
    %cst_50 = arith.constant dense<0.000000e+00> : vector<24x32xf32>
    %61 = tpu.matmul %56, %60, %cst_50 {dimension_numbers = #tpu.dot_dimension_numbers<[1], [0], [0], [1], [0, 0, 1, 1], [], []>, precision = #tpu.contract_precision<fp32>} : vector<24x16xf32>, vector<16x32xf32>, vector<24x32xf32> -> vector<24x32xf32>
    %62 = arith.addf %44, %61 : vector<24x32xf32>
    %63 = vector.extract_strided_slice %4 {offsets = [0, 32], sizes = [24, 16], strides = [1, 1]} : vector<24x80xf32> to vector<24x16xf32>
    %64 = vector.extract_strided_slice %2 {offsets = [0, 32], sizes = [16, 16], strides = [1, 1]} : vector<16x80xf32> to vector<16x16xf32>
    %c2 = arith.constant 2 : index
    %c0_51 = arith.constant 0 : index
    %c0_52 = arith.constant 0 : index
    %65 = vector.load %arg3[%c2, %c0_51, %c0_52] : memref<5x16x24xf32, #tpu.memory_space<vmem>>, vector<1x16x24xf32>
    %66 = vector.shape_cast %65 : vector<1x16x24xf32> to vector<16x24xf32>
    %cst_53 = arith.constant dense<0.000000e+00> : vector<16x16xf32>
    %67 = tpu.matmul %66, %63, %cst_53 {dimension_numbers = #tpu.dot_dimension_numbers<[1], [0], [0], [1], [0, 0, 1, 1], [], []>, precision = #tpu.contract_precision<fp32>} : vector<16x24xf32>, vector<24x16xf32>, vector<16x16xf32> -> vector<16x16xf32>
    %cst_54 = arith.constant 0.000000e+00 : f32
    %68 = vector.broadcast %cst_54 : f32 to vector<16x16xf32>
    %69 = arith.maximumf %67, %68 : vector<16x16xf32>
    %c2_55 = arith.constant 2 : index
    %c0_56 = arith.constant 0 : index
    %c0_57 = arith.constant 0 : index
    %70 = vector.load %arg4[%c2_55, %c0_56, %c0_57] : memref<5x24x16xf32, #tpu.memory_space<vmem>>, vector<1x24x16xf32>
    %71 = vector.shape_cast %70 : vector<1x24x16xf32> to vector<24x16xf32>
    %cst_58 = arith.constant dense<0.000000e+00> : vector<24x16xf32>
    %72 = tpu.matmul %71, %64, %cst_58 {dimension_numbers = #tpu.dot_dimension_numbers<[1], [0], [0], [1], [0, 0, 1, 1], [], []>, precision = #tpu.contract_precision<fp32>} : vector<24x16xf32>, vector<16x16xf32>, vector<24x16xf32> -> vector<24x16xf32>
    %cst_59 = arith.constant 0.000000e+00 : f32
    %73 = vector.broadcast %cst_59 : f32 to vector<24x16xf32>
    %74 = arith.maximumf %72, %73 : vector<24x16xf32>
    %75 = vector.extract_strided_slice %21 {offsets = [32, 0], sizes = [16, 32], strides = [1, 1]} : vector<96x32xf32> to vector<16x32xf32>
    %cst_60 = arith.constant dense<0.000000e+00> : vector<16x32xf32>
    %76 = tpu.matmul %69, %75, %cst_60 {dimension_numbers = #tpu.dot_dimension_numbers<[1], [0], [0], [1], [0, 0, 1, 1], [], []>, precision = #tpu.contract_precision<fp32>} : vector<16x16xf32>, vector<16x32xf32>, vector<16x32xf32> -> vector<16x32xf32>
    %77 = arith.addf %59, %76 : vector<16x32xf32>
    %78 = vector.extract_strided_slice %22 {offsets = [32, 0], sizes = [16, 32], strides = [1, 1]} : vector<96x32xf32> to vector<16x32xf32>
    %cst_61 = arith.constant dense<0.000000e+00> : vector<24x32xf32>
    %79 = tpu.matmul %74, %78, %cst_61 {dimension_numbers = #tpu.dot_dimension_numbers<[1], [0], [0], [1], [0, 0, 1, 1], [], []>, precision = #tpu.contract_precision<fp32>} : vector<24x16xf32>, vector<16x32xf32>, vector<24x32xf32> -> vector<24x32xf32>
    %80 = arith.addf %62, %79 : vector<24x32xf32>
    %81 = vector.extract_strided_slice %4 {offsets = [0, 48], sizes = [24, 16], strides = [1, 1]} : vector<24x80xf32> to vector<24x16xf32>
    %82 = vector.extract_strided_slice %2 {offsets = [0, 48], sizes = [16, 16], strides = [1, 1]} : vector<16x80xf32> to vector<16x16xf32>
    %c3 = arith.constant 3 : index
    %c0_62 = arith.constant 0 : index
    %c0_63 = arith.constant 0 : index
    %83 = vector.load %arg3[%c3, %c0_62, %c0_63] : memref<5x16x24xf32, #tpu.memory_space<vmem>>, vector<1x16x24xf32>
    %84 = vector.shape_cast %83 : vector<1x16x24xf32> to vector<16x24xf32>
    %cst_64 = arith.constant dense<0.000000e+00> : vector<16x16xf32>
    %85 = tpu.matmul %84, %81, %cst_64 {dimension_numbers = #tpu.dot_dimension_numbers<[1], [0], [0], [1], [0, 0, 1, 1], [], []>, precision = #tpu.contract_precision<fp32>} : vector<16x24xf32>, vector<24x16xf32>, vector<16x16xf32> -> vector<16x16xf32>
    %cst_65 = arith.constant 0.000000e+00 : f32
    %86 = vector.broadcast %cst_65 : f32 to vector<16x16xf32>
    %87 = arith.maximumf %85, %86 : vector<16x16xf32>
    %c3_66 = arith.constant 3 : index
    %c0_67 = arith.constant 0 : index
    %c0_68 = arith.constant 0 : index
    %88 = vector.load %arg4[%c3_66, %c0_67, %c0_68] : memref<5x24x16xf32, #tpu.memory_space<vmem>>, vector<1x24x16xf32>
    %89 = vector.shape_cast %88 : vector<1x24x16xf32> to vector<24x16xf32>
    %cst_69 = arith.constant dense<0.000000e+00> : vector<24x16xf32>
    %90 = tpu.matmul %89, %82, %cst_69 {dimension_numbers = #tpu.dot_dimension_numbers<[1], [0], [0], [1], [0, 0, 1, 1], [], []>, precision = #tpu.contract_precision<fp32>} : vector<24x16xf32>, vector<16x16xf32>, vector<24x16xf32> -> vector<24x16xf32>
    %cst_70 = arith.constant 0.000000e+00 : f32
    %91 = vector.broadcast %cst_70 : f32 to vector<24x16xf32>
    %92 = arith.maximumf %90, %91 : vector<24x16xf32>
    %93 = vector.extract_strided_slice %21 {offsets = [48, 0], sizes = [16, 32], strides = [1, 1]} : vector<96x32xf32> to vector<16x32xf32>
    %cst_71 = arith.constant dense<0.000000e+00> : vector<16x32xf32>
    %94 = tpu.matmul %87, %93, %cst_71 {dimension_numbers = #tpu.dot_dimension_numbers<[1], [0], [0], [1], [0, 0, 1, 1], [], []>, precision = #tpu.contract_precision<fp32>} : vector<16x16xf32>, vector<16x32xf32>, vector<16x32xf32> -> vector<16x32xf32>
    %95 = arith.addf %77, %94 : vector<16x32xf32>
    %96 = vector.extract_strided_slice %22 {offsets = [48, 0], sizes = [16, 32], strides = [1, 1]} : vector<96x32xf32> to vector<16x32xf32>
    %cst_72 = arith.constant dense<0.000000e+00> : vector<24x32xf32>
    %97 = tpu.matmul %92, %96, %cst_72 {dimension_numbers = #tpu.dot_dimension_numbers<[1], [0], [0], [1], [0, 0, 1, 1], [], []>, precision = #tpu.contract_precision<fp32>} : vector<24x16xf32>, vector<16x32xf32>, vector<24x32xf32> -> vector<24x32xf32>
    %98 = arith.addf %80, %97 : vector<24x32xf32>
    %99 = vector.extract_strided_slice %4 {offsets = [0, 64], sizes = [24, 16], strides = [1, 1]} : vector<24x80xf32> to vector<24x16xf32>
    %100 = vector.extract_strided_slice %2 {offsets = [0, 64], sizes = [16, 16], strides = [1, 1]} : vector<16x80xf32> to vector<16x16xf32>
    %c4 = arith.constant 4 : index
    %c0_73 = arith.constant 0 : index
    %c0_74 = arith.constant 0 : index
    %101 = vector.load %arg3[%c4, %c0_73, %c0_74] : memref<5x16x24xf32, #tpu.memory_space<vmem>>, vector<1x16x24xf32>
    %102 = vector.shape_cast %101 : vector<1x16x24xf32> to vector<16x24xf32>
    %cst_75 = arith.constant dense<0.000000e+00> : vector<16x16xf32>
    %103 = tpu.matmul %102, %99, %cst_75 {dimension_numbers = #tpu.dot_dimension_numbers<[1], [0], [0], [1], [0, 0, 1, 1], [], []>, precision = #tpu.contract_precision<fp32>} : vector<16x24xf32>, vector<24x16xf32>, vector<16x16xf32> -> vector<16x16xf32>
    %cst_76 = arith.constant 0.000000e+00 : f32
    %104 = vector.broadcast %cst_76 : f32 to vector<16x16xf32>
    %105 = arith.maximumf %103, %104 : vector<16x16xf32>
    %c4_77 = arith.constant 4 : index
    %c0_78 = arith.constant 0 : index
    %c0_79 = arith.constant 0 : index
    %106 = vector.load %arg4[%c4_77, %c0_78, %c0_79] : memref<5x24x16xf32, #tpu.memory_space<vmem>>, vector<1x24x16xf32>
    %107 = vector.shape_cast %106 : vector<1x24x16xf32> to vector<24x16xf32>
    %cst_80 = arith.constant dense<0.000000e+00> : vector<24x16xf32>
    %108 = tpu.matmul %107, %100, %cst_80 {dimension_numbers = #tpu.dot_dimension_numbers<[1], [0], [0], [1], [0, 0, 1, 1], [], []>, precision = #tpu.contract_precision<fp32>} : vector<24x16xf32>, vector<16x16xf32>, vector<24x16xf32> -> vector<24x16xf32>
    %cst_81 = arith.constant 0.000000e+00 : f32
    %109 = vector.broadcast %cst_81 : f32 to vector<24x16xf32>
    %110 = arith.maximumf %108, %109 : vector<24x16xf32>
    %111 = vector.extract_strided_slice %21 {offsets = [64, 0], sizes = [16, 32], strides = [1, 1]} : vector<96x32xf32> to vector<16x32xf32>
    %cst_82 = arith.constant dense<0.000000e+00> : vector<16x32xf32>
    %112 = tpu.matmul %105, %111, %cst_82 {dimension_numbers = #tpu.dot_dimension_numbers<[1], [0], [0], [1], [0, 0, 1, 1], [], []>, precision = #tpu.contract_precision<fp32>} : vector<16x16xf32>, vector<16x32xf32>, vector<16x32xf32> -> vector<16x32xf32>
    %113 = arith.addf %95, %112 : vector<16x32xf32>
    %114 = vector.extract_strided_slice %22 {offsets = [64, 0], sizes = [16, 32], strides = [1, 1]} : vector<96x32xf32> to vector<16x32xf32>
    %cst_83 = arith.constant dense<0.000000e+00> : vector<24x32xf32>
    %115 = tpu.matmul %110, %114, %cst_83 {dimension_numbers = #tpu.dot_dimension_numbers<[1], [0], [0], [1], [0, 0, 1, 1], [], []>, precision = #tpu.contract_precision<fp32>} : vector<24x16xf32>, vector<16x32xf32>, vector<24x32xf32> -> vector<24x32xf32>
    %116 = arith.addf %98, %115 : vector<24x32xf32>
    %117 = tpu.iota {dimensions = array<i32: 1>} : vector<64x16xi32>
    %c0_84 = arith.constant 0 : index
    %c0_85 = arith.constant 0 : index
    %118 = vector.load %arg16[%c0_84, %c0_85] : memref<64x1xi32, #tpu.memory_space<vmem>>, vector<64x1xi32>
    %119 = vector.broadcast %118 : vector<64x1xi32> to vector<64x16xi32>
    %120 = arith.cmpi eq, %117, %119 : vector<64x16xi32>
    %cst_86 = arith.constant 1.000000e+00 : f32
    %cst_87 = arith.constant 0.000000e+00 : f32
    %121 = vector.broadcast %cst_86 : f32 to vector<64x16xf32>
    %122 = vector.broadcast %cst_87 : f32 to vector<64x16xf32>
    %123 = arith.select %120, %121, %122 : vector<64x16xi1>, vector<64x16xf32>
    %124 = tpu.iota {dimensions = array<i32: 1>} : vector<64x24xi32>
    %c0_88 = arith.constant 0 : index
    %c0_89 = arith.constant 0 : index
    %125 = vector.load %arg17[%c0_88, %c0_89] : memref<64x1xi32, #tpu.memory_space<vmem>>, vector<64x1xi32>
    %126 = vector.broadcast %125 : vector<64x1xi32> to vector<64x24xi32>
    %127 = arith.cmpi eq, %124, %126 : vector<64x24xi32>
    %cst_90 = arith.constant 1.000000e+00 : f32
    %cst_91 = arith.constant 0.000000e+00 : f32
    %128 = vector.broadcast %cst_90 : f32 to vector<64x24xf32>
    %129 = vector.broadcast %cst_91 : f32 to vector<64x24xf32>
    %130 = arith.select %127, %128, %129 : vector<64x24xi1>, vector<64x24xf32>
    %cst_92 = arith.constant dense<0.000000e+00> : vector<64x32xf32>
    %131 = tpu.matmul %123, %113, %cst_92 {dimension_numbers = #tpu.dot_dimension_numbers<[1], [0], [0], [1], [0, 0, 1, 1], [], []>, precision = #tpu.contract_precision<fp32>} : vector<64x16xf32>, vector<16x32xf32>, vector<64x32xf32> -> vector<64x32xf32>
    %cst_93 = arith.constant dense<0.000000e+00> : vector<64x32xf32>
    %132 = tpu.matmul %130, %116, %cst_93 {dimension_numbers = #tpu.dot_dimension_numbers<[1], [0], [0], [1], [0, 0, 1, 1], [], []>, precision = #tpu.contract_precision<fp32>} : vector<64x24xf32>, vector<24x32xf32>, vector<64x32xf32> -> vector<64x32xf32>
    %c0_94 = arith.constant 0 : index
    %c0_95 = arith.constant 0 : index
    %133 = vector.load %arg15[%c0_94, %c0_95] : memref<3x128xf32, #tpu.memory_space<vmem>>, vector<3x128xf32>
    %cst_96 = arith.constant 0.000000e+00 : f32
    %134 = vector.broadcast %cst_96 : f32 to vector<64x128xf32>
    %c0_97 = arith.constant 0 : index
    %c0_98 = arith.constant 0 : index
    %c0_99 = arith.constant 0 : index
    %135 = vector.load %arg14[%c0_97, %c0_98, %c0_99] : memref<3x32x32xf32, #tpu.memory_space<vmem>>, vector<1x32x32xf32>
    %136 = vector.shape_cast %135 : vector<1x32x32xf32> to vector<32x32xf32>
    %cst_100 = arith.constant dense<0.000000e+00> : vector<64x32xf32>
    %137 = tpu.matmul %131, %136, %cst_100 {dimension_numbers = #tpu.dot_dimension_numbers<[1], [0], [0], [1], [0, 0, 1, 1], [], []>, precision = #tpu.contract_precision<fp32>} : vector<64x32xf32>, vector<32x32xf32>, vector<64x32xf32> -> vector<64x32xf32>
    %138 = arith.mulf %137, %132 : vector<64x32xf32>
    %cst_101 = arith.constant dense<0.000000e+00> : vector<64xf32>
    %139 = vector.multi_reduction <add>, %138, %cst_101 [1] : vector<64x32xf32> to vector<64xf32>
    %140 = vector.shape_cast %139 : vector<64xf32> to vector<64x1xf32>
    %141 = vector.extract_strided_slice %133 {offsets = [0, 0], sizes = [1, 128], strides = [1, 1]} : vector<3x128xf32> to vector<1x128xf32>
    %142 = vector.broadcast %140 : vector<64x1xf32> to vector<64x128xf32>
    %143 = vector.broadcast %141 : vector<1x128xf32> to vector<64x128xf32>
    %144 = arith.mulf %142, %143 : vector<64x128xf32>
    %145 = arith.addf %134, %144 : vector<64x128xf32>
    %c1_102 = arith.constant 1 : index
    %c0_103 = arith.constant 0 : index
    %c0_104 = arith.constant 0 : index
    %146 = vector.load %arg14[%c1_102, %c0_103, %c0_104] : memref<3x32x32xf32, #tpu.memory_space<vmem>>, vector<1x32x32xf32>
    %147 = vector.shape_cast %146 : vector<1x32x32xf32> to vector<32x32xf32>
    %cst_105 = arith.constant dense<0.000000e+00> : vector<64x32xf32>
    %148 = tpu.matmul %131, %147, %cst_105 {dimension_numbers = #tpu.dot_dimension_numbers<[1], [0], [0], [1], [0, 0, 1, 1], [], []>, precision = #tpu.contract_precision<fp32>} : vector<64x32xf32>, vector<32x32xf32>, vector<64x32xf32> -> vector<64x32xf32>
    %149 = arith.mulf %148, %132 : vector<64x32xf32>
    %cst_106 = arith.constant dense<0.000000e+00> : vector<64xf32>
    %150 = vector.multi_reduction <add>, %149, %cst_106 [1] : vector<64x32xf32> to vector<64xf32>
    %151 = vector.shape_cast %150 : vector<64xf32> to vector<64x1xf32>
    %152 = vector.extract_strided_slice %133 {offsets = [1, 0], sizes = [1, 128], strides = [1, 1]} : vector<3x128xf32> to vector<1x128xf32>
    %153 = vector.broadcast %151 : vector<64x1xf32> to vector<64x128xf32>
    %154 = vector.broadcast %152 : vector<1x128xf32> to vector<64x128xf32>
    %155 = arith.mulf %153, %154 : vector<64x128xf32>
    %156 = arith.addf %145, %155 : vector<64x128xf32>
    %c2_107 = arith.constant 2 : index
    %c0_108 = arith.constant 0 : index
    %c0_109 = arith.constant 0 : index
    %157 = vector.load %arg14[%c2_107, %c0_108, %c0_109] : memref<3x32x32xf32, #tpu.memory_space<vmem>>, vector<1x32x32xf32>
    %158 = vector.shape_cast %157 : vector<1x32x32xf32> to vector<32x32xf32>
    %cst_110 = arith.constant dense<0.000000e+00> : vector<64x32xf32>
    %159 = tpu.matmul %131, %158, %cst_110 {dimension_numbers = #tpu.dot_dimension_numbers<[1], [0], [0], [1], [0, 0, 1, 1], [], []>, precision = #tpu.contract_precision<fp32>} : vector<64x32xf32>, vector<32x32xf32>, vector<64x32xf32> -> vector<64x32xf32>
    %160 = arith.mulf %159, %132 : vector<64x32xf32>
    %cst_111 = arith.constant dense<0.000000e+00> : vector<64xf32>
    %161 = vector.multi_reduction <add>, %160, %cst_111 [1] : vector<64x32xf32> to vector<64xf32>
    %162 = vector.shape_cast %161 : vector<64xf32> to vector<64x1xf32>
    %163 = vector.extract_strided_slice %133 {offsets = [2, 0], sizes = [1, 128], strides = [1, 1]} : vector<3x128xf32> to vector<1x128xf32>
    %164 = vector.broadcast %162 : vector<64x1xf32> to vector<64x128xf32>
    %165 = vector.broadcast %163 : vector<1x128xf32> to vector<64x128xf32>
    %166 = arith.mulf %164, %165 : vector<64x128xf32>
    %167 = arith.addf %156, %166 : vector<64x128xf32>
    %c0_112 = arith.constant 0 : index
    %c0_113 = arith.constant 0 : index
    %168 = vector.load %arg18[%c0_112, %c0_113] : memref<64x128xf32, #tpu.memory_space<vmem>>, vector<64x128xf32>
    tpu.vector_store %arg18[%c0_112, %c0_113], %167 {strides = array<i32>} : memref<64x128xf32, #tpu.memory_space<vmem>>, vector<64x128xf32>,
    return
  }
  func.func @transform_0(%arg0: i32) -> (i32, i32) {
    %c0_i32 = arith.constant 0 : i32
    %c0_i32_0 = arith.constant 0 : i32
    %c0_i32_1 = arith.constant 0 : i32
    return %c0_i32, %c0_i32_0 : i32, i32
  }
  func.func @transform_1(%arg0: i32) -> (i32, i32) {
    %c0_i32 = arith.constant 0 : i32
    %c0_i32_0 = arith.constant 0 : i32
    %c0_i32_1 = arith.constant 0 : i32
    return %c0_i32, %c0_i32_0 : i32, i32
  }
  func.func @transform_2(%arg0: i32) -> (i32, i32, i32) {
    %c0_i32 = arith.constant 0 : i32
    %c0_i32_0 = arith.constant 0 : i32
    %c0_i32_1 = arith.constant 0 : i32
    %c0_i32_2 = arith.constant 0 : i32
    return %c0_i32, %c0_i32_0, %c0_i32_1 : i32, i32, i32
  }
  func.func @transform_3(%arg0: i32) -> (i32, i32, i32) {
    %c0_i32 = arith.constant 0 : i32
    %c0_i32_0 = arith.constant 0 : i32
    %c0_i32_1 = arith.constant 0 : i32
    %c0_i32_2 = arith.constant 0 : i32
    return %c0_i32, %c0_i32_0, %c0_i32_1 : i32, i32, i32
  }
  func.func @transform_4(%arg0: i32) -> (i32, i32) {
    %c0_i32 = arith.constant 0 : i32
    %c0_i32_0 = arith.constant 0 : i32
    %c0_i32_1 = arith.constant 0 : i32
    return %c0_i32, %c0_i32_0 : i32, i32
  }
  func.func @transform_5(%arg0: i32) -> (i32, i32) {
    %c0_i32 = arith.constant 0 : i32
    %c0_i32_0 = arith.constant 0 : i32
    %c0_i32_1 = arith.constant 0 : i32
    return %c0_i32, %c0_i32_0 : i32, i32
  }
  func.func @transform_6(%arg0: i32) -> (i32, i32) {
    %c0_i32 = arith.constant 0 : i32
    %c0_i32_0 = arith.constant 0 : i32
    %c0_i32_1 = arith.constant 0 : i32
    return %c0_i32, %c0_i32_0 : i32, i32
  }
  func.func @transform_7(%arg0: i32) -> (i32, i32) {
    %c0_i32 = arith.constant 0 : i32
    %c0_i32_0 = arith.constant 0 : i32
    %c0_i32_1 = arith.constant 0 : i32
    return %c0_i32, %c0_i32_0 : i32, i32
  }
  func.func @transform_8(%arg0: i32) -> (i32, i32) {
    %c0_i32 = arith.constant 0 : i32
    %c0_i32_0 = arith.constant 0 : i32
    %c0_i32_1 = arith.constant 0 : i32
    return %c0_i32, %c0_i32_0 : i32, i32
  }
  func.func @transform_9(%arg0: i32) -> (i32, i32) {
    %c0_i32 = arith.constant 0 : i32
    %c0_i32_0 = arith.constant 0 : i32
    %c0_i32_1 = arith.constant 0 : i32
    return %c0_i32, %c0_i32_0 : i32, i32
  }
  func.func @transform_10(%arg0: i32) -> (i32, i32) {
    %c0_i32 = arith.constant 0 : i32
    %c0_i32_0 = arith.constant 0 : i32
    %c0_i32_1 = arith.constant 0 : i32
    return %c0_i32, %c0_i32_0 : i32, i32
  }
  func.func @transform_11(%arg0: i32) -> (i32, i32) {
    %c0_i32 = arith.constant 0 : i32
    %c0_i32_0 = arith.constant 0 : i32
    %c0_i32_1 = arith.constant 0 : i32
    return %c0_i32, %c0_i32_0 : i32, i32
  }
  func.func @transform_12(%arg0: i32) -> (i32, i32) {
    %c0_i32 = arith.constant 0 : i32
    %c0_i32_0 = arith.constant 0 : i32
    %c0_i32_1 = arith.constant 0 : i32
    return %c0_i32, %c0_i32_0 : i32, i32
  }
  func.func @transform_13(%arg0: i32) -> (i32, i32, i32) {
    %c0_i32 = arith.constant 0 : i32
    %c0_i32_0 = arith.constant 0 : i32
    %c0_i32_1 = arith.constant 0 : i32
    %c0_i32_2 = arith.constant 0 : i32
    return %c0_i32, %c0_i32_0, %c0_i32_1 : i32, i32, i32
  }
  func.func @transform_14(%arg0: i32) -> (i32, i32) {
    %c0_i32 = arith.constant 0 : i32
    %c0_i32_0 = arith.constant 0 : i32
    %c0_i32_1 = arith.constant 0 : i32
    return %c0_i32, %c0_i32_0 : i32, i32
  }
  func.func @transform_15(%arg0: i32) -> (i32, i32) {
    %c0_i32 = arith.constant 0 : i32
    %c0_i32_0 = arith.constant 0 : i32
    %c0_i32_1 = arith.constant 0 : i32
    return %c0_i32, %c0_i32_0 : i32, i32
  }
  func.func @transform_16(%arg0: i32) -> (i32, i32) {
    %c0_i32 = arith.constant 0 : i32
    %c0_i32_0 = arith.constant 0 : i32
    %c0_i32_1 = arith.constant 0 : i32
    return %c0_i32, %c0_i32_0 : i32, i32
  }
  func.func @transform_17(%arg0: i32) -> (i32, i32) {
    %c0_i32 = arith.constant 0 : i32
    %c0_i32_0 = arith.constant 0 : i32
    %c0_i32_1 = arith.constant 0 : i32
    return %c0_i32, %c0_i32_0 : i32, i32
  }
}

</mosaic_0001>

<bundles_post_ra>
// kernel: tpu_custom_call.1
= control target key start
LH: loop header
LB: loop body
LE: loop exit
PB: predicated region body
PF: predicated region fallthrough
CT: control target
= control target key end

     0   :  { %s26673_s0 = inlined_call_operand.vmem [shape: f32[16,32], index: 0, kind: input, shape index: {}]   ;;  %s26674_s1 = inlined_call_operand.vmem [shape: f32[24,32], index: 1, kind: input, shape index: {}]   ;;  %s26675_s2 = inlined_call_operand.vmem [shape: f32[5,16,24], index: 2, kind: input, shape index: {}]   ;;  %s26676_s3 = inlined_call_operand.vmem [shape: f32[5,24,16], index: 3, kind: input, shape index: {}]   ;;  %s26677_s4 = inlined_call_operand.vmem [shape: f32[32,80], index: 4, kind: input, shape index: {}]   ;;  %s26678_s5 = inlined_call_operand.vmem [shape: f32[16,24], index: 5, kind: input, shape index: {}]   ;;  %s26679_s6 = inlined_call_operand.vmem [shape: f32[24,24], index: 6, kind: input, shape index: {}]   ;;  %s26680_s7 = inlined_call_operand.vmem [shape: f32[24,16], index: 7, kind: input, shape index: {}]   ;;  %s26681_s8 = inlined_call_operand.vmem [shape: f32[1,16], index: 8, kind: input, shape index: {}]   ;;  %s26682_s9 = inlined_call_operand.vmem [shape: f32[24,16], index: 9, kind: input, shape index: {}]   ;;  %s26683_s10 = inlined_call_operand.vmem [shape: f32[1,16], index: 10, kind: input, shape index: {}]   ;;  %s26684_s11 = inlined_call_operand.vmem [shape: f32[96,32], index: 11, kind: input, shape index: {}]   ;;  %s26685_s12 = inlined_call_operand.vmem [shape: f32[96,32], index: 12, kind: input, shape index: {}]   ;;  %s26686_s13 = inlined_call_operand.vmem [shape: f32[3,32,32], index: 13, kind: input, shape index: {}]   ;;  %s26687_s14 = inlined_call_operand.vmem [shape: f32[3,128], index: 14, kind: input, shape index: {}]   ;;  %s26688_s15 = inlined_call_operand.vmem [shape: s32[64,1], index: 15, kind: input, shape index: {}]   ;;  %s26689_s16 = inlined_call_operand.vmem [shape: s32[64,1], index: 16, kind: input, shape index: {}]   ;;  %s26690_s17 = inlined_call_operand.hbm [shape: f32[64,128], index: 17, kind: output, shape index: {}]  }
   0x1   :  { %26693 = sst [smem:[#allocation5_spill]] %s26673_s0 }
   0x2   :  { %26694 = sst [smem:[#allocation6_spill]] %s26674_s1 }
   0x3   :  { %v57_v0 = vld [vmem:[%s26677_s4] sm:$0xff]  ;;  %v58_v1 = vld [vmem:[%s26677_s4 + $0x8] sm:$0xff]  ;;  %v59_v2 = vld [vmem:[%s26677_s4 + $0x10] sm:$0xff]  ;;  %v23494_v3 = vmov 0.0|0.0   ;;  %vm23495_vm0 = vmmov 0   ;;  %v23496_v8 = vmov 0.0  }
   0x4   :  { %21963 = vmatprep.subr.bf16.mxu1 %v23494_v3  ;;  %v71_v4 = vand.u32 4294901760, %v57_v0  ;;  %v74_v5 = vand.u32 4294901760, %v58_v1  ;;  %v60_v6 = vld [vmem:[%s26677_s4 + $0x18] sm:$0xff]  ;;  %v77_v7 = vand.u32 4294901760, %v59_v2  ;;  %19733 = vmatprep.mubr.msk.f32.mxu1 %vm23495_vm0, %v23496_v8  ;;  %vm63_vm1 = vcmask 261120   ;;  %s26695_s1 = sld [smem:[#allocation6_spill]] }
   0x5   :  { %v80_v10 = vand.u32 4294901760, %v60_v6  ;;  %s26696_s25 = sld [smem:[#allocation5_spill]] }
   0x6   :  { %v23620_v14 = vpack.c.bf16 %v74_v5, %v71_v4  ;;  %v23625_v17 = vsub.f32 %v57_v0, %v71_v4  ;;  %v23631_v20 = vsub.f32 %v58_v1, %v74_v5  ;;  %v23641_v25 = vsub.f32 %v59_v2, %v77_v7 }
   0x7   :  { %v23627_v18 = vpack.c.bf16 %v80_v10, %v77_v7  ;;  %v23649_v28 = vsub.f32 %v60_v6, %v80_v10 }
   0x8   :  { %21965 = vmatpush3.bf16.msra.mxu1 %v23620_v14  ;;  %v162_v23 = vand.u32 4294901760, %v23625_v17  ;;  %21916 = vmatprep.subr.bf16.mxu0 %v23620_v14  ;;  %v169_v27 = vand.u32 4294901760, %v23631_v20  ;;  %v176_v32 = vand.u32 4294901760, %v23641_v25 }
   0x9   :  { %21966 = vmatprep.subr.bf16.mxu1 %v23494_v3  ;;  %21918 = vmatpush3.bf16.msra.mxu0 %v23620_v14 }
   0xa   :  { %v598_v9 = vld [vmem:[%s26695_s1] sm:$0xff]  ;;  %v599_v12 = vld [vmem:[%s26695_s1 + $0x8] sm:$0xff]  ;;  %v600_v13 = vld [vmem:[%s26695_s1 + $0x10] sm:$0xff]  ;;  %v163_v30 = vsub.f32 %v23625_v17, %v162_v23  ;;  %21920 = vmatprep.subr.bf16.mxu0 %v23627_v18 }
   0xb   :  { %v602_v11 = vsel %vm63_vm1, %v598_v9, 0  ;;  %v605_v16 = vsel %vm63_vm1, %v599_v12, 0  ;;  %v608_v21 = vsel %vm63_vm1, %v600_v13, 0  ;;  %v61_v33 = vld [vmem:[%s26696_s25] sm:$0xff] }
   0xc   :  { %v23622_v15 = vand.u32 4294901760, %v602_v11  ;;  %v23629_v19 = vand.u32 4294901760, %v605_v16  ;;  %v23639_v24 = vand.u32 4294901760, %v608_v21 }
   0xe   :  { %v23636_v22 = vsub.f32 %v602_v11, %v23622_v15  ;;  %v23646_v26 = vsub.f32 %v605_v16, %v23629_v19  ;;  %v23657_v31 = vsub.f32 %v608_v21, %v23639_v24 }
  0x10   :  { %v681_v29 = vand.u32 4294901760, %v23636_v22 }
  0x11   :  { %22 = vsyncpa [#allocation3], 0  ;;  %v691_v34 = vand.u32 4294901760, %v23646_v26  ;;  %v170_v35 = vsub.f32 %v23631_v20, %v169_v27  ;;  %v183_v36 = vand.u32 4294901760, %v23649_v28  ;;  %21968 = vmatpush3.bf16.msra.mxu1 %v23627_v18  ;;  %v164_v38 = vand.u32 4294901760, %v163_v30  ;;  %v62_v41 = vld [vmem:[%s26696_s25 + $0x8] sm:$0xff]  ;;  %21922 = vmatpush3.bf16.msra.mxu0 %v23627_v18 }
  0x12   :  { %v682_v37 = vsub.f32 %v23636_v22, %v681_v29  ;;  %v701_v39 = vand.u32 4294901760, %v23657_v31  ;;  %v177_v40 = vsub.f32 %v23641_v25, %v176_v32  ;;  %21969 = vmatprep.subr.bf16.mxu1 %v23494_v3  ;;  %v65_v45 = vsel %vm63_vm1, %v61_v33, 0  ;;  %v1181_v4 = vld [vmem:[%s26678_s5] sm:$0xff]  ;;  %v1184_v9 = vld [vmem:[%s26680_s7 + $0x8] sm:$0xff]  ;;  %s23497_s1 = smov 112   ;;  %s23498_s20 = smov 96  }
  0x13   :  { %v692_v42 = vsub.f32 %v23646_v26, %v691_v34  ;;  %v171_v43 = vand.u32 4294901760, %v170_v35  ;;  %v184_v44 = vsub.f32 %v23649_v28, %v183_v36  ;;  %v23689_v48 = vand.u32 4294901760, %v65_v45  ;;  %v1183_v7 = vld [vmem:[%s26680_s7] sm:$0xff]  ;;  %v1182_v10 = vld [vmem:[%s26678_s5 + $0x8] sm:$0xff]  ;;  %s23499_s5 = smov 80   ;;  %s23500_s21 = smov 64  }
  0x14   :  { %v683_v46 = vand.u32 4294901760, %v682_v37  ;;  %v178_v47 = vand.u32 4294901760, %v177_v40  ;;  %v68_v51 = vsel %vm63_vm1, %v62_v41, 0  ;;  %v702_v53 = vsub.f32 %v23657_v31, %v701_v39  ;;  %v23778_v21 = vld [vmem:[%s26682_s9 + $0x8] sm:$0xff] }
  0x15   :  { %v21923_v49 = vpack.c.bf16 %v171_v43, %v164_v38  ;;  %v185_v50 = vand.u32 4294901760, %v184_v44  ;;  %v693_v52 = vand.u32 4294901760, %v692_v42  ;;  %v140_v54 = vsub.f32 %v65_v45, %v23689_v48  ;;  %v1722_v43 = vld [vmem:[%s26682_s9 + $0x10] sm:$0xff] }
  0x16   :  { %19734 = vmatmul.mubr.f32.vlgmr.msra.gmra.mrb[0].mxu1 %v683_v46  ;;  %v23696_v55 = vand.u32 4294901760, %v68_v51  ;;  %v703_v59 = vand.u32 4294901760, %v702_v53  ;;  %v21931_v1 = vpack.c.bf16 %v23631_v20, %v23625_v17  ;;  %v21935_v2 = vpack.c.bf16 %v23649_v28, %v23641_v25  ;;  %v23773_v20 = vld [vmem:[%s26682_s9] sm:$0xff]  ;;  %v1185_v25 = vld [vmem:[%s26680_s7 + $0x10] sm:$0xff] }
  0x17   :  { %19736 = vmatprep.mubr.msk.f32.mxu1 %vm23495_vm0, %v23496_v8  ;;  %21971 = vmatpush3.bf16.msra.mxu1 %v21923_v49  ;;  %v21927_v56 = vpack.c.bf16 %v185_v50, %v178_v47  ;;  %v141_v57 = vand.u32 4294901760, %v140_v54  ;;  %vm1193_vm2 = vcmask 195584   ;;  %v21947_v6 = vpack.c.bf16 %v169_v27, %v162_v23 }
  0x18   :  { %21972 = vmatprep.subr.bf16.mxu1 %v23494_v3  ;;  %v23702_v58 = vsub.f32 %v68_v51, %v23696_v55  ;;  %21924 = vmatprep.subr.bf16.mxu0 %v21923_v49  ;;  %v1195_v5 = vsel %vm1193_vm2, %v1181_v4, 0  ;;  %v1201_v12 = vand.u32 4294901760, %v1183_v7  ;;  %v1204_v13 = vand.u32 4294901760, %v1184_v9  ;;  %v1719_v4 = vld [vmem:[%s26679_s6 + $0x10] sm:$0xff] }
  0x19   :  { %v142_v60 = vsub.f32 %v140_v54, %v141_v57  ;;  %v23760_v11 = vand.u32 4294901760, %v1195_v5  ;;  %v1198_v16 = vsel %vm1193_vm2, %v1182_v10, 0  ;;  %v21951_v17 = vpack.c.bf16 %v183_v36, %v176_v32 }
  0x1a   :  { %19737 = vmatmul.mubr.f32.gmra.mrb[2].mxu1 %v693_v52  ;;  %v151_v61 = vand.u32 4294901760, %v23702_v58  ;;  %v23789_v27 = vand.u32 4294901760, %v1198_v16  ;;  %v23793_v28 = vsub.f32 %v1183_v7, %v1201_v12  ;;  %v23795_v30 = vsub.f32 %v1184_v9, %v1204_v13 }
  0x1b   :  { %19739 = vmatprep.mubr.msk.f32.mxu1 %vm23495_vm0, %v23496_v8  ;;  %21974 = vmatpush3.bf16.msra.mxu1 %v21927_v56  ;;  %v143_v62 = vand.u32 4294901760, %v142_v60  ;;  %v23782_v23 = vsub.f32 %v1195_v5, %v23760_v11  ;;  %v1740_v32 = vand.u32 4294901760, %v23773_v20  ;;  %v23836_v41 = vpack.c.bf16 %v1204_v13, %v1201_v12 }
  0x1c   :  { %21975 = vmatprep.subr.bf16.mxu1 %v23494_v3  ;;  %v152_v63 = vsub.f32 %v23702_v58, %v151_v61  ;;  %v23807_v35 = vsub.f32 %v1198_v16, %v23789_v27  ;;  %v1291_v36 = vand.u32 4294901760, %v23793_v28  ;;  %v1298_v37 = vand.u32 4294901760, %v23795_v30 }
  0x1d   :  { %19667 = vmatprep.mubr.f32.mxu0 %v143_v62  ;;  %v1270_v33 = vand.u32 4294901760, %v23782_v23  ;;  %v23816_v38 = vsub.f32 %v23773_v20, %v1740_v32  ;;  %vm2852_vm3 = vcmask 130048  }
  0x1e   :  { %19740 = vmatmul.mubr.f32.gmra.mrb[4].mxu1 %v703_v59  ;;  %v153_v0 = vand.u32 4294901760, %v152_v63  ;;  %v1280_v42 = vand.u32 4294901760, %v23807_v35  ;;  %v1292_v44 = vsub.f32 %v23793_v28, %v1291_v36  ;;  %v1717_v63 = vld [vmem:[%s26679_s6] sm:$0xff]  ;;  %v22015_v7 = vpack.c.bf16 %v1298_v37, %v1291_v36 }
  0x1f   :  { %19750 = vmatprep.mubr.msk.f32.mxu1 %vm23495_vm0, %v23496_v8 }
  0x20   :  { %19668 = vmatmul.mubr.f32.vlgmr.msra.gmra.mrb[0].mxu0 %v153_v0  ;;  %v1293_v50 = vand.u32 4294901760, %v1292_v44 }
  0x21   :  { %21926 = vmatpush3.bf16.msra.mxu0 %v21923_v49  ;;  %19678 = vmatprep.mubr.f32.mxu0 %v23689_v48  ;;  %v1281_v49 = vsub.f32 %v23807_v35, %v1280_v42 }
  0x22   :  { %19751 = vmatmul.mubr.f32.vlgmr.msra.gmra.mrb[0].mxu1 %v23622_v15  ;;  %21928 = vmatprep.subr.bf16.mxu0 %v21927_v56 }
  0x23   :  { %19753 = vmatprep.mubr.msk.f32.mxu1 %vm23495_vm0, %v23496_v8  ;;  %21977 = vmatpush3.bf16.msra.mxu1 %v21931_v1 }
  0x24   :  { %21978 = vmatprep.subr.bf16.mxu1 %v23494_v3 }
  0x25   :  { %21930 = vmatpush3.bf16.msra.mxu0 %v21927_v56  ;;  %v1282_v56 = vand.u32 4294901760, %v1281_v49 }
  0x26   :  { %19754 = vmatmul.mubr.f32.gmra.mrb[2].mxu1 %v23629_v19  ;;  %21932 = vmatprep.subr.bf16.mxu0 %v21931_v1 }
  0x27   :  { %19756 = vmatprep.mubr.msk.f32.mxu1 %vm23495_vm0, %v23496_v8  ;;  %21980 = vmatpush3.bf16.msra.mxu1 %v21935_v2 }
  0x28   :  { %21981 = vmatprep.subr.bf16.mxu1 %v23494_v3  ;;  %19679 = vmatmul.mubr.f32.vlgmr.msra.gmra.mrb[0].mxu0 %v23696_v55 }
  0x29   :  { %21934 = vmatpush3.bf16.msra.mxu0 %v21931_v1  ;;  %19689 = vmatprep.mubr.f32.mxu0 %v140_v54  ;;  %v1718_v1 = vld [vmem:[%s26679_s6 + $0x8] sm:$0xff] }
  0x2a   :  { %19757 = vmatmul.mubr.f32.gmra.mrb[4].mxu1 %v23639_v24  ;;  %21936 = vmatprep.subr.bf16.mxu0 %v21935_v2 }
  0x2b   :  { %19767 = vmatprep.mubr.msk.f32.mxu1 %vm23495_vm0, %v23496_v8 }
  0x2d   :  { %21938 = vmatpush3.bf16.msra.mxu0 %v21935_v2  ;;  %v1734_v2 = vsel %vm1193_vm2, %v1718_v1, 0 }
  0x2e   :  { %19768 = vmatmul.mubr.f32.vlgmr.msra.gmra.mrb[0].mxu1 %v23636_v22  ;;  %21940 = vmatprep.subr.bf16.mxu0 %v23620_v14  ;;  %v1743_v22 = vand.u32 4294901760, %v23778_v21  ;;  %v23930_v5 = vand.u32 4294901760, %v1734_v2 }
  0x2f   :  { %19770 = vmatprep.mubr.msk.f32.mxu1 %vm23495_vm0, %v23496_v8  ;;  %21983 = vmatpush3.bf16.msra.mxu1 %v23620_v14 }
  0x30   :  { %21984 = vmatprep.subr.bf16.mxu1 %v23494_v3  ;;  %19690 = vmatmul.mubr.f32.vlgmr.msra.gmra.mrb[0].mxu0 %v23702_v58  ;;  %v22024_v12 = vpack.c.bf16 %v1743_v22, %v1740_v32  ;;  %v1818_v13 = vsub.f32 %v1734_v2, %v23930_v5 }
  0x31   :  { %21942 = vmatpush3.bf16.msra.mxu0 %v23620_v14  ;;  %19700 = vmatprep.mubr.f32.mxu0 %v141_v57 }
  0x32   :  { %19771 = vmatmul.mubr.f32.gmra.mrb[2].mxu1 %v23646_v26  ;;  %21944 = vmatprep.subr.bf16.mxu0 %v23627_v18  ;;  %v23821_v26 = vsub.f32 %v23778_v21, %v1743_v22  ;;  %v1819_v20 = vand.u32 4294901760, %v1818_v13 }
  0x33   :  { %19773 = vmatprep.mubr.msk.f32.mxu1 %vm23495_vm0, %v23496_v8  ;;  %21986 = vmatpush3.bf16.msra.mxu1 %v23627_v18 }
  0x34   :  { %21987 = vmatprep.subr.bf16.mxu1 %v23494_v3  ;;  %v1847_v45 = vand.u32 4294901760, %v23821_v26 }
  0x35   :  { %21946 = vmatpush3.bf16.msra.mxu0 %v23627_v18 }
  0x36   :  { %19774 = vmatmul.mubr.f32.gmra.mrb[4].mxu1 %v23657_v31  ;;  %21948 = vmatprep.subr.bf16.mxu0 %v21947_v6  ;;  %v1299_v31 = vsub.f32 %v23795_v30, %v1298_v37  ;;  %v1848_v53 = vsub.f32 %v23821_v26, %v1847_v45 }
  0x37   :  { %19784 = vmatprep.mubr.msk.f32.mxu1 %vm23495_vm0, %v23496_v8 }
  0x38   :  { %19701 = vmatmul.mubr.f32.vlgmr.msra.gmra.mrb[0].mxu0 %v151_v61  ;;  %v1300_v51 = vand.u32 4294901760, %v1299_v31  ;;  %v1849_v58 = vand.u32 4294901760, %v1848_v53 }
  0x39   :  { %21950 = vmatpush3.bf16.msra.mxu0 %v21947_v6  ;;  %19711 = vmatprep.mubr.f32.mxu0 %v23689_v48 }
  0x3a   :  { %19785 = vmatmul.mubr.f32.vlgmr.msra.gmra.mrb[0].mxu1 %v681_v29  ;;  %21952 = vmatprep.subr.bf16.mxu0 %v21951_v17  ;;  %v23800_v29 = vand.u32 4294901760, %v1185_v25 }
  0x3b   :  { %19787 = vmatprep.mubr.msk.f32.mxu1 %vm23495_vm0, %v23496_v8  ;;  %21989 = vmatpush3.bf16.msra.mxu1 %v21947_v6  ;;  %v1737_v6 = vsel %vm1193_vm2, %v1719_v4, 0 }
  0x3c   :  { %21990 = vmatprep.subr.bf16.mxu1 %v23494_v3  ;;  %v23831_v40 = vsub.f32 %v1185_v25, %v23800_v29  ;;  %v23944_v9 = vand.u32 4294901760, %v1737_v6 }
  0x3d   :  { %21954 = vmatpush3.bf16.msra.mxu0 %v21951_v17 }
  0x3e   :  { %19788 = vmatmul.mubr.f32.gmra.mrb[2].mxu1 %v691_v34  ;;  %21956 = vmatprep.subr.bf16.mxu0 %v23620_v14  ;;  %v1271_v34 = vsub.f32 %v23782_v23, %v1270_v33  ;;  %v23854_v47 = vand.u32 4294901760, %v23831_v40  ;;  %v1828_v16 = vsub.f32 %v1737_v6, %v23944_v9 }
  0x3f   :  { %19790 = vmatprep.mubr.msk.f32.mxu1 %vm23495_vm0, %v23496_v8  ;;  %21992 = vmatpush3.bf16.msra.mxu1 %v21951_v17 }
  0x40   :  { %21993 = vmatprep.subr.bf16.mxu1 %v23494_v3  ;;  %19712 = vmatmul.mubr.f32.vlgmr.msra.gmra.mrb[0].mxu0 %v23696_v55  ;;  %v1272_v46 = vand.u32 4294901760, %v1271_v34  ;;  %v1829_v21 = vand.u32 4294901760, %v1828_v16 }
  0x41   :  { %21958 = vmatpush3.bf16.msra.mxu0 %v23620_v14  ;;  %19722 = vmatprep.mubr.f32.mxu0 %v23689_v48  ;;  %v23856_v48 = vand.u32 4294901760, %v1722_v43 }
  0x42   :  { %19791 = vmatmul.mubr.f32.gmra.mrb[4].mxu1 %v701_v39  ;;  %21960 = vmatprep.subr.bf16.mxu0 %v23627_v18  ;;  %v1840_v39 = vand.u32 4294901760, %v23816_v38  ;;  %v1830_v32 = vsub.f32 %v1828_v16, %v1829_v21 }
  0x43   :  { %19801 = vmatprep.mubr.msk.f32.mxu1 %vm23495_vm0, %v23496_v8  ;;  %v23878_v54 = vsub.f32 %v1722_v43, %v23856_v48 }
  0x44   :  { %v1841_v52 = vsub.f32 %v23816_v38, %v1840_v39 }
  0x45   :  { %21962 = vmatpush3.bf16.msra.mxu0 %v23627_v18  ;;  %v1854_v60 = vand.u32 4294901760, %v23878_v54 }
  0x46   :  { %19802 = vmatmul.mubr.f32.vlgmr.msra.gmra.mrb[0].mxu1 %v23622_v15  ;;  %22000 = vmatprep.subr.bf16.mxu0 %v23836_v41  ;;  %v1842_v57 = vand.u32 4294901760, %v1841_v52 }
  0x47   :  { %19804 = vmatprep.mubr.msk.f32.mxu1 %vm23495_vm0, %v23496_v8  ;;  %21995 = vmatpush3.bf16.msra.mxu1 %v23620_v14  ;;  %v1306_v14 = vsub.f32 %v23831_v40, %v23854_v47  ;;  %v1855_v62 = vsub.f32 %v23878_v54, %v1854_v60 }
  0x48   :  { %21996 = vmatprep.subr.bf16.mxu1 %v23494_v3  ;;  %19723 = vmatmul.mubr.f32.vlgmr.msra.gmra.mrb[0].mxu0 %v23696_v55  ;;  %v22003_v55 = vpack.c.bf16 %v1300_v51, %v1293_v50  ;;  %v22027_v61 = vpack.c.bf16 %v1849_v58, %v1842_v57 }
  0x49   :  { %22002 = vmatpush3.bf16.msra.mxu0 %v23836_v41  ;;  %19833 = vmatprep.mubr.f32.mxu0 %v1272_v46  ;;  %v1307_v59 = vand.u32 4294901760, %v1306_v14  ;;  %v1856_v0 = vand.u32 4294901760, %v1855_v62 }
  0x4a   :  { %19805 = vmatmul.mubr.f32.gmra.mrb[2].mxu1 %v23629_v19  ;;  %19831 = vmatprep.subr.mxu0 %v23800_v29 }
  0x4b   :  { %19807 = vmatprep.mubr.msk.f32.mxu1 %vm23495_vm0, %v23496_v8  ;;  %21998 = vmatpush3.bf16.msra.mxu1 %v23627_v18  ;;  %v22007_v18 = vpack.c.bf16 %v23795_v30, %v23793_v28  ;;  %v2324_v30 = vld [vmem:[%s26675_s2] sm:$0xff] }
  0x4c   :  { %22026 = vmatprep.subr.bf16.mxu1 %v23494_v3  ;;  %v2327_v22 = vsel %vm1193_vm2, %v2324_v30, 0 }
  0x4d   :  { %19832 = vmatpush3.msra.mxu0 %v23800_v29 }
  0x4e   :  { %19808 = vmatmul.mubr.f32.gmra.mrb[4].mxu1 %v23639_v24  ;;  %19834 = vmatmul.mubr.f32.vlgmr.msra.gmra.mrb[2].mxu0 %v1282_v56 }
  0x4f   :  { %19818 = vmatprep.mubr.msk.f32.mxu1 %vm23495_vm0, %v23496_v8  ;;  %22004 = vmatprep.subr.bf16.mxu0 %v22003_v55 }
  0x50   :  { %22006 = vmatpush3.bf16.msra.mxu0 %v22003_v55  ;;  %19842 = vmatprep.mubr.f32.mxu0 %v23760_v11 }
  0x51   :  { %19840 = vmatprep.subr.mxu0 %v1307_v59 }
  0x52   :  { %19819 = vmatmul.mubr.f32.vlgmr.msra.gmra.mrb[0].mxu1 %v23622_v15  ;;  %v1731_v15 = vsel %vm1193_vm2, %v1717_v63, 0 }
  0x53   :  { %19821 = vmatprep.mubr.msk.f32.mxu1 %vm23495_vm0, %v23496_v8  ;;  %22028 = vmatpush3.bf16.msra.mxu1 %v22027_v61 }
  0x54   :  { %19841 = vmatpush3.msra.mxu0 %v1307_v59  ;;  %19900 = vmatprep.subr.mxu1 %v23496_v8 }
  0x55   :  { %22008 = vmatprep.subr.bf16.mxu0 %v22007_v18 }
  0x56   :  { %19822 = vmatmul.mubr.f32.gmra.mrb[2].mxu1 %v23629_v19  ;;  %19843 = vmatmul.mubr.f32.vlgmr.msra.gmra.mrb[2].mxu0 %v23789_v27  ;;  %v23915_v19 = vand.u32 4294901760, %v1731_v15 }
  0x57   :  { %19824 = vmatprep.mubr.msk.f32.mxu1 %vm23495_vm0, %v23496_v8  ;;  %22010 = vmatpush3.bf16.msra.mxu0 %v22007_v18 }
  0x58   :  { %19849 = vmatprep.subr.mxu0 %v23831_v40  ;;  %19851 = vmatprep.mubr.f32.mxu0 %v23782_v23  ;;  %v1808_v10 = vsub.f32 %v1731_v15, %v23915_v19 }
  0x59   :  { %19901 = vmatpush3.msra.mxu1 %v1856_v0 }
  0x5a   :  { %19825 = vmatmul.mubr.f32.gmra.mrb[4].mxu1 %v23639_v24  ;;  %22029 = vmatprep.subr.bf16.mxu1 %v23494_v3  ;;  %v22030_v24 = vpack.c.bf16 %v23821_v26, %v23816_v38  ;;  %v1809_v17 = vand.u32 4294901760, %v1808_v10  ;;  %v2325_v26 = vld [vmem:[%s26675_s2 + $0x8] sm:$0xff] }
  0x5b   :  { %19850 = vmatpush3.msra.mxu0 %v23831_v40  ;;  %19902 = vmatprep.mubr.msk.f32.mxu1 %vm23495_vm0, %v23496_v8 }
  0x5c   :  { %22012 = vmatprep.subr.bf16.mxu0 %v23836_v41  ;;  %v1810_v23 = vsub.f32 %v1808_v10, %v1809_v17 }
  0x5e   :  { %19852 = vmatmul.mubr.f32.vlgmr.msra.gmra.mrb[2].mxu0 %v23807_v35  ;;  %19903 = vmatmul.mubr.f32.vlgmr.msra.gmra.mrb[6].mxu1 %v23915_v19  ;;  %v1811_v25 = vand.u32 4294901760, %v1810_v23 }
  0x5f   :  { %22014 = vmatpush3.bf16.msra.mxu0 %v23836_v41  ;;  %19860 = vmatprep.mubr.f32.mxu0 %v1270_v33  ;;  %v1831_v33 = vand.u32 4294901760, %v1830_v32 }
  0x60   :  { %19858 = vmatprep.subr.mxu0 %v23800_v29  ;;  %19905 = vmatprep.mubr.msk.f32.mxu1 %vm23495_vm0, %v23496_v8 }
  0x61   :  { %22031 = vmatpush3.bf16.msra.mxu1 %v22030_v24 }
  0x62   :  { %19906 = vmatmul.mubr.f32.gmra.mrb[8].mxu1 %v23930_v5  ;;  %19915 = vmatprep.subr.mxu1 %v23496_v8 }
  0x63   :  { %19859 = vmatpush3.msra.mxu0 %v23800_v29  ;;  %19908 = vmatprep.mubr.msk.f32.mxu1 %vm23495_vm0, %v23496_v8 }
  0x64   :  { %22016 = vmatprep.subr.bf16.mxu0 %v22015_v7 }
  0x65   :  { %19916 = vmatpush3.msra.mxu1 %v23878_v54 }
  0x66   :  { %19861 = vmatmul.mubr.f32.vlgmr.msra.gmra.mrb[2].mxu0 %v1280_v42  ;;  %19909 = vmatmul.mubr.f32.gmra.mrb[10].mxu1 %v23944_v9  ;;  %v2330_v42 = vsel %vm1193_vm2, %v2325_v26, 0 }
  0x67   :  { %22018 = vmatpush3.bf16.msra.mxu0 %v22015_v7  ;;  %19869 = vmatprep.mubr.f32.mxu0 %v23760_v11 }
  0x68   :  { %19867 = vmatprep.subr.mxu0 %v23854_v47  ;;  %19917 = vmatprep.mubr.msk.f32.mxu1 %vm23495_vm0, %v23496_v8 }
  0x69   :  { %22032 = vmatprep.subr.bf16.mxu1 %v23494_v3 }
  0x6a   :  { %19918 = vmatmul.mubr.f32.vlgmr.msra.gmra.mrb[6].mxu1 %v1808_v10 }
  0x6b   :  { %19868 = vmatpush3.msra.mxu0 %v23854_v47  ;;  %19920 = vmatprep.mubr.msk.f32.mxu1 %vm23495_vm0, %v23496_v8 }
  0x6c   :  { %22020 = vmatprep.subr.bf16.mxu0 %v23836_v41  ;;  %22034 = vmatpush3.bf16.msra.mxu1 %v22024_v12 }
  0x6d   :  { %19930 = vmatprep.subr.mxu1 %v23496_v8 }
  0x6e   :  { %19870 = vmatmul.mubr.f32.vlgmr.msra.gmra.mrb[2].mxu0 %v23789_v27  ;;  %19921 = vmatmul.mubr.f32.gmra.mrb[8].mxu1 %v1818_v13 }
  0x6f   :  { %22022 = vmatpush3.bf16.msra.mxu0 %v23836_v41  ;;  %19878 = vmatprep.mubr.f32.mxu0 %v23760_v11  ;;  %v22036_v11 = vpack.c.bf16 %v1847_v45, %v1840_v39  ;;  %v24055_v45 = vand.u32 4294901760, %v2330_v42 }
  0x70   :  { %19876 = vmatprep.subr.mxu0 %v23800_v29  ;;  %19923 = vmatprep.mubr.msk.f32.mxu1 %vm23495_vm0, %v23496_v8 }
  0x71   :  { %19931 = vmatpush3.msra.mxu1 %v23856_v48  ;;  %v24066_v52 = vsub.f32 %v2330_v42, %v24055_v45 }
  0x72   :  { %19924 = vmatmul.mubr.f32.gmra.mrb[10].mxu1 %v1828_v16  ;;  %22035 = vmatprep.subr.bf16.mxu1 %v23494_v3 }
  0x73   :  { %19877 = vmatpush3.msra.mxu0 %v23800_v29  ;;  %19932 = vmatprep.mubr.msk.f32.mxu1 %vm23495_vm0, %v23496_v8  ;;  %v24028_v29 = vand.u32 4294901760, %v2327_v22  ;;  %v2412_v58 = vand.u32 4294901760, %v24066_v52 }
  0x74   :  { %22023 = vmatprep.subr.bf16.mxu0 %v23494_v3 }
  0x75   :  { %v24031_v35 = vsub.f32 %v2327_v22, %v24028_v29  ;;  %v2413_v0 = vsub.f32 %v24066_v52, %v2412_v58  ;;  %v2851_v22 = vld [vmem:[%s26676_s3 + $0x10] sm:$0xff] }
  0x76   :  { %19879 = vmatmul.mubr.f32.vlgmr.msra.gmra.mrb[2].mxu0 %v23789_v27  ;;  %19933 = vmatmul.mubr.f32.vlgmr.msra.gmra.mrb[6].mxu1 %v1809_v17  ;;  %v1820_v27 = vsub.f32 %v1818_v13, %v1819_v20 }
  0x77   :  { %19935 = vmatprep.mubr.msk.f32.mxu1 %vm23495_vm0, %v23496_v8  ;;  %22037 = vmatpush3.bf16.msra.mxu1 %v22036_v11  ;;  %v2402_v36 = vand.u32 4294901760, %v24031_v35  ;;  %v2414_v7 = vand.u32 4294901760, %v2413_v0 }
  0x78   :  { %19945 = vmatprep.subr.mxu1 %v23496_v8  ;;  %22025 = vmatpush3.bf16.msra.mxu0 %v22024_v12  ;;  %v1821_v28 = vand.u32 4294901760, %v1820_v27  ;;  %v2850_v27 = vld [vmem:[%s26676_s3 + $0x8] sm:$0xff] }
  0x79   :  { %19885 = vmatprep.subr.mxu0 %v23496_v8  ;;  %19887 = vmatprep.mubr.msk.f32.mxu0 %vm23495_vm0, %v23496_v8  ;;  %v2403_v37 = vsub.f32 %v24031_v35, %v2402_v36  ;;  %v2857_v32 = vsel %vm2852_vm3, %v2850_v27, 0 }
  0x7a   :  { %19936 = vmatmul.mubr.f32.gmra.mrb[8].mxu1 %v1819_v20 }
  0x7b   :  { %19938 = vmatprep.mubr.msk.f32.mxu1 %vm23495_vm0, %v23496_v8  ;;  %19946 = vmatpush3.msra.mxu1 %v1854_v60  ;;  %v2404_v38 = vand.u32 4294901760, %v2403_v37 }
  0x7c   :  { %22038 = vmatprep.subr.bf16.mxu1 %v23494_v3  ;;  %19886 = vmatpush3.msra.mxu0 %v23856_v48 }
  0x7d   :  { %19888 = vmatmul.mubr.f32.vlgmr.msra.gmra.mrb[4].mxu0 %v1811_v25 }
  0x7e   :  { %19939 = vmatmul.mubr.f32.gmra.mrb[10].mxu1 %v1829_v21  ;;  %19890 = vmatprep.mubr.msk.f32.mxu0 %vm23495_vm0, %v23496_v8  ;;  %v2849_v21 = vld [vmem:[%s26676_s3] sm:$0xff] }
  0x7f   :  { %19947 = vmatprep.mubr.msk.f32.mxu1 %vm23495_vm0, %v23496_v8  ;;  %v2854_v23 = vsel %vm2852_vm3, %v2849_v21, 0 }
  0x80   :  { %v24128_v30 = vand.u32 4294901760, %v2854_v23 }
  0x81   :  { %19891 = vmatmul.mubr.f32.gmra.mrb[6].mxu0 %v1821_v28 }
  0x82   :  { %19948 = vmatmul.mubr.f32.vlgmr.msra.gmra.mrb[6].mxu1 %v23915_v19  ;;  %19893 = vmatprep.mubr.msk.f32.mxu0 %vm23495_vm0, %v23496_v8 }
  0x83   :  { %19950 = vmatprep.mubr.msk.f32.mxu1 %vm23495_vm0, %v23496_v8  ;;  %22040 = vmatpush3.bf16.msra.mxu1 %v22024_v12 }
  0x84   :  { %19960 = vmatprep.subr.mxu1 %v23496_v8 }
  0x85   :  { %19894 = vmatmul.mubr.f32.gmra.mrb[8].mxu0 %v1831_v33  ;;  %v24138_v33 = vsub.f32 %v2854_v23, %v24128_v30 }
  0x86   :  { %19951 = vmatmul.mubr.f32.gmra.mrb[8].mxu1 %v23930_v5  ;;  %19977 = vmatprep.mubr.f32.mxu0 %v2404_v38 }
  0x87   :  { %19953 = vmatprep.mubr.msk.f32.mxu1 %vm23495_vm0, %v23496_v8  ;;  %19961 = vmatpush3.msra.mxu1 %v23856_v48  ;;  %v2931_v37 = vand.u32 4294901760, %v24138_v33 }
  0x8a   :  { %19954 = vmatmul.mubr.f32.gmra.mrb[10].mxu1 %v23944_v9 }
  0x8b   :  { %19962 = vmatprep.mubr.msk.f32.mxu1 %vm23495_vm0, %v23496_v8 }
  0x8e   :  { %19963 = vmatmul.mubr.f32.vlgmr.msra.gmra.mrb[6].mxu1 %v23915_v19 }
  0x8f   :  { %19965 = vmatprep.mubr.msk.f32.mxu1 %vm23495_vm0, %v23496_v8 }
  0x92   :  { %19966 = vmatmul.mubr.f32.gmra.mrb[8].mxu1 %v23930_v5 }
  0x93   :  { %19968 = vmatprep.mubr.msk.f32.mxu1 %vm23495_vm0, %v23496_v8 }
  0x96   :  { %19969 = vmatmul.mubr.f32.gmra.mrb[10].mxu1 %v23944_v9 }
 0x11b   :  { %v24040_v34 = vpop.f32.mrb[0].mxu0 }
 0x11c   :  { %v24042_v40 = vpop.f32.mrb[1].mxu0  ;;  %v2866_v41 = vand.u32 4294901760, %v24040_v34 }
 0x11d   :  { %v2863_v43 = vand.u32 4294901760, %v24042_v40 }
 0x11e   :  { %v24048_v44 = vsub.f32 %v24040_v34, %v2866_v41 }
 0x11f   :  { %v24050_v31 = vpack.c.bf16 %v2866_v41, %v2863_v43  ;;  %v24053_v39 = vsub.f32 %v24042_v40, %v2863_v43 }
 0x120   :  { %v2969_v46 = vand.u32 4294901760, %v24048_v44 }
 0x121   :  { %v2962_v47 = vand.u32 4294901760, %v24053_v39  ;;  %v22072_v48 = vpack.c.bf16 %v24048_v44, %v24053_v39 }
 0x122   :  { %v2970_v49 = vsub.f32 %v24048_v44, %v2969_v46 }
 0x123   :  { %v2963_v50 = vsub.f32 %v24053_v39, %v2962_v47  ;;  %v24063_v51 = vpack.c.bf16 %v2969_v46, %v2962_v47 }
 0x124   :  { %v2971_v53 = vand.u32 4294901760, %v2970_v49 }
 0x125   :  { %v24068_v14 = vpop.f32.mrb[0].mxu1  ;;  %v2964_v54 = vand.u32 4294901760, %v2963_v50 }
 0x126   :  { %v2333_v56 = vand.u32 4294901760, %v24068_v14  ;;  %5540 = vrot.lane.b32.xlu0 %v24068_v14, %s23497_s1  ;;  %v19820_v55 = vpop.f32.mrb[1].mxu1 }
 0x127   :  { %v24072_v57 = vpack.c.bf16 %v2971_v53, %v2964_v54 }
 0x128   :  { %v2422_v59 = vsub.f32 %v24068_v14, %v2333_v56 }
 0x129   :  { %v1171_v60 = vpop.f32.mrb[2].mxu1 }
 0x12a   :  { %v2336_v61 = vand.u32 4294901760, %v1171_v60  ;;  %5542 = vrot.lane.b32.xlu0 %v1171_v60, %s23497_s1  ;;  %v19823_v18 = vpop.f32.mrb[3].mxu1  ;;  %v2423_v62 = vand.u32 4294901760, %v2422_v59 }
 0x12c   :  { %v24076_v63 = vpack.c.bf16 %v2336_v61, %v2333_v56  ;;  %v2429_v15 = vsub.f32 %v1171_v60, %v2336_v61  ;;  %v2424_v4 = vsub.f32 %v2422_v59, %v2423_v62  ;;  %v18472_v56 = vld [vmem:[%s26683_s10] ss:$0 sm:$0xff] }
 0x12d   :  { %v1177_v1 = vpop.f32.mrb[4].mxu1 }
 0x12e   :  { %v24081_v19 = vand.u32 4294901760, %v1177_v1  ;;  %5544 = vrot.lane.b32.xlu1 %v1177_v1, %s23497_s1  ;;  %v19826_v2 = vpop.f32.mrb[5].mxu1  ;;  %22042 = vmatprep.subr.bf16.mxu0 %v24076_v63  ;;  %v2430_v24 = vand.u32 4294901760, %v2429_v15  ;;  %v22049_v5 = vpack.c.bf16 %v2429_v15, %v2422_v59  ;;  %v2425_v12 = vand.u32 4294901760, %v2424_v4 }
 0x12f   :  { %6080 = vrot.lane.b32.xlu0 %v24040_v34, %s23497_s1  ;;  %22044 = vmatpush3.bf16.msra.mxu0 %v24076_v63 }
 0x130   :  { %v2436_v6 = vsub.f32 %v1177_v1, %v24081_v19  ;;  %19975 = vmatprep.subr.mxu0 %v24081_v19  ;;  %v2431_v9 = vsub.f32 %v2429_v15, %v2430_v24  ;;  %v22057_v10 = vpack.c.bf16 %v2430_v24, %v2423_v62 }
 0x132   :  { %6078 = vrot.lane.b32.xlu1 %v24042_v40, %s23497_s1  ;;  %v2432_v13 = vand.u32 4294901760, %v2431_v9  ;;  %v2437_v16 = vand.u32 4294901760, %v2436_v6 }
 0x133   :  { %7713 = vrot.lane.b32.xlu0 %v1171_v60, %s23498_s20  ;;  %19976 = vmatpush3.msra.mxu0 %v24081_v19 }
 0x134   :  { %19978 = vmatmul.mubr.f32.vlgmr.msra.gmra.mrb[10].mxu0 %v2414_v7  ;;  %v22045_v17 = vpack.c.bf16 %v2432_v13, %v2425_v12  ;;  %v2438_v11 = vsub.f32 %v2436_v6, %v2437_v16  ;;  %v2300_v13 = vld [vmem:[%s26684_s11] sm:$0xff] }
 0x135   :  { %19986 = vmatprep.mubr.f32.mxu0 %v24028_v29 }
 0x136   :  { %22046 = vmatprep.subr.bf16.mxu0 %v22045_v17  ;;  %7711 = vrot.lane.b32.xlu1 %v24068_v14, %s23498_s20  ;;  %v2439_v20 = vand.u32 4294901760, %v2438_v11 }
 0x137   :  { %8247 = vrot.lane.b32.xlu0 %v24042_v40, %s23498_s20  ;;  %22048 = vmatpush3.bf16.msra.mxu0 %v22045_v17 }
 0x138   :  { %19984 = vmatprep.subr.mxu0 %v2439_v20 }
 0x13a   :  { %7715 = vrot.lane.b32.xlu1 %v1177_v1, %s23498_s20 }
 0x13b   :  { %9880 = vrot.lane.b32.xlu0 %v24068_v14, %s23499_s5  ;;  %19985 = vmatpush3.msra.mxu0 %v2439_v20  ;;  %v3417_v20 = vand.u32 4294901760, %v2300_v13 }
 0x13c   :  { %19987 = vmatmul.mubr.f32.vlgmr.msra.gmra.mrb[10].mxu0 %v24055_v45  ;;  %22050 = vmatprep.subr.bf16.mxu0 %v22049_v5 }
 0x13d   :  { %22052 = vmatpush3.bf16.msra.mxu0 %v22049_v5  ;;  %19995 = vmatprep.mubr.f32.mxu0 %v24031_v35  ;;  %v24140_v35 = vand.u32 4294901760, %v2857_v32 }
 0x13e   :  { %19993 = vmatprep.subr.mxu0 %v2436_v6  ;;  %8249 = vrot.lane.b32.xlu1 %v24040_v34, %s23498_s20 }
 0x13f   :  { %9884 = vrot.lane.b32.xlu0 %v1177_v1, %s23499_s5  ;;  %v24149_v38 = vsub.f32 %v2857_v32, %v24140_v35  ;;  %v3505_v32 = vsub.f32 %v2300_v13, %v3417_v20 }
 0x141   :  { %19994 = vmatpush3.msra.mxu0 %v2436_v6 }
 0x142   :  { %22054 = vmatprep.subr.bf16.mxu0 %v24076_v63  ;;  %9882 = vrot.lane.b32.xlu1 %v1171_v60, %s23499_s5 }
 0x143   :  { %12051 = vrot.lane.b32.xlu0 %v1171_v60, %s23500_s21 }
 0x144   :  { %19996 = vmatmul.mubr.f32.vlgmr.msra.gmra.mrb[10].mxu0 %v24066_v52 }
 0x145   :  { %22056 = vmatpush3.bf16.msra.mxu0 %v24076_v63  ;;  %20004 = vmatprep.mubr.f32.mxu0 %v2402_v36  ;;  %v2860_v36 = vsel %vm2852_vm3, %v2851_v22, 0 }
 0x146   :  { %20002 = vmatprep.subr.mxu0 %v24081_v19  ;;  %12049 = vrot.lane.b32.xlu1 %v24068_v14, %s23500_s21  ;;  %v24151_v26 = vand.u32 4294901760, %v2860_v36 }
 0x147   :  { %10416 = vrot.lane.b32.xlu0 %v24042_v40, %s23499_s5 }
 0x148   :  { %v2950_v41 = vsub.f32 %v2860_v36, %v24151_v26  ;;  %v3506_v36 = vand.u32 4294901760, %v3505_v32 }
 0x149   :  { %20003 = vmatpush3.msra.mxu0 %v24081_v19  ;;  %v24116_v25 = vpop.f32.mrb[2].mxu0 }
 0x14a   :  { %22058 = vmatprep.subr.bf16.mxu0 %v22057_v10  ;;  %12053 = vrot.lane.b32.xlu1 %v1177_v1, %s23500_s21  ;;  %v24122_v28 = vpop.f32.mrb[3].mxu0 }
 0x14b   :  { %12585 = vrot.lane.b32.xlu0 %v24042_v40, %s23500_s21  ;;  %v2932_v40 = vsub.f32 %v24138_v33, %v2931_v37 }
 0x14c   :  { %20005 = vmatmul.mubr.f32.vlgmr.msra.gmra.mrb[10].mxu0 %v2412_v58 }
 0x14d   :  { %22060 = vmatpush3.bf16.msra.mxu0 %v22057_v10  ;;  %20013 = vmatprep.mubr.f32.mxu0 %v24028_v29  ;;  %v2933_v42 = vand.u32 4294901760, %v2932_v40  ;;  %v3507_v40 = vsub.f32 %v3505_v32, %v3506_v36 }
 0x14e   :  { %20011 = vmatprep.subr.mxu0 %v2437_v16  ;;  %10418 = vrot.lane.b32.xlu1 %v24040_v34, %s23499_s5 }
 0x150   :  { %v1813_v55 = vpop.f32.mrb[4].mxu0 }
 0x151   :  { %20012 = vmatpush3.msra.mxu0 %v2437_v16  ;;  %v1814_v44 = vadd.f32 %v18472_v56, %v1813_v55  ;;  %v19889_v39 = vpop.f32.mrb[5].mxu0  ;;  %v2301_v16 = vld [vmem:[%s26684_s11 + $0x8] sm:$0xff] }
 0x152   :  { %22062 = vmatprep.subr.bf16.mxu0 %v24076_v63  ;;  %12587 = vrot.lane.b32.xlu1 %v24040_v34, %s23500_s21  ;;  %v2941_v34 = vand.u32 4294901760, %v24149_v38  ;;  %v3420_v21 = vand.u32 4294901760, %v2301_v16 }
 0x154   :  { %20014 = vmatmul.mubr.f32.vlgmr.msra.gmra.mrb[10].mxu0 %v24055_v45  ;;  %v2942_v43 = vsub.f32 %v24149_v38, %v2941_v34 }
 0x155   :  { %22064 = vmatpush3.bf16.msra.mxu0 %v24076_v63  ;;  %20022 = vmatprep.mubr.f32.mxu0 %v24028_v29  ;;  %v2951_v29 = vand.u32 4294901760, %v2950_v41 }
 0x156   :  { %20020 = vmatprep.subr.mxu0 %v24081_v19  ;;  %v2943_v46 = vand.u32 4294901760, %v2942_v43 }
 0x157   :  { %v2952_v47 = vsub.f32 %v2950_v41, %v2951_v29 }
 0x159   :  { %20021 = vmatpush3.msra.mxu0 %v24081_v19  ;;  %v2953_v50 = vand.u32 4294901760, %v2952_v47 }
 0x15a   :  { %22065 = vmatprep.subr.bf16.mxu0 %v23494_v3 }
 0x15c   :  { %20023 = vmatmul.mubr.f32.vlgmr.msra.gmra.mrb[10].mxu0 %v24055_v45 }
 0x15d   :  { %22067 = vmatpush3.bf16.msra.mxu0 %v24050_v31  ;;  %20029 = vmatprep.mubr.msk.f32.mxu0 %vm23495_vm0, %v23496_v8 }
 0x15e   :  { %22068 = vmatprep.subr.bf16.mxu0 %v23494_v3 }
 0x160   :  { %20030 = vmatmul.mubr.f32.vlgmr.msra.gmra.mrb[12].mxu0 %v2933_v42  ;;  %v3508_v42 = vand.u32 4294901760, %v3507_v40 }
 0x161   :  { %20032 = vmatprep.mubr.msk.f32.mxu0 %vm23495_vm0, %v23496_v8  ;;  %22070 = vmatpush3.bf16.msra.mxu0 %v24072_v57  ;;  %v2281_v45 = vpop.f32.mrb[6].mxu1  ;;  %v1823_v57 = vpop.f32.mrb[6].mxu0 }
 0x162   :  { %22071 = vmatprep.subr.bf16.mxu0 %v23494_v3  ;;  %v19964_v49 = vpop.f32.mrb[7].mxu1  ;;  %v1824_v58 = vadd.f32 %v18472_v56, %v1823_v57  ;;  %v19892_v59 = vpop.f32.mrb[7].mxu0 }
 0x163   :  { %v1833_v61 = vpop.f32.mrb[8].mxu0 }
 0x164   :  { %20033 = vmatmul.mubr.f32.gmra.mrb[14].mxu0 %v2943_v46  ;;  %v1834_v18 = vadd.f32 %v18472_v56, %v1833_v61  ;;  %v19895_v62 = vpop.f32.mrb[9].mxu0 }
 0x165   :  { %20035 = vmatprep.mubr.msk.f32.mxu0 %vm23495_vm0, %v23496_v8  ;;  %v2287_v52 = vpop.f32.mrb[8].mxu1 }
 0x166   :  { %v19967_v53 = vpop.f32.mrb[9].mxu1  ;;  %v24203_v60 = vadd.f32 %v2287_v52, %v1824_v58 }
 0x168   :  { %20036 = vmatmul.mubr.f32.gmra.mrb[16].mxu0 %v2953_v50 }
 0x169   :  { %20042 = vmatprep.mubr.msk.f32.mxu0 %vm23495_vm0, %v23496_v8  ;;  %v2293_v14 = vpop.f32.mrb[10].mxu1 }
 0x16a   :  { %v19970_v54 = vpop.f32.mrb[11].mxu1  ;;  %v24207_v63 = vadd.f32 %v2293_v14, %v1834_v18  ;;  %v2312_v14 = vld [vmem:[%s26685_s12] sm:$0xff] }
 0x16b   :  { %v2313_v54 = vld [vmem:[%s26685_s12 + $0x8] sm:$0xff]  ;;  %v4436_v56 = vand.u32 4294901760, %v2312_v14 }
 0x16c   :  { %20043 = vmatmul.mubr.f32.vlgmr.msra.gmra.mrb[12].mxu0 %v24128_v30  ;;  %v4439_v55 = vand.u32 4294901760, %v2313_v54 }
 0x16d   :  { %20045 = vmatprep.mubr.msk.f32.mxu0 %vm23495_vm0, %v23496_v8  ;;  %22073 = vmatpush3.bf16.msra.mxu0 %v22072_v48  ;;  %v24198_v48 = vadd.f32 %v2281_v45, %v1814_v44  ;;  %v24293_v39 = vsub.f32 %v2312_v14, %v4436_v56 }
 0x16e   :  { %22074 = vmatprep.subr.bf16.mxu0 %v23494_v3  ;;  %v24289_v44 = vpack.c.bf16 %v4439_v55, %v4436_v56  ;;  %v24295_v57 = vsub.f32 %v2313_v54, %v4439_v55 }
 0x16f   :  { %v4535_v58 = vand.u32 4294901760, %v24293_v39 }
 0x170   :  { %20046 = vmatmul.mubr.f32.gmra.mrb[14].mxu0 %v24140_v35  ;;  %v4542_v59 = vand.u32 4294901760, %v24295_v57  ;;  %v22138_v13 = vpack.c.bf16 %v24295_v57, %v24293_v39 }
 0x171   :  { %20048 = vmatprep.mubr.msk.f32.mxu0 %vm23495_vm0, %v23496_v8  ;;  %v4536_v61 = vsub.f32 %v24293_v39, %v4535_v58 }
 0x172   :  { %v4543_v18 = vsub.f32 %v24295_v57, %v4542_v59 }
 0x173   :  { %v4537_v62 = vand.u32 4294901760, %v4536_v61 }
 0x174   :  { %20049 = vmatmul.mubr.f32.gmra.mrb[16].mxu0 %v24151_v26 }
 0x175   :  { %20055 = vmatprep.mubr.msk.f32.mxu0 %vm23495_vm0, %v23496_v8 }
 0x178   :  { %20056 = vmatmul.mubr.f32.vlgmr.msra.gmra.mrb[12].mxu0 %v24138_v33 }
 0x179   :  { %20058 = vmatprep.mubr.msk.f32.mxu0 %vm23495_vm0, %v23496_v8  ;;  %22076 = vmatpush3.bf16.msra.mxu0 %v24050_v31 }
 0x17a   :  { %22077 = vmatprep.subr.bf16.mxu0 %v23494_v3 }
 0x17c   :  { %20059 = vmatmul.mubr.f32.gmra.mrb[14].mxu0 %v24149_v38 }
 0x17d   :  { %20061 = vmatprep.mubr.msk.f32.mxu0 %vm23495_vm0, %v23496_v8 }
 0x180   :  { %20062 = vmatmul.mubr.f32.gmra.mrb[16].mxu0 %v2950_v41 }
 0x181   :  { %20068 = vmatprep.mubr.msk.f32.mxu0 %vm23495_vm0, %v23496_v8 }
 0x184   :  { %20069 = vmatmul.mubr.f32.vlgmr.msra.gmra.mrb[12].mxu0 %v2931_v37 }
 0x185   :  { %20071 = vmatprep.mubr.msk.f32.mxu0 %vm23495_vm0, %v23496_v8  ;;  %22079 = vmatpush3.bf16.msra.mxu0 %v24063_v51 }
 0x186   :  { %22080 = vmatprep.subr.bf16.mxu0 %v23494_v3 }
 0x188   :  { %20072 = vmatmul.mubr.f32.gmra.mrb[14].mxu0 %v2941_v34 }
 0x189   :  { %20074 = vmatprep.mubr.msk.f32.mxu0 %vm23495_vm0, %v23496_v8 }
 0x18c   :  { %20075 = vmatmul.mubr.f32.gmra.mrb[16].mxu0 %v2951_v29 }
 0x18d   :  { %20081 = vmatprep.mubr.msk.f32.mxu0 %vm23495_vm0, %v23496_v8 }
 0x190   :  { %20082 = vmatmul.mubr.f32.vlgmr.msra.gmra.mrb[12].mxu0 %v24128_v30 }
 0x191   :  { %20084 = vmatprep.mubr.msk.f32.mxu0 %vm23495_vm0, %v23496_v8  ;;  %22082 = vmatpush3.bf16.msra.mxu0 %v24050_v31 }
 0x192   :  { %22131 = vmatprep.subr.bf16.mxu0 %v23494_v3 }
 0x194   :  { %20085 = vmatmul.mubr.f32.gmra.mrb[14].mxu0 %v24140_v35 }
 0x195   :  { %20087 = vmatprep.mubr.msk.f32.mxu0 %vm23495_vm0, %v23496_v8 }
 0x198   :  { %v24227_v51 = vpop.permute.xlu0 %5540  ;;  %20088 = vmatmul.mubr.f32.gmra.mrb[16].mxu0 %v24151_v26 }
 0x199   :  { %20094 = vmatprep.mubr.msk.f32.mxu0 %vm23495_vm0, %v23496_v8 }
 0x19c   :  { %v24232_v0 = vpop.permute.xlu0 %5542  ;;  %20095 = vmatmul.mubr.f32.vlgmr.msra.gmra.mrb[12].mxu0 %v24128_v30  ;;  %v24271_v30 = vpack.c.bf16 %v3420_v21, %v3417_v20 }
 0x19d   :  { %20097 = vmatprep.mubr.msk.f32.mxu0 %vm23495_vm0, %v23496_v8  ;;  %22133 = vmatpush3.bf16.msra.mxu0 %v24289_v44 }
 0x19e   :  { %22084 = vmatprep.subr.bf16.mxu1 %v24271_v30  ;;  %22134 = vmatprep.subr.bf16.mxu0 %v23494_v3 }
 0x19f   :  { %22086 = vmatpush3.bf16.msra.mxu1 %v24271_v30 }
 0x1a0   :  { %v24237_v31 = vpop.permute.xlu1 %5544  ;;  %20098 = vmatmul.mubr.f32.gmra.mrb[14].mxu0 %v24140_v35  ;;  %v3512_v35 = vsub.f32 %v2301_v16, %v3420_v21  ;;  %v24305_v16 = vpack.c.bf16 %v4542_v59, %v4535_v58 }
 0x1a1   :  { %v24240_v15 = vpop.permute.xlu0 %6080  ;;  %20100 = vmatprep.mubr.msk.f32.mxu0 %vm23495_vm0, %v23496_v8 }
 0x1a2   :  { %v22091_v52 = vpack.c.bf16 %v3512_v35, %v3505_v32 }
 0x1a4   :  { %v24244_v1 = vpop.permute.xlu1 %6078  ;;  %20101 = vmatmul.mubr.f32.gmra.mrb[16].mxu0 %v24151_v26  ;;  %v3513_v26 = vand.u32 4294901760, %v3512_v35 }
 0x1a5   :  { %v24247_v19 = vpop.permute.xlu0 %7713  ;;  %20191 = vmatprep.mubr.msk.f32.mxu0 %vm23495_vm0, %v23496_v8 }
 0x1a6   :  { %v3514_v41 = vsub.f32 %v3512_v35, %v3513_v26  ;;  %v22099_v53 = vpack.c.bf16 %v3513_v26, %v3506_v36 }
 0x1a8   :  { %v24251_v2 = vpop.permute.xlu1 %7711  ;;  %v3515_v43 = vand.u32 4294901760, %v3514_v41 }
 0x1a9   :  { %v24253_v4 = vpop.permute.xlu0 %8247 }
 0x1aa   :  { %v22087_v45 = vpack.c.bf16 %v3515_v43, %v3508_v42  ;;  %v18471_v42 = vld [vmem:[%s26681_s8] ss:$0 sm:$0xff] }
 0x1ab   :  { %v22696_v43 = vadd.f32 %v18471_v42, %v24122_v28  ;;  %v22695_v54 = vadd.f32 %v24116_v25, %v18471_v42 }
 0x1ac   :  { %v24255_v24 = vpop.permute.xlu1 %7715  ;;  %22088 = vmatprep.subr.bf16.mxu1 %v22087_v45 }
 0x1ad   :  { %v24257_v5 = vpop.permute.xlu0 %9880  ;;  %v1716_v58 = vmax.f32 %v22695_v54, 0.0 }
 0x1af   :  { %v3922_v25 = vsel %vm2852_vm3, %v1716_v58, 0 }
 0x1b0   :  { %v24259_v6 = vpop.permute.xlu1 %8249 }
 0x1b1   :  { %v24261_v7 = vpop.permute.xlu0 %9884 }
 0x1b4   :  { %v24263_v9 = vpop.permute.xlu1 %9882 }
 0x1b5   :  { %v12052_v10 = vpop.permute.xlu0 %12051 }
 0x1b6   :  { %v12068_v12 = vand.u32 4294901760, %v12052_v10 }
 0x1b8   :  { %v12161_v17 = vsub.f32 %v12052_v10, %v12068_v12  ;;  %v12050_v11 = vpop.permute.xlu1 %12049  ;;  %v4544_v10 = vand.u32 4294901760, %v4543_v18 }
 0x1b9   :  { %v12065_v23 = vand.u32 4294901760, %v12050_v11 }
 0x1ba   :  { %v12162_v27 = vand.u32 4294901760, %v12161_v17 }
 0x1bb   :  { %v24273_v22 = vpack.c.bf16 %v12068_v12, %v12065_v23  ;;  %v12154_v33 = vsub.f32 %v12050_v11, %v12065_v23  ;;  %v24301_v12 = vpack.c.bf16 %v4544_v10, %v4537_v62  ;;  %v24336_v10 = vand.u32 4294901760, %v3922_v25 }
 0x1bc   :  { %v12163_v37 = vsub.f32 %v12161_v17, %v12162_v27 }
 0x1bd   :  { %v12155_v38 = vand.u32 4294901760, %v12154_v33  ;;  %v24277_v47 = vpack.c.bf16 %v12161_v17, %v12154_v33 }
 0x1be   :  { %v12164_v46 = vand.u32 4294901760, %v12163_v37 }
 0x1bf   :  { %v12156_v34 = vsub.f32 %v12154_v33, %v12155_v38  ;;  %v24281_v50 = vpack.c.bf16 %v12162_v27, %v12155_v38 }
 0x1c1   :  { %v12157_v29 = vand.u32 4294901760, %v12156_v34 }
 0x1c3   :  { %v24279_v49 = vpack.c.bf16 %v12164_v46, %v12157_v29  ;;  %v2310_v29 = vld [vmem:[%s26684_s11 + $0x50] sm:$0xff]  ;;  %v2311_v46 = vld [vmem:[%s26684_s11 + $0x58] sm:$0xff] }
 0x1c4   :  { %v3925_v14 = vand.u32 4294901760, %v2310_v29 }
 0x1c6   :  { %v24323_v56 = vsub.f32 %v2310_v29, %v3925_v14 }
 0x1c8   :  { %v4014_v61 = vand.u32 4294901760, %v24323_v56 }
 0x22f   :  { %v20024_v17 = vpop.f32.mrb[10].mxu0 }
 0x230   :  { %v2848_v11 = vmax.f32 %v20024_v17, 0.0  ;;  %v2837_v20 = vpop.f32.mrb[11].mxu0 }
 0x231   :  { %v2847_v21 = vmax.f32 %v2837_v20, 0.0 }
 0x232   :  { %v3414_v23 = vsel %vm2852_vm3, %v2848_v11, 0  ;;  %v4015_v11 = vsub.f32 %v24323_v56, %v4014_v61 }
 0x233   :  { %v3493_v27 = vand.u32 4294901760, %v3414_v23  ;;  %v3411_v32 = vsel %vm2852_vm3, %v2847_v21, 0  ;;  %v24345_v21 = vsub.f32 %v3922_v25, %v24336_v10 }
 0x234   :  { %v3483_v33 = vand.u32 4294901760, %v3411_v32 }
 0x235   :  { %v3494_v35 = vsub.f32 %v3414_v23, %v3493_v27  ;;  %v4016_v23 = vand.u32 4294901760, %v4015_v11 }
 0x236   :  { %v3484_v36 = vsub.f32 %v3411_v32, %v3483_v33 }
 0x237   :  { %v3495_v37 = vand.u32 4294901760, %v3494_v35 }
 0x238   :  { %v3485_v38 = vand.u32 4294901760, %v3484_v36 }
 0x239   :  { %v3496_v26 = vsub.f32 %v3494_v35, %v3495_v37 }
 0x23a   :  { %v3486_v40 = vsub.f32 %v3484_v36, %v3485_v38 }
 0x23b   :  { %v3497_v41 = vand.u32 4294901760, %v3496_v26 }
 0x23c   :  { %v3487_v34 = vand.u32 4294901760, %v3486_v40 }
 0x23e   :  { %20107 = vmatprep.mubr.f32.mxu1 %v3487_v34 }
 0x23f   :  { %20108 = vmatmul.mubr.f32.vlgmr.msra.gmra.mrb[12].mxu1 %v3497_v41 }
 0x240   :  { %20114 = vmatprep.mubr.f32.mxu1 %v3483_v33  ;;  %22090 = vmatpush3.bf16.msra.mxu1 %v22087_v45  ;;  %v1715_v45 = vmax.f32 %v22696_v43, 0.0 }
 0x241   :  { %22092 = vmatprep.subr.bf16.mxu1 %v22091_v52 }
 0x242   :  { %v3919_v28 = vsel %vm2852_vm3, %v1715_v45, 0 }
 0x243   :  { %v24327_v59 = vand.u32 4294901760, %v3919_v28 }
 0x245   :  { %v24334_v62 = vsub.f32 %v3919_v28, %v24327_v59 }
 0x247   :  { %20115 = vmatmul.mubr.f32.vlgmr.msra.gmra.mrb[12].mxu1 %v3493_v27 }
 0x248   :  { %20121 = vmatprep.mubr.f32.mxu1 %v3484_v36  ;;  %22094 = vmatpush3.bf16.msra.mxu1 %v22091_v52  ;;  %v3928_v52 = vand.u32 4294901760, %v2311_v46  ;;  %v4003_v36 = vand.u32 4294901760, %v24345_v21 }
 0x249   :  { %22096 = vmatprep.subr.bf16.mxu1 %v24271_v30 }
 0x24a   :  { %v24325_v55 = vsub.f32 %v2311_v46, %v3928_v52  ;;  %v24338_v17 = vpack.c.bf16 %v3928_v52, %v3925_v14 }
 0x24c   :  { %v4021_v18 = vand.u32 4294901760, %v24325_v55  ;;  %v22115_v26 = vpack.c.bf16 %v24325_v55, %v24323_v56 }
 0x24e   :  { %v4022_v20 = vsub.f32 %v24325_v55, %v4021_v18 }
 0x24f   :  { %20122 = vmatmul.mubr.f32.vlgmr.msra.gmra.mrb[12].mxu1 %v3494_v35 }
 0x250   :  { %20128 = vmatprep.mubr.f32.mxu1 %v3485_v38  ;;  %22098 = vmatpush3.bf16.msra.mxu1 %v24271_v30  ;;  %v4023_v32 = vand.u32 4294901760, %v4022_v20 }
 0x251   :  { %22100 = vmatprep.subr.bf16.mxu1 %v22099_v53 }
 0x257   :  { %20129 = vmatmul.mubr.f32.vlgmr.msra.gmra.mrb[12].mxu1 %v3495_v37  ;;  %v22111_v37 = vpack.c.bf16 %v4023_v32, %v4016_v23 }
 0x258   :  { %20135 = vmatprep.mubr.f32.mxu1 %v3483_v33  ;;  %22102 = vmatpush3.bf16.msra.mxu1 %v22099_v53  ;;  %v3993_v53 = vand.u32 4294901760, %v24334_v62 }
 0x259   :  { %22104 = vmatprep.subr.bf16.mxu1 %v24271_v30 }
 0x25a   :  { %v3994_v35 = vsub.f32 %v24334_v62, %v3993_v53 }
 0x25c   :  { %v3995_v38 = vand.u32 4294901760, %v3994_v35 }
 0x25f   :  { %20136 = vmatmul.mubr.f32.vlgmr.msra.gmra.mrb[12].mxu1 %v3493_v27 }
 0x260   :  { %20142 = vmatprep.mubr.f32.mxu1 %v3483_v33  ;;  %22106 = vmatpush3.bf16.msra.mxu1 %v24271_v30  ;;  %v4004_v30 = vsub.f32 %v24345_v21, %v4003_v36 }
 0x261   :  { %22108 = vmatprep.subr.bf16.mxu1 %v24338_v17 }
 0x262   :  { %v4005_v33 = vand.u32 4294901760, %v4004_v30 }
 0x267   :  { %20143 = vmatmul.mubr.f32.vlgmr.msra.gmra.mrb[12].mxu1 %v3493_v27 }
 0x268   :  { %20149 = vmatprep.mubr.f32.mxu1 %v3995_v38  ;;  %22110 = vmatpush3.bf16.msra.mxu1 %v24338_v17  ;;  %v18473_v38 = vld [vmem:[%s26675_s2 + $0x10] sm:$0xff] }
 0x269   :  { %22112 = vmatprep.subr.bf16.mxu1 %v22111_v37 }
 0x26f   :  { %v3391_v40 = vpop.f32.mrb[12].mxu0  ;;  %20150 = vmatmul.mubr.f32.vlgmr.msra.gmra.mrb[12].mxu1 %v4005_v33 }
 0x270   :  { %v3407_v34 = vmax.f32 %v3391_v40, 0.0  ;;  %20156 = vmatprep.mubr.f32.mxu1 %v24327_v59  ;;  %v20096_v41 = vpop.f32.mrb[13].mxu0  ;;  %22114 = vmatpush3.bf16.msra.mxu1 %v22111_v37  ;;  %v22123_v37 = vpack.c.bf16 %v4021_v18, %v4014_v61 }
 0x271   :  { %22116 = vmatprep.subr.bf16.mxu1 %v22115_v26 }
 0x272   :  { %v4427_v27 = vsel %vm2852_vm3, %v3407_v34, 0  ;;  %v5559_v34 = vand.u32 4294901760, %v24232_v0 }
 0x273   :  { %v24358_v42 = vand.u32 4294901760, %v4427_v27  ;;  %v3397_v43 = vpop.f32.mrb[14].mxu0 }
 0x274   :  { %v3408_v29 = vmax.f32 %v3397_v43, 0.0  ;;  %v20099_v46 = vpop.f32.mrb[15].mxu0 }
 0x275   :  { %v24361_v45 = vsub.f32 %v4427_v27, %v24358_v42  ;;  %v5556_v27 = vand.u32 4294901760, %v24227_v51  ;;  %v24436_v46 = vand.u32 4294901760, %v24237_v31 }
 0x276   :  { %v4430_v14 = vsel %vm2852_vm3, %v3408_v29, 0 }
 0x277   :  { %v4504_v52 = vand.u32 4294901760, %v24361_v45  ;;  %v24365_v54 = vand.u32 4294901760, %v4430_v14  ;;  %v3403_v28 = vpop.f32.mrb[16].mxu0  ;;  %20157 = vmatmul.mubr.f32.vlgmr.msra.gmra.mrb[12].mxu1 %v24336_v10  ;;  %v24433_v29 = vsub.f32 %v24227_v51, %v5556_v27 }
 0x278   :  { %v3409_v56 = vmax.f32 %v3403_v28, 0.0  ;;  %20163 = vmatprep.mubr.f32.mxu1 %v24334_v62  ;;  %22118 = vmatpush3.bf16.msra.mxu1 %v22115_v26  ;;  %v20102_v55 = vpop.f32.mrb[17].mxu0  ;;  %v18474_v26 = vld [vmem:[%s26675_s2 + $0x18] sm:$0xff] }
 0x279   :  { %v4505_v58 = vsub.f32 %v24361_v45, %v4504_v52  ;;  %v24373_v25 = vsub.f32 %v4430_v14, %v24365_v54  ;;  %22120 = vmatprep.subr.bf16.mxu1 %v24338_v17  ;;  %v5646_v57 = vand.u32 4294901760, %v24433_v29 }
 0x27a   :  { %v4433_v11 = vsel %vm2852_vm3, %v3409_v56, 0 }
 0x27b   :  { %v4506_v20 = vand.u32 4294901760, %v4505_v58  ;;  %v24377_v23 = vand.u32 4294901760, %v4433_v11  ;;  %v4514_v32 = vand.u32 4294901760, %v24373_v25  ;;  %v5647_v56 = vsub.f32 %v24433_v29, %v5646_v57 }
 0x27d   :  { %v24381_v62 = vsub.f32 %v4433_v11, %v24377_v23  ;;  %20192 = vmatmul.mubr.f32.vlgmr.msra.gmra.mrb[18].mxu0 %v4506_v20  ;;  %v4515_v35 = vsub.f32 %v24373_v25, %v4514_v32  ;;  %v5648_v20 = vand.u32 4294901760, %v5647_v56 }
 0x27e   :  { %20194 = vmatprep.mubr.msk.f32.mxu0 %vm23495_vm0, %v23496_v8  ;;  %22136 = vmatpush3.bf16.msra.mxu0 %v24301_v12  ;;  %v5550_v12 = vsel %vm1193_vm2, %v18473_v38, 0 }
 0x27f   :  { %20164 = vmatmul.mubr.f32.vlgmr.msra.gmra.mrb[12].mxu1 %v24345_v21  ;;  %v4516_v30 = vand.u32 4294901760, %v4515_v35  ;;  %v4524_v33 = vand.u32 4294901760, %v24381_v62  ;;  %22137 = vmatprep.subr.bf16.mxu0 %v23494_v3  ;;  %v24405_v40 = vand.u32 4294901760, %v5550_v12  ;;  %v24428_v21 = vsub.f32 %v24232_v0, %v5559_v34 }
 0x280   :  { %20170 = vmatprep.mubr.f32.mxu1 %v3993_v53  ;;  %22122 = vmatpush3.bf16.msra.mxu1 %v24338_v17  ;;  %v5553_v53 = vsel %vm1193_vm2, %v18474_v26, 0  ;;  %v24444_v0 = vpack.c.bf16 %v5559_v34, %v5556_v27  ;;  %v6094_v26 = vand.u32 4294901760, %v24244_v1 }
 0x281   :  { %20195 = vmatmul.mubr.f32.gmra.mrb[20].mxu0 %v4516_v30  ;;  %v4525_v61 = vsub.f32 %v24381_v62, %v4524_v33  ;;  %22124 = vmatprep.subr.bf16.mxu1 %v22123_v37  ;;  %v24415_v41 = vsub.f32 %v5550_v12, %v24405_v40  ;;  %v24420_v43 = vand.u32 4294901760, %v5553_v53  ;;  %v5653_v39 = vand.u32 4294901760, %v24428_v21 }
 0x282   :  { %20197 = vmatprep.mubr.msk.f32.mxu0 %vm23495_vm0, %v23496_v8  ;;  %v22175_v38 = vpack.c.bf16 %v24428_v21, %v24433_v29 }
 0x283   :  { %v4526_v18 = vand.u32 4294901760, %v4525_v61  ;;  %v24440_v14 = vsub.f32 %v5553_v53, %v24420_v43  ;;  %v6097_v61 = vand.u32 4294901760, %v24240_v15 }
 0x285   :  { %20198 = vmatmul.mubr.f32.gmra.mrb[22].mxu0 %v4526_v18  ;;  %v5635_v28 = vand.u32 4294901760, %v24440_v14  ;;  %v18476_v18 = vld [vmem:[%s26676_s3 + $0x20] sm:$0xff] }
 0x286   :  { %20204 = vmatprep.mubr.msk.f32.mxu0 %vm23495_vm0, %v23496_v8  ;;  %v6088_v27 = vsel %vm2852_vm3, %v18476_v18, 0 }
 0x287   :  { %20171 = vmatmul.mubr.f32.vlgmr.msra.gmra.mrb[12].mxu1 %v4003_v36  ;;  %v5625_v36 = vand.u32 4294901760, %v24415_v41 }
 0x288   :  { %20177 = vmatprep.mubr.f32.mxu1 %v24327_v59  ;;  %22126 = vmatpush3.bf16.msra.mxu1 %v22123_v37 }
 0x289   :  { %20205 = vmatmul.mubr.f32.vlgmr.msra.gmra.mrb[18].mxu0 %v24358_v42  ;;  %22128 = vmatprep.subr.bf16.mxu1 %v24338_v17  ;;  %v5626_v51 = vsub.f32 %v24415_v41, %v5625_v36 }
 0x28a   :  { %20207 = vmatprep.mubr.msk.f32.mxu0 %vm23495_vm0, %v23496_v8  ;;  %22139 = vmatpush3.bf16.msra.mxu0 %v22138_v13  ;;  %v5659_v13 = vsub.f32 %v24237_v31, %v24436_v46  ;;  %v5636_v31 = vsub.f32 %v24440_v14, %v5635_v28 }
 0x28b   :  { %22140 = vmatprep.subr.bf16.mxu0 %v23494_v3 }
 0x28c   :  { %v24471_v55 = vand.u32 4294901760, %v5659_v13  ;;  %v5637_v11 = vand.u32 4294901760, %v5636_v31 }
 0x28d   :  { %20208 = vmatmul.mubr.f32.gmra.mrb[20].mxu0 %v24365_v54 }
 0x28e   :  { %20210 = vmatprep.mubr.msk.f32.mxu0 %vm23495_vm0, %v23496_v8  ;;  %v5661_v35 = vsub.f32 %v5659_v13, %v24471_v55 }
 0x28f   :  { %20178 = vmatmul.mubr.f32.vlgmr.msra.gmra.mrb[12].mxu1 %v24336_v10 }
 0x290   :  { %22130 = vmatpush3.bf16.msra.mxu1 %v24338_v17  ;;  %20184 = vmatprep.mubr.f32.mxu1 %v24327_v59  ;;  %v5654_v59 = vsub.f32 %v24428_v21, %v5653_v39  ;;  %v5627_v17 = vand.u32 4294901760, %v5626_v51  ;;  %v24561_v21 = vsub.f32 %v24240_v15, %v6097_v61  ;;  %v24578_v51 = vsub.f32 %v24244_v1, %v6094_v26 }
 0x291   :  { %22168 = vmatprep.subr.bf16.mxu1 %v24444_v0  ;;  %20211 = vmatmul.mubr.f32.gmra.mrb[22].mxu0 %v24377_v23 }
 0x292   :  { %20217 = vmatprep.mubr.msk.f32.mxu0 %vm23495_vm0, %v23496_v8  ;;  %v5655_v58 = vand.u32 4294901760, %v5654_v59 }
 0x294   :  { %v22171_v37 = vpack.c.bf16 %v5655_v58, %v5648_v20  ;;  %v6200_v20 = vand.u32 4294901760, %v24561_v21 }
 0x295   :  { %20218 = vmatmul.mubr.f32.vlgmr.msra.gmra.mrb[18].mxu0 %v24361_v45  ;;  %v2322_v45 = vld [vmem:[%s26685_s12 + $0x50] sm:$0xff] }
 0x296   :  { %20220 = vmatprep.mubr.msk.f32.mxu0 %vm23495_vm0, %v23496_v8  ;;  %22142 = vmatpush3.bf16.msra.mxu0 %v24289_v44  ;;  %v4990_v30 = vand.u32 4294901760, %v2322_v45 }
 0x297   :  { %20185 = vmatmul.mubr.f32.vlgmr.msra.gmra.mrb[12].mxu1 %v24336_v10  ;;  %22143 = vmatprep.subr.bf16.mxu0 %v23494_v3  ;;  %v5662_v10 = vand.u32 4294901760, %v5661_v35 }
 0x298   :  { %22170 = vmatpush3.bf16.msra.mxu1 %v24444_v0  ;;  %20349 = vmatprep.mubr.f32.mxu1 %v5627_v17  ;;  %v24548_v34 = vsub.f32 %v2322_v45, %v4990_v30  ;;  %v24588_v17 = vand.u32 4294901760, %v6088_v27 }
 0x299   :  { %20347 = vmatprep.subr.mxu1 %v24436_v46  ;;  %20221 = vmatmul.mubr.f32.gmra.mrb[20].mxu0 %v24373_v25 }
 0x29a   :  { %20223 = vmatprep.mubr.msk.f32.mxu0 %vm23495_vm0, %v23496_v8 }
 0x29c   :  { %20348 = vmatpush3.msra.mxu1 %v24436_v46 }
 0x29d   :  { %20350 = vmatmul.mubr.f32.vlgmr.msra.gmra.mrb[14].mxu1 %v5637_v11  ;;  %22172 = vmatprep.subr.bf16.mxu1 %v22171_v37 }
 0x29e   :  { %20224 = vmatmul.mubr.f32.gmra.mrb[22].mxu0 %v24381_v62  ;;  %22174 = vmatpush3.bf16.msra.mxu1 %v22171_v37  ;;  %v22183_v62 = vpack.c.bf16 %v5653_v39, %v5646_v57  ;;  %v18477_v39 = vld [vmem:[%s26676_s3 + $0x28] sm:$0xff] }
 0x29f   :  { %20356 = vmatprep.subr.mxu1 %v5662_v10  ;;  %20230 = vmatprep.mubr.msk.f32.mxu0 %vm23495_vm0, %v23496_v8  ;;  %v6091_v56 = vsel %vm2852_vm3, %v18477_v39, 0 }
 0x2a0   :  { %20358 = vmatprep.mubr.f32.mxu1 %v24405_v40 }
 0x2a2   :  { %20231 = vmatmul.mubr.f32.vlgmr.msra.gmra.mrb[18].mxu0 %v4504_v52  ;;  %20357 = vmatpush3.msra.mxu1 %v5662_v10  ;;  %v2323_v52 = vld [vmem:[%s26685_s12 + $0x58] sm:$0xff]  ;;  %v24614_v10 = vsub.f32 %v6088_v27, %v24588_v17 }
 0x2a3   :  { %22176 = vmatprep.subr.bf16.mxu1 %v22175_v38  ;;  %20233 = vmatprep.mubr.msk.f32.mxu0 %vm23495_vm0, %v23496_v8 }
 0x2a4   :  { %22145 = vmatpush3.bf16.msra.mxu0 %v24305_v16  ;;  %v2297_v16 = vmax.f32 %v24198_v48, 0.0  ;;  %v18475_v48 = vld [vmem:[%s26676_s3 + $0x18] sm:$0xff] }
 0x2a5   :  { %20359 = vmatmul.mubr.f32.vlgmr.msra.gmra.mrb[14].mxu1 %v24420_v43  ;;  %22146 = vmatprep.subr.bf16.mxu0 %v23494_v3 }
 0x2a6   :  { %22178 = vmatpush3.bf16.msra.mxu1 %v22175_v38  ;;  %20234 = vmatmul.mubr.f32.gmra.mrb[20].mxu0 %v4514_v32  ;;  %v4981_v25 = vsel %vm2852_vm3, %v2297_v16, 0  ;;  %v2298_v32 = vmax.f32 %v24203_v60, 0.0  ;;  %v6085_v60 = vsel %vm2852_vm3, %v18475_v48, 0  ;;  %v24617_v38 = vand.u32 4294901760, %v6091_v56 }
 0x2a7   :  { %20365 = vmatprep.subr.mxu1 %v5659_v13  ;;  %20236 = vmatprep.mubr.msk.f32.mxu0 %vm23495_vm0, %v23496_v8  ;;  %v24538_v12 = vand.u32 4294901760, %v4981_v25 }
 0x2a8   :  { %20367 = vmatprep.mubr.f32.mxu1 %v24415_v41  ;;  %v4984_v53 = vsel %vm2852_vm3, %v2298_v32, 0 }
 0x2a9   :  { %v24566_v29 = vand.u32 4294901760, %v4984_v53 }
 0x2aa   :  { %20366 = vmatpush3.msra.mxu1 %v5659_v13  ;;  %20237 = vmatmul.mubr.f32.gmra.mrb[22].mxu0 %v4524_v33  ;;  %v4993_v33 = vand.u32 4294901760, %v2323_v52  ;;  %v5089_v13 = vand.u32 4294901760, %v24548_v34 }
 0x2ab   :  { %22180 = vmatprep.subr.bf16.mxu1 %v24444_v0  ;;  %20243 = vmatprep.mubr.msk.f32.mxu0 %vm23495_vm0, %v23496_v8  ;;  %v24595_v58 = vsub.f32 %v4984_v53, %v24566_v29 }
 0x2ac   :  { %v24550_v41 = vsub.f32 %v2323_v52, %v4993_v33  ;;  %v24581_v57 = vpack.c.bf16 %v4993_v33, %v4990_v30  ;;  %v24643_v30 = vsub.f32 %v6091_v56, %v24617_v38 }
 0x2ad   :  { %20368 = vmatmul.mubr.f32.vlgmr.msra.gmra.mrb[14].mxu1 %v24440_v14  ;;  %v5068_v52 = vand.u32 4294901760, %v24595_v58 }
 0x2ae   :  { %22182 = vmatpush3.bf16.msra.mxu1 %v24444_v0  ;;  %20244 = vmatmul.mubr.f32.vlgmr.msra.gmra.mrb[18].mxu0 %v24358_v42 }
 0x2af   :  { %20374 = vmatprep.subr.mxu1 %v24436_v46  ;;  %20246 = vmatprep.mubr.msk.f32.mxu0 %vm23495_vm0, %v23496_v8 }
 0x2b0   :  { %20376 = vmatprep.mubr.f32.mxu1 %v5625_v36  ;;  %22148 = vmatpush3.bf16.msra.mxu0 %v24289_v44  ;;  %v2299_v44 = vmax.f32 %v24207_v63, 0.0  ;;  %v24554_v63 = vand.u32 4294901760, %v6085_v60  ;;  %v24564_v36 = vsub.f32 %v4981_v25, %v24538_v12 }
 0x2b1   :  { %22149 = vmatprep.subr.bf16.mxu0 %v23494_v3 }
 0x2b2   :  { %20375 = vmatpush3.msra.mxu1 %v24436_v46  ;;  %20247 = vmatmul.mubr.f32.gmra.mrb[20].mxu0 %v24365_v54  ;;  %v4987_v14 = vsel %vm2852_vm3, %v2299_v44, 0  ;;  %v24586_v59 = vsub.f32 %v6085_v60, %v24554_v63  ;;  %v5058_v31 = vand.u32 4294901760, %v24564_v36 }
 0x2b3   :  { %22184 = vmatprep.subr.bf16.mxu1 %v22183_v62  ;;  %20249 = vmatprep.mubr.msk.f32.mxu0 %vm23495_vm0, %v23496_v8  ;;  %v24597_v11 = vand.u32 4294901760, %v4987_v14 }
 0x2b4   :  { %v6162_v37 = vand.u32 4294901760, %v24586_v59  ;;  %v5059_v16 = vsub.f32 %v24564_v36, %v5058_v31 }
 0x2b5   :  { %20377 = vmatmul.mubr.f32.vlgmr.msra.gmra.mrb[14].mxu1 %v5635_v28  ;;  %v5096_v28 = vand.u32 4294901760, %v24550_v41  ;;  %v24625_v45 = vsub.f32 %v4987_v14, %v24597_v11  ;;  %v6182_v14 = vand.u32 4294901760, %v24643_v30 }
 0x2b6   :  { %22186 = vmatpush3.bf16.msra.mxu1 %v22183_v62  ;;  %20250 = vmatmul.mubr.f32.gmra.mrb[22].mxu0 %v24377_v23  ;;  %v6163_v32 = vsub.f32 %v24586_v59, %v6162_v37  ;;  %v6172_v62 = vand.u32 4294901760, %v24614_v10  ;;  %v5060_v33 = vand.u32 4294901760, %v5059_v16 }
 0x2b7   :  { %20383 = vmatprep.subr.mxu1 %v24471_v55  ;;  %20256 = vmatprep.mubr.msk.f32.mxu0 %vm23495_vm0, %v23496_v8  ;;  %v5097_v35 = vsub.f32 %v24550_v41, %v5096_v28  ;;  %v5078_v60 = vand.u32 4294901760, %v24625_v45  ;;  %v22162_v16 = vpack.c.bf16 %v5096_v28, %v5089_v13 }
 0x2b8   :  { %20385 = vmatprep.mubr.f32.mxu1 %v24405_v40  ;;  %v6164_v53 = vand.u32 4294901760, %v6163_v32  ;;  %v6173_v27 = vsub.f32 %v24614_v10, %v6172_v62 }
 0x2b9   :  { %v5098_v25 = vand.u32 4294901760, %v5097_v35  ;;  %v22198_v35 = vpack.c.bf16 %v24561_v21, %v24578_v51 }
 0x2ba   :  { %20384 = vmatpush3.msra.mxu1 %v24471_v55  ;;  %20257 = vmatmul.mubr.f32.vlgmr.msra.gmra.mrb[18].mxu0 %v24358_v42  ;;  %v6193_v55 = vand.u32 4294901760, %v24578_v51  ;;  %v5090_v42 = vsub.f32 %v24548_v34, %v5089_v13 }
 0x2bb   :  { %22188 = vmatprep.subr.bf16.mxu1 %v24444_v0  ;;  %20259 = vmatprep.mubr.msk.f32.mxu0 %vm23495_vm0, %v23496_v8 }
 0x2bc   :  { %22151 = vmatpush3.bf16.msra.mxu0 %v24581_v57  ;;  %v5091_v48 = vand.u32 4294901760, %v5090_v42  ;;  %v22156_v42 = vpack.c.bf16 %v24550_v41, %v24548_v34  ;;  %v22204_v34 = vpack.c.bf16 %v6200_v20, %v6193_v55  ;;  %v2303_v41 = vld [vmem:[%s26684_s11 + $0x18] sm:$0xff] }
 0x2bd   :  { %20386 = vmatmul.mubr.f32.vlgmr.msra.gmra.mrb[14].mxu1 %v24420_v43  ;;  %22152 = vmatprep.subr.bf16.mxu0 %v23494_v3 }
 0x2be   :  { %22190 = vmatpush3.bf16.msra.mxu1 %v24444_v0  ;;  %20260 = vmatmul.mubr.f32.gmra.mrb[20].mxu0 %v24365_v54  ;;  %v6201_v0 = vsub.f32 %v24561_v21, %v6200_v20  ;;  %v6194_v54 = vsub.f32 %v24578_v51, %v6193_v55  ;;  %v22153_v18 = vpack.c.bf16 %v5098_v25, %v5091_v48  ;;  %v6651_v21 = vand.u32 4294901760, %v2303_v41  ;;  %v2314_v55 = vld [vmem:[%s26685_s12 + $0x10] sm:$0xff] }
 0x2bf   :  { %20392 = vmatprep.subr.mxu1 %v24436_v46  ;;  %20262 = vmatprep.mubr.msk.f32.mxu0 %vm23495_vm0, %v23496_v8 }
 0x2c0   :  { %20394 = vmatprep.mubr.f32.mxu1 %v24405_v40  ;;  %v5069_v40 = vsub.f32 %v24595_v58, %v5068_v52  ;;  %v6202_v44 = vand.u32 4294901760, %v6201_v0  ;;  %v6743_v51 = vsub.f32 %v2303_v41, %v6651_v21 }
 0x2c2   :  { %20393 = vmatpush3.msra.mxu1 %v24436_v46  ;;  %20263 = vmatmul.mubr.f32.gmra.mrb[22].mxu0 %v24377_v23  ;;  %v24658_v46 = vpack.c.bf16 %v6097_v61, %v6094_v26  ;;  %v6195_v23 = vand.u32 4294901760, %v6194_v54  ;;  %v5070_v1 = vand.u32 4294901760, %v5069_v40  ;;  %v6174_v61 = vand.u32 4294901760, %v6173_v27 }
 0x2c3   :  { %22191 = vmatprep.subr.bf16.mxu1 %v23494_v3  ;;  %20269 = vmatprep.mubr.msk.f32.mxu0 %vm23495_vm0, %v23496_v8  ;;  %v6183_v26 = vsub.f32 %v24643_v30, %v6182_v14  ;;  %v6744_v13 = vand.u32 4294901760, %v6743_v51 }
 0x2c4   :  { %v22195_v15 = vpack.c.bf16 %v6202_v44, %v6195_v23 }
 0x2c5   :  { %20395 = vmatmul.mubr.f32.vlgmr.msra.gmra.mrb[14].mxu1 %v24420_v43  ;;  %v5079_v43 = vsub.f32 %v24625_v45, %v5078_v60  ;;  %v6184_v56 = vand.u32 4294901760, %v6183_v26 }
 0x2c6   :  { %22193 = vmatpush3.bf16.msra.mxu1 %v24658_v46  ;;  %20270 = vmatmul.mubr.f32.vlgmr.msra.gmra.mrb[18].mxu0 %v5060_v33 }
 0x2c7   :  { %20401 = vmatprep.mubr.msk.f32.mxu1 %vm23495_vm0, %v23496_v8  ;;  %22194 = vmatprep.subr.bf16.mxu1 %v23494_v3  ;;  %v5080_v39 = vand.u32 4294901760, %v5079_v43 }
 0x2c8   :  { %20272 = vmatprep.mubr.msk.f32.mxu0 %vm23495_vm0, %v23496_v8  ;;  %22154 = vmatpush3.bf16.msra.mxu0 %v22153_v18 }
 0x2c9   :  { %20402 = vmatmul.mubr.f32.vlgmr.msra.gmra.mrb[16].mxu1 %v6164_v53  ;;  %22155 = vmatprep.subr.bf16.mxu0 %v23494_v3 }
 0x2ca   :  { %22196 = vmatpush3.bf16.msra.mxu1 %v22195_v15  ;;  %20273 = vmatmul.mubr.f32.gmra.mrb[20].mxu0 %v5070_v1 }
 0x2cb   :  { %20404 = vmatprep.mubr.msk.f32.mxu1 %vm23495_vm0, %v23496_v8  ;;  %20275 = vmatprep.mubr.msk.f32.mxu0 %vm23495_vm0, %v23496_v8 }
 0x2cc   :  { %22197 = vmatprep.subr.bf16.mxu1 %v23494_v3 }
 0x2cd   :  { %20405 = vmatmul.mubr.f32.gmra.mrb[18].mxu1 %v6174_v61 }
 0x2ce   :  { %20276 = vmatmul.mubr.f32.gmra.mrb[22].mxu0 %v5080_v39  ;;  %20407 = vmatprep.mubr.msk.f32.mxu1 %vm23495_vm0, %v23496_v8 }
 0x2cf   :  { %20282 = vmatprep.mubr.msk.f32.mxu0 %vm23495_vm0, %v23496_v8 }
 0x2d1   :  { %20408 = vmatmul.mubr.f32.gmra.mrb[20].mxu1 %v6184_v56 }
 0x2d2   :  { %20283 = vmatmul.mubr.f32.vlgmr.msra.gmra.mrb[18].mxu0 %v24538_v12  ;;  %20414 = vmatprep.mubr.msk.f32.mxu1 %vm23495_vm0, %v23496_v8 }
 0x2d3   :  { %20285 = vmatprep.mubr.msk.f32.mxu0 %vm23495_vm0, %v23496_v8  ;;  %22157 = vmatpush3.bf16.msra.mxu0 %v22156_v42 }
 0x2d4   :  { %22158 = vmatprep.subr.bf16.mxu0 %v23494_v3 }
 0x2d5   :  { %20415 = vmatmul.mubr.f32.vlgmr.msra.gmra.mrb[16].mxu1 %v24554_v63 }
 0x2d6   :  { %22199 = vmatpush3.bf16.msra.mxu1 %v22198_v35  ;;  %20286 = vmatmul.mubr.f32.gmra.mrb[20].mxu0 %v24566_v29 }
 0x2d7   :  { %20417 = vmatprep.mubr.msk.f32.mxu1 %vm23495_vm0, %v23496_v8  ;;  %20288 = vmatprep.mubr.msk.f32.mxu0 %vm23495_vm0, %v23496_v8 }
 0x2d8   :  { %22200 = vmatprep.subr.bf16.mxu1 %v23494_v3 }
 0x2d9   :  { %20418 = vmatmul.mubr.f32.gmra.mrb[18].mxu1 %v24588_v17 }
 0x2da   :  { %20289 = vmatmul.mubr.f32.gmra.mrb[22].mxu0 %v24597_v11  ;;  %20420 = vmatprep.mubr.msk.f32.mxu1 %vm23495_vm0, %v23496_v8 }
 0x2db   :  { %20295 = vmatprep.mubr.msk.f32.mxu0 %vm23495_vm0, %v23496_v8 }
 0x2dd   :  { %20421 = vmatmul.mubr.f32.gmra.mrb[20].mxu1 %v24617_v38 }
 0x2de   :  { %20296 = vmatmul.mubr.f32.vlgmr.msra.gmra.mrb[18].mxu0 %v24564_v36  ;;  %20427 = vmatprep.mubr.msk.f32.mxu1 %vm23495_vm0, %v23496_v8 }
 0x2df   :  { %20298 = vmatprep.mubr.msk.f32.mxu0 %vm23495_vm0, %v23496_v8  ;;  %22160 = vmatpush3.bf16.msra.mxu0 %v24581_v57 }
 0x2e0   :  { %22161 = vmatprep.subr.bf16.mxu0 %v23494_v3 }
 0x2e1   :  { %20428 = vmatmul.mubr.f32.vlgmr.msra.gmra.mrb[16].mxu1 %v24586_v59  ;;  %v6745_v59 = vsub.f32 %v6743_v51, %v6744_v13 }
 0x2e2   :  { %22202 = vmatpush3.bf16.msra.mxu1 %v24658_v46  ;;  %20299 = vmatmul.mubr.f32.gmra.mrb[20].mxu0 %v24595_v58 }
 0x2e3   :  { %20430 = vmatprep.mubr.msk.f32.mxu1 %vm23495_vm0, %v23496_v8  ;;  %20301 = vmatprep.mubr.msk.f32.mxu0 %vm23495_vm0, %v23496_v8 }
 0x2e4   :  { %22203 = vmatprep.subr.bf16.mxu1 %v23494_v3 }
 0x2e5   :  { %20431 = vmatmul.mubr.f32.gmra.mrb[18].mxu1 %v24614_v10  ;;  %v7161_v10 = vand.u32 4294901760, %v2314_v55 }
 0x2e6   :  { %20302 = vmatmul.mubr.f32.gmra.mrb[22].mxu0 %v24625_v45  ;;  %20433 = vmatprep.mubr.msk.f32.mxu1 %vm23495_vm0, %v23496_v8 }
 0x2e7   :  { %20308 = vmatprep.mubr.msk.f32.mxu0 %vm23495_vm0, %v23496_v8 }
 0x2e9   :  { %20434 = vmatmul.mubr.f32.gmra.mrb[20].mxu1 %v24643_v30 }
 0x2ea   :  { %20309 = vmatmul.mubr.f32.vlgmr.msra.gmra.mrb[18].mxu0 %v5058_v31  ;;  %20440 = vmatprep.mubr.msk.f32.mxu1 %vm23495_vm0, %v23496_v8  ;;  %v6746_v31 = vand.u32 4294901760, %v6745_v59 }
 0x2eb   :  { %20311 = vmatprep.mubr.msk.f32.mxu0 %vm23495_vm0, %v23496_v8  ;;  %22163 = vmatpush3.bf16.msra.mxu0 %v22162_v16  ;;  %v18478_v16 = vld [vmem:[%s26675_s2 + $0x20] sm:$0xff] }
 0x2ec   :  { %22164 = vmatprep.subr.bf16.mxu0 %v23494_v3 }
 0x2ed   :  { %20441 = vmatmul.mubr.f32.vlgmr.msra.gmra.mrb[16].mxu1 %v6162_v37  ;;  %v2315_v37 = vld [vmem:[%s26685_s12 + $0x18] sm:$0xff] }
 0x2ee   :  { %22205 = vmatpush3.bf16.msra.mxu1 %v22204_v34  ;;  %20312 = vmatmul.mubr.f32.gmra.mrb[20].mxu0 %v5068_v52  ;;  %v24826_v52 = vsub.f32 %v2314_v55, %v7161_v10  ;;  %v7721_v34 = vsel %vm1193_vm2, %v18478_v16, 0 }
 0x2ef   :  { %20443 = vmatprep.mubr.msk.f32.mxu1 %vm23495_vm0, %v23496_v8  ;;  %20314 = vmatprep.mubr.msk.f32.mxu0 %vm23495_vm0, %v23496_v8  ;;  %v24851_v41 = vand.u32 4294901760, %v7721_v34 }
 0x2f0   :  { %22206 = vmatprep.subr.bf16.mxu1 %v23494_v3  ;;  %v7260_v54 = vand.u32 4294901760, %v24826_v52 }
 0x2f1   :  { %20444 = vmatmul.mubr.f32.gmra.mrb[18].mxu1 %v6172_v62 }
 0x2f2   :  { %20315 = vmatmul.mubr.f32.gmra.mrb[22].mxu0 %v5078_v60  ;;  %20446 = vmatprep.mubr.msk.f32.mxu1 %vm23495_vm0, %v23496_v8  ;;  %v7261_v25 = vsub.f32 %v24826_v52, %v7260_v54 }
 0x2f3   :  { %20321 = vmatprep.mubr.msk.f32.mxu0 %vm23495_vm0, %v23496_v8 }
 0x2f4   :  { %v7262_v62 = vand.u32 4294901760, %v7261_v25 }
 0x2f5   :  { %20447 = vmatmul.mubr.f32.gmra.mrb[20].mxu1 %v6182_v14 }
 0x2f6   :  { %20322 = vmatmul.mubr.f32.vlgmr.msra.gmra.mrb[18].mxu0 %v24538_v12  ;;  %20453 = vmatprep.mubr.msk.f32.mxu1 %vm23495_vm0, %v23496_v8 }
 0x2f7   :  { %20324 = vmatprep.mubr.msk.f32.mxu0 %vm23495_vm0, %v23496_v8  ;;  %22166 = vmatpush3.bf16.msra.mxu0 %v24581_v57 }
 0x2f8   :  { %22233 = vmatprep.subr.bf16.mxu0 %v23494_v3 }
 0x2f9   :  { %20454 = vmatmul.mubr.f32.vlgmr.msra.gmra.mrb[16].mxu1 %v24554_v63 }
 0x2fa   :  { %22208 = vmatpush3.bf16.msra.mxu1 %v24658_v46  ;;  %20325 = vmatmul.mubr.f32.gmra.mrb[20].mxu0 %v24566_v29 }
 0x2fb   :  { %20327 = vmatprep.mubr.msk.f32.mxu0 %vm23495_vm0, %v23496_v8  ;;  %20456 = vmatprep.mubr.msk.f32.mxu1 %vm23495_vm0, %v23496_v8 }
 0x2fd   :  { %20457 = vmatmul.mubr.f32.gmra.mrb[18].mxu1 %v24588_v17 }
 0x2fe   :  { %20328 = vmatmul.mubr.f32.gmra.mrb[22].mxu0 %v24597_v11  ;;  %20459 = vmatprep.mubr.msk.f32.mxu1 %vm23495_vm0, %v23496_v8 }
 0x2ff   :  { %20334 = vmatprep.mubr.msk.f32.mxu0 %vm23495_vm0, %v23496_v8 }
 0x301   :  { %20460 = vmatmul.mubr.f32.gmra.mrb[20].mxu1 %v24617_v38 }
 0x302   :  { %20335 = vmatmul.mubr.f32.vlgmr.msra.gmra.mrb[18].mxu0 %v24538_v12  ;;  %20466 = vmatprep.mubr.msk.f32.mxu1 %vm23495_vm0, %v23496_v8  ;;  %v2302_v12 = vld [vmem:[%s26684_s11 + $0x10] sm:$0xff] }
 0x303   :  { %20337 = vmatprep.mubr.msk.f32.mxu0 %vm23495_vm0, %v23496_v8 }
 0x305   :  { %20467 = vmatmul.mubr.f32.vlgmr.msra.gmra.mrb[16].mxu1 %v24554_v63  ;;  %v6648_v63 = vand.u32 4294901760, %v2302_v12 }
 0x306   :  { %20338 = vmatmul.mubr.f32.gmra.mrb[20].mxu0 %v24566_v29  ;;  %20469 = vmatprep.mubr.msk.f32.mxu1 %vm23495_vm0, %v23496_v8 }
 0x307   :  { %20340 = vmatprep.mubr.msk.f32.mxu0 %vm23495_vm0, %v23496_v8  ;;  %v24812_v36 = vpack.c.bf16 %v6651_v21, %v6648_v63  ;;  %v6736_v29 = vsub.f32 %v2302_v12, %v6648_v63  ;;  %v18479_v12 = vld [vmem:[%s26675_s2 + $0x28] sm:$0xff]  ;;  %v7727_v21 = vand.u32 4294901760, %v24251_v2 }
 0x308   :  { %v7724_v63 = vsel %vm1193_vm2, %v18479_v12, 0 }
 0x309   :  { %20470 = vmatmul.mubr.f32.gmra.mrb[18].mxu1 %v24588_v17  ;;  %22210 = vmatprep.subr.bf16.mxu1 %v24812_v36  ;;  %v6737_v57 = vand.u32 4294901760, %v6736_v29 }
 0x30a   :  { %20341 = vmatmul.mubr.f32.gmra.mrb[22].mxu0 %v24597_v11  ;;  %20472 = vmatprep.mubr.msk.f32.mxu1 %vm23495_vm0, %v23496_v8  ;;  %v22217_v11 = vpack.c.bf16 %v6743_v51, %v6736_v29  ;;  %v7730_v51 = vand.u32 4294901760, %v24247_v19 }
 0x30b   :  { %20521 = vmatprep.mubr.msk.f32.mxu0 %vm23495_vm0, %v23496_v8  ;;  %22212 = vmatpush3.bf16.msra.mxu1 %v24812_v36  ;;  %v6738_v28 = vsub.f32 %v6736_v29, %v6737_v57  ;;  %v22225_v20 = vpack.c.bf16 %v6744_v13, %v6737_v57  ;;  %v24856_v29 = vsub.f32 %v7721_v34, %v24851_v41  ;;  %v24860_v57 = vand.u32 4294901760, %v7724_v63 }
 0x30c   :  { %v24863_v13 = vsub.f32 %v24251_v2, %v7727_v21  ;;  %v24867_v59 = vsub.f32 %v24247_v19, %v7730_v51 }
 0x30d   :  { %20473 = vmatmul.mubr.f32.gmra.mrb[20].mxu1 %v24617_v38  ;;  %v6739_v17 = vand.u32 4294901760, %v6738_v28  ;;  %v7164_v38 = vand.u32 4294901760, %v2315_v37  ;;  %v7796_v28 = vand.u32 4294901760, %v24856_v29 }
 0x30e   :  { %v7824_v19 = vand.u32 4294901760, %v24867_v59 }
 0x30f   :  { %v22213_v58 = vpack.c.bf16 %v6746_v31, %v6739_v17  ;;  %v24822_v45 = vpack.c.bf16 %v7164_v38, %v7161_v10  ;;  %v24828_v0 = vsub.f32 %v2315_v37, %v7164_v38  ;;  %v24870_v17 = vand.u32 4294901760, %v24255_v24 }
 0x310   :  { %v24873_v31 = vsub.f32 %v7724_v63, %v24860_v57  ;;  %v7797_v2 = vsub.f32 %v24856_v29, %v7796_v28 }
 0x311   :  { %22214 = vmatprep.subr.bf16.mxu1 %v22213_v58  ;;  %22235 = vmatpush3.bf16.msra.mxu0 %v24822_v45  ;;  %v7267_v48 = vand.u32 4294901760, %v24828_v0  ;;  %v22240_v40 = vpack.c.bf16 %v24828_v0, %v24826_v52 }
 0x312   :  { %22236 = vmatprep.subr.bf16.mxu0 %v23494_v3  ;;  %v7806_v55 = vand.u32 4294901760, %v24873_v31  ;;  %v7798_v10 = vand.u32 4294901760, %v7797_v2 }
 0x313   :  { %v7268_v32 = vsub.f32 %v24828_v0, %v7267_v48  ;;  %v24840_v35 = vpack.c.bf16 %v7267_v48, %v7260_v54 }
 0x314   :  { %v7807_v38 = vsub.f32 %v24873_v31, %v7806_v55 }
 0x315   :  { %v7269_v30 = vand.u32 4294901760, %v7268_v32 }
 0x316   :  { %v7808_v48 = vand.u32 4294901760, %v7807_v38 }
 0x317   :  { %v24834_v33 = vpack.c.bf16 %v7269_v30, %v7262_v62 }
 0x398   :  { %v20396_v60 = vpop.f32.mrb[14].mxu1 }
 0x399   :  { %v6071_v44 = vmax.f32 %v20396_v60, 0.0  ;;  %v6060_v46 = vpop.f32.mrb[15].mxu1 }
 0x39a   :  { %v6070_v23 = vmax.f32 %v6060_v46, 0.0 }
 0x39b   :  { %v6645_v18 = vsel %vm2852_vm3, %v6071_v44, 0 }
 0x39c   :  { %v6724_v53 = vand.u32 4294901760, %v6645_v18  ;;  %v6642_v27 = vsel %vm2852_vm3, %v6070_v23, 0  ;;  %v22259_v23 = vpack.c.bf16 %v24867_v59, %v24863_v13 }
 0x39d   :  { %v6714_v14 = vand.u32 4294901760, %v6642_v27 }
 0x39e   :  { %v6725_v15 = vsub.f32 %v6645_v18, %v6724_v53 }
 0x39f   :  { %v6715_v1 = vsub.f32 %v6642_v27, %v6714_v14 }
 0x3a0   :  { %v6726_v43 = vand.u32 4294901760, %v6725_v15 }
 0x3a1   :  { %v6716_v61 = vand.u32 4294901760, %v6715_v1 }
 0x3a2   :  { %v6727_v26 = vsub.f32 %v6725_v15, %v6726_v43 }
 0x3a3   :  { %v6717_v39 = vsub.f32 %v6715_v1, %v6716_v61 }
 0x3a4   :  { %v6728_v42 = vand.u32 4294901760, %v6727_v26 }
 0x3a5   :  { %v6718_v56 = vand.u32 4294901760, %v6717_v39 }
 0x3a7   :  { %20479 = vmatprep.mubr.f32.mxu1 %v6718_v56 }
 0x3a8   :  { %20480 = vmatmul.mubr.f32.vlgmr.msra.gmra.mrb[12].mxu1 %v6728_v42 }
 0x3a9   :  { %20486 = vmatprep.mubr.f32.mxu1 %v6714_v14  ;;  %22216 = vmatpush3.bf16.msra.mxu1 %v22213_v58  ;;  %v24875_v58 = vpack.c.bf16 %v7730_v51, %v7727_v21 }
 0x3aa   :  { %22218 = vmatprep.subr.bf16.mxu1 %v22217_v11 }
 0x3b0   :  { %20487 = vmatmul.mubr.f32.vlgmr.msra.gmra.mrb[12].mxu1 %v6724_v53 }
 0x3b1   :  { %20493 = vmatprep.mubr.f32.mxu1 %v6715_v1  ;;  %22220 = vmatpush3.bf16.msra.mxu1 %v22217_v11  ;;  %v7817_v11 = vand.u32 4294901760, %v24863_v13 }
 0x3b2   :  { %22222 = vmatprep.subr.bf16.mxu1 %v24812_v36 }
 0x3b3   :  { %v7818_v37 = vsub.f32 %v24863_v13, %v7817_v11 }
 0x3b8   :  { %20494 = vmatmul.mubr.f32.vlgmr.msra.gmra.mrb[12].mxu1 %v6725_v15 }
 0x3b9   :  { %20500 = vmatprep.mubr.f32.mxu1 %v6716_v61  ;;  %22224 = vmatpush3.bf16.msra.mxu1 %v24812_v36 }
 0x3ba   :  { %22226 = vmatprep.subr.bf16.mxu1 %v22225_v20 }
 0x3c0   :  { %20501 = vmatmul.mubr.f32.vlgmr.msra.gmra.mrb[12].mxu1 %v6726_v43 }
 0x3c1   :  { %20507 = vmatprep.mubr.f32.mxu1 %v6714_v14  ;;  %22228 = vmatpush3.bf16.msra.mxu1 %v22225_v20  ;;  %v7830_v20 = vsub.f32 %v24255_v24, %v24870_v17  ;;  %v7819_v24 = vand.u32 4294901760, %v7818_v37 }
 0x3c2   :  { %22230 = vmatprep.subr.bf16.mxu1 %v24812_v36 }
 0x3c3   :  { %v24896_v54 = vand.u32 4294901760, %v7830_v20 }
 0x3c5   :  { %v7832_v32 = vsub.f32 %v7830_v20, %v24896_v54 }
 0x3c7   :  { %v7833_v30 = vand.u32 4294901760, %v7832_v32 }
 0x3c8   :  { %20508 = vmatmul.mubr.f32.vlgmr.msra.gmra.mrb[12].mxu1 %v6724_v53 }
 0x3c9   :  { %22232 = vmatpush3.bf16.msra.mxu1 %v24812_v36  ;;  %20514 = vmatprep.mubr.f32.mxu1 %v6714_v14  ;;  %v7825_v36 = vsub.f32 %v24867_v59, %v7824_v19  ;;  %v8263_v59 = vand.u32 4294901760, %v24253_v4 }
 0x3ca   :  { %22252 = vmatprep.subr.bf16.mxu1 %v24875_v58 }
 0x3cb   :  { %v7826_v25 = vand.u32 4294901760, %v7825_v36 }
 0x3cd   :  { %v22255_v62 = vpack.c.bf16 %v7826_v25, %v7819_v24 }
 0x3d0   :  { %20515 = vmatmul.mubr.f32.vlgmr.msra.gmra.mrb[12].mxu1 %v6724_v53 }
 0x3d1   :  { %22254 = vmatpush3.bf16.msra.mxu1 %v24875_v58  ;;  %20601 = vmatprep.mubr.f32.mxu1 %v7798_v10 }
 0x3d2   :  { %20599 = vmatprep.subr.mxu1 %v24870_v17 }
 0x3d5   :  { %20600 = vmatpush3.msra.mxu1 %v24870_v17 }
 0x3d6   :  { %20602 = vmatmul.mubr.f32.vlgmr.msra.gmra.mrb[22].mxu1 %v7808_v48  ;;  %22256 = vmatprep.subr.bf16.mxu1 %v22255_v62  ;;  %v18482_v48 = vld [vmem:[%s26676_s3 + $0x40] sm:$0xff] }
 0x3d7   :  { %22258 = vmatpush3.bf16.msra.mxu1 %v22255_v62  ;;  %20610 = vmatprep.mubr.f32.mxu1 %v24851_v41  ;;  %v8260_v62 = vsel %vm2852_vm3, %v18482_v48, 0 }
 0x3d8   :  { %20608 = vmatprep.subr.mxu1 %v7833_v30  ;;  %v6622_v60 = vpop.f32.mrb[16].mxu1 }
 0x3d9   :  { %v6638_v44 = vmax.f32 %v6622_v60, 0.0  ;;  %v20468_v46 = vpop.f32.mrb[17].mxu1  ;;  %v25003_v60 = vand.u32 4294901760, %v8260_v62 }
 0x3db   :  { %20609 = vmatpush3.msra.mxu1 %v7833_v30  ;;  %v7152_v18 = vsel %vm2852_vm3, %v6638_v44, 0 }
 0x3dc   :  { %22260 = vmatprep.subr.bf16.mxu1 %v22259_v23  ;;  %v24906_v53 = vand.u32 4294901760, %v7152_v18  ;;  %v6628_v27 = vpop.f32.mrb[18].mxu1 }
 0x3dd   :  { %v6639_v14 = vmax.f32 %v6628_v27, 0.0  ;;  %v20471_v15 = vpop.f32.mrb[19].mxu1 }
 0x3de   :  { %20611 = vmatmul.mubr.f32.vlgmr.msra.gmra.mrb[22].mxu1 %v24860_v57  ;;  %v24910_v1 = vsub.f32 %v7152_v18, %v24906_v53 }
 0x3df   :  { %22262 = vmatpush3.bf16.msra.mxu1 %v22259_v23  ;;  %20619 = vmatprep.mubr.f32.mxu1 %v24856_v29  ;;  %v7155_v43 = vsel %vm2852_vm3, %v6639_v14, 0  ;;  %v22267_v29 = vpack.c.bf16 %v7824_v19, %v7817_v11  ;;  %v8266_v11 = vand.u32 4294901760, %v24259_v6 }
 0x3e0   :  { %20617 = vmatprep.subr.mxu1 %v7830_v20  ;;  %v7229_v61 = vand.u32 4294901760, %v24910_v1  ;;  %v24915_v26 = vand.u32 4294901760, %v7155_v43  ;;  %v6634_v39 = vpop.f32.mrb[20].mxu1 }
 0x3e1   :  { %v6640_v56 = vmax.f32 %v6634_v39, 0.0  ;;  %v20474_v42 = vpop.f32.mrb[21].mxu1  ;;  %v25029_v46 = vpack.c.bf16 %v8266_v11, %v8263_v59 }
 0x3e2   :  { %v7230_v16 = vsub.f32 %v24910_v1, %v7229_v61  ;;  %v24921_v34 = vsub.f32 %v7155_v43, %v24915_v26 }
 0x3e3   :  { %20618 = vmatpush3.msra.mxu1 %v7830_v20  ;;  %v7158_v12 = vsel %vm2852_vm3, %v6640_v56, 0  ;;  %v18480_v20 = vld [vmem:[%s26676_s3 + $0x30] sm:$0xff] }
 0x3e4   :  { %22264 = vmatprep.subr.bf16.mxu1 %v24875_v58  ;;  %v7231_v63 = vand.u32 4294901760, %v7230_v16  ;;  %v24925_v21 = vand.u32 4294901760, %v7158_v12  ;;  %v7239_v51 = vand.u32 4294901760, %v24921_v34  ;;  %v8254_v38 = vsel %vm2852_vm3, %v18480_v20, 0 }
 0x3e5   :  { %v24965_v19 = vand.u32 4294901760, %v8254_v38 }
 0x3e6   :  { %20620 = vmatmul.mubr.f32.vlgmr.msra.gmra.mrb[22].mxu1 %v24873_v31  ;;  %v24930_v2 = vsub.f32 %v7158_v12, %v24925_v21  ;;  %20522 = vmatmul.mubr.f32.vlgmr.msra.gmra.mrb[18].mxu0 %v7231_v63  ;;  %v7240_v37 = vsub.f32 %v24921_v34, %v7239_v51  ;;  %v24976_v31 = vsub.f32 %v24253_v4, %v8263_v59 }
 0x3e7   :  { %22266 = vmatpush3.bf16.msra.mxu1 %v24875_v58  ;;  %20628 = vmatprep.mubr.f32.mxu1 %v7796_v28  ;;  %v24982_v25 = vsub.f32 %v8254_v38, %v24965_v19 }
 0x3e8   :  { %20626 = vmatprep.subr.mxu1 %v24870_v17  ;;  %20524 = vmatprep.mubr.msk.f32.mxu0 %vm23495_vm0, %v23496_v8  ;;  %v7241_v10 = vand.u32 4294901760, %v7240_v37  ;;  %v7249_v36 = vand.u32 4294901760, %v24930_v2  ;;  %v8362_v4 = vand.u32 4294901760, %v24976_v31 }
 0x3e9   :  { %22238 = vmatpush3.bf16.msra.mxu0 %v24834_v33  ;;  %v18481_v33 = vld [vmem:[%s26676_s3 + $0x38] sm:$0xff] }
 0x3ea   :  { %20525 = vmatmul.mubr.f32.gmra.mrb[20].mxu0 %v7241_v10  ;;  %v7250_v28 = vsub.f32 %v24930_v2, %v7249_v36  ;;  %22239 = vmatprep.subr.bf16.mxu0 %v23494_v3  ;;  %v8257_v24 = vsel %vm2852_vm3, %v18481_v33, 0  ;;  %v8363_v52 = vsub.f32 %v24976_v31, %v8362_v4  ;;  %v2316_v10 = vld [vmem:[%s26685_s12 + $0x20] sm:$0xff] }
 0x3eb   :  { %20627 = vmatpush3.msra.mxu1 %v24870_v17  ;;  %20527 = vmatprep.mubr.msk.f32.mxu0 %vm23495_vm0, %v23496_v8  ;;  %v24984_v32 = vand.u32 4294901760, %v8257_v24 }
 0x3ec   :  { %22268 = vmatprep.subr.bf16.mxu1 %v22267_v29  ;;  %v7251_v13 = vand.u32 4294901760, %v7250_v28  ;;  %v8364_v44 = vand.u32 4294901760, %v8363_v52 }
 0x3ed   :  { %v25001_v30 = vsub.f32 %v8257_v24, %v24984_v32 }
 0x3ee   :  { %20629 = vmatmul.mubr.f32.vlgmr.msra.gmra.mrb[22].mxu1 %v7806_v55  ;;  %20528 = vmatmul.mubr.f32.gmra.mrb[22].mxu0 %v7251_v13  ;;  %v24979_v55 = vsub.f32 %v24259_v6, %v8266_v11 }
 0x3ef   :  { %22270 = vmatpush3.bf16.msra.mxu1 %v22267_v29  ;;  %20637 = vmatprep.mubr.f32.mxu1 %v24851_v41  ;;  %v9330_v29 = vand.u32 4294901760, %v2316_v10 }
 0x3f0   :  { %20635 = vmatprep.subr.mxu1 %v24896_v54  ;;  %20534 = vmatprep.mubr.msk.f32.mxu0 %vm23495_vm0, %v23496_v8  ;;  %v8369_v6 = vand.u32 4294901760, %v24979_v55  ;;  %v22282_v39 = vpack.c.bf16 %v24979_v55, %v24976_v31 }
 0x3f1   :  { %v25171_v33 = vsub.f32 %v2316_v10, %v9330_v29 }
 0x3f2   :  { %20535 = vmatmul.mubr.f32.vlgmr.msra.gmra.mrb[18].mxu0 %v24906_v53  ;;  %v8370_v0 = vsub.f32 %v24979_v55, %v8369_v6 }
 0x3f3   :  { %20636 = vmatpush3.msra.mxu1 %v24896_v54  ;;  %20537 = vmatprep.mubr.msk.f32.mxu0 %vm23495_vm0, %v23496_v8  ;;  %v8331_v54 = vand.u32 4294901760, %v24982_v25  ;;  %v9429_v59 = vand.u32 4294901760, %v25171_v33 }
 0x3f4   :  { %22272 = vmatprep.subr.bf16.mxu1 %v24875_v58  ;;  %22241 = vmatpush3.bf16.msra.mxu0 %v22240_v40  ;;  %v8371_v23 = vand.u32 4294901760, %v8370_v0 }
 0x3f5   :  { %22242 = vmatprep.subr.bf16.mxu0 %v23494_v3  ;;  %v8332_v40 = vsub.f32 %v24982_v25, %v8331_v54 }
 0x3f6   :  { %20638 = vmatmul.mubr.f32.vlgmr.msra.gmra.mrb[22].mxu1 %v24860_v57  ;;  %20538 = vmatmul.mubr.f32.gmra.mrb[20].mxu0 %v24915_v26 }
 0x3f7   :  { %22274 = vmatpush3.bf16.msra.mxu1 %v24875_v58  ;;  %20646 = vmatprep.mubr.f32.mxu1 %v24851_v41  ;;  %v8341_v58 = vand.u32 4294901760, %v25001_v30  ;;  %v25022_v41 = vsub.f32 %v8260_v62, %v25003_v60  ;;  %v8333_v18 = vand.u32 4294901760, %v8332_v40 }
 0x3f8   :  { %20644 = vmatprep.subr.mxu1 %v24870_v17  ;;  %20540 = vmatprep.mubr.msk.f32.mxu0 %vm23495_vm0, %v23496_v8 }
 0x3f9   :  { %v8342_v27 = vsub.f32 %v25001_v30, %v8341_v58  ;;  %v8351_v14 = vand.u32 4294901760, %v25022_v41 }
 0x3fa   :  { %20541 = vmatmul.mubr.f32.gmra.mrb[22].mxu0 %v24925_v21 }
 0x3fb   :  { %20645 = vmatpush3.msra.mxu1 %v24870_v17  ;;  %20547 = vmatprep.mubr.msk.f32.mxu0 %vm23495_vm0, %v23496_v8  ;;  %v8343_v17 = vand.u32 4294901760, %v8342_v27  ;;  %v8352_v15 = vsub.f32 %v25022_v41, %v8351_v14 }
 0x3fc   :  { %22275 = vmatprep.subr.bf16.mxu1 %v23494_v3 }
 0x3fd   :  { %v8353_v43 = vand.u32 4294901760, %v8352_v15 }
 0x3fe   :  { %20647 = vmatmul.mubr.f32.vlgmr.msra.gmra.mrb[22].mxu1 %v24860_v57  ;;  %20548 = vmatmul.mubr.f32.vlgmr.msra.gmra.mrb[18].mxu0 %v24910_v1  ;;  %v22279_v57 = vpack.c.bf16 %v8371_v23, %v8364_v44 }
 0x3ff   :  { %22277 = vmatpush3.bf16.msra.mxu1 %v25029_v46  ;;  %20653 = vmatprep.mubr.msk.f32.mxu1 %vm23495_vm0, %v23496_v8 }
 0x400   :  { %22278 = vmatprep.subr.bf16.mxu1 %v23494_v3  ;;  %20550 = vmatprep.mubr.msk.f32.mxu0 %vm23495_vm0, %v23496_v8 }
 0x401   :  { %22244 = vmatpush3.bf16.msra.mxu0 %v24822_v45 }
 0x402   :  { %20654 = vmatmul.mubr.f32.vlgmr.msra.gmra.mrb[24].mxu1 %v8333_v18  ;;  %20551 = vmatmul.mubr.f32.gmra.mrb[20].mxu0 %v24921_v34 }
 0x403   :  { %22280 = vmatpush3.bf16.msra.mxu1 %v22279_v57  ;;  %20656 = vmatprep.mubr.msk.f32.mxu1 %vm23495_vm0, %v23496_v8 }
 0x404   :  { %22281 = vmatprep.subr.bf16.mxu1 %v23494_v3  ;;  %20553 = vmatprep.mubr.msk.f32.mxu0 %vm23495_vm0, %v23496_v8 }
 0x405   :  { %22245 = vmatprep.subr.bf16.mxu0 %v23494_v3 }
 0x406   :  { %20657 = vmatmul.mubr.f32.gmra.mrb[26].mxu1 %v8343_v17  ;;  %20554 = vmatmul.mubr.f32.gmra.mrb[22].mxu0 %v24930_v2  ;;  %v18484_v17 = vld [vmem:[%s26675_s2 + $0x38] sm:$0xff] }
 0x407   :  { %20659 = vmatprep.mubr.msk.f32.mxu1 %vm23495_vm0, %v23496_v8  ;;  %20560 = vmatprep.mubr.msk.f32.mxu0 %vm23495_vm0, %v23496_v8 }
 0x40a   :  { %20660 = vmatmul.mubr.f32.gmra.mrb[28].mxu1 %v8353_v43  ;;  %20561 = vmatmul.mubr.f32.vlgmr.msra.gmra.mrb[18].mxu0 %v7229_v61  ;;  %v9893_v43 = vsel %vm1193_vm2, %v18484_v17, 0 }
 0x40b   :  { %20666 = vmatprep.mubr.msk.f32.mxu1 %vm23495_vm0, %v23496_v8  ;;  %20563 = vmatprep.mubr.msk.f32.mxu0 %vm23495_vm0, %v23496_v8 }
 0x40c   :  { %22247 = vmatpush3.bf16.msra.mxu0 %v24840_v35  ;;  %v2304_v35 = vld [vmem:[%s26684_s11 + $0x20] sm:$0xff] }
 0x40d   :  { %22248 = vmatprep.subr.bf16.mxu0 %v23494_v3  ;;  %v8817_v1 = vand.u32 4294901760, %v2304_v35 }
 0x40e   :  { %20667 = vmatmul.mubr.f32.vlgmr.msra.gmra.mrb[24].mxu1 %v24965_v19  ;;  %20564 = vmatmul.mubr.f32.gmra.mrb[20].mxu0 %v7239_v51 }
 0x40f   :  { %22283 = vmatpush3.bf16.msra.mxu1 %v22282_v39  ;;  %20669 = vmatprep.mubr.msk.f32.mxu1 %vm23495_vm0, %v23496_v8  ;;  %v8905_v56 = vsub.f32 %v2304_v35, %v8817_v1  ;;  %v9899_v39 = vand.u32 4294901760, %v24263_v9  ;;  %v9896_v35 = vand.u32 4294901760, %v24257_v5 }
 0x410   :  { %22284 = vmatprep.subr.bf16.mxu1 %v23494_v3  ;;  %20566 = vmatprep.mubr.msk.f32.mxu0 %vm23495_vm0, %v23496_v8 }
 0x411   :  { %v8906_v16 = vand.u32 4294901760, %v8905_v56 }
 0x412   :  { %20670 = vmatmul.mubr.f32.gmra.mrb[26].mxu1 %v24984_v32  ;;  %20567 = vmatmul.mubr.f32.gmra.mrb[22].mxu0 %v7249_v36  ;;  %v2317_v36 = vld [vmem:[%s26685_s12 + $0x28] sm:$0xff] }
 0x413   :  { %20672 = vmatprep.mubr.msk.f32.mxu1 %vm23495_vm0, %v23496_v8  ;;  %20573 = vmatprep.mubr.msk.f32.mxu0 %vm23495_vm0, %v23496_v8  ;;  %v8907_v12 = vsub.f32 %v8905_v56, %v8906_v16  ;;  %v9333_v28 = vand.u32 4294901760, %v2317_v36 }
 0x415   :  { %v25168_v38 = vpack.c.bf16 %v9333_v28, %v9330_v29  ;;  %v25173_v13 = vsub.f32 %v2317_v36, %v9333_v28 }
 0x416   :  { %20673 = vmatmul.mubr.f32.gmra.mrb[28].mxu1 %v25003_v60  ;;  %20574 = vmatmul.mubr.f32.vlgmr.msra.gmra.mrb[18].mxu0 %v24906_v53 }
 0x417   :  { %20679 = vmatprep.mubr.msk.f32.mxu1 %vm23495_vm0, %v23496_v8  ;;  %20576 = vmatprep.mubr.msk.f32.mxu0 %vm23495_vm0, %v23496_v8  ;;  %v9436_v11 = vand.u32 4294901760, %v25173_v13 }
 0x418   :  { %22250 = vmatpush3.bf16.msra.mxu0 %v24822_v45  ;;  %v22288_v45 = vpack.c.bf16 %v8369_v6, %v8362_v4 }
 0x419   :  { %22317 = vmatprep.subr.bf16.mxu0 %v23494_v3  ;;  %v9437_v24 = vsub.f32 %v25173_v13, %v9436_v11 }
 0x41a   :  { %20680 = vmatmul.mubr.f32.vlgmr.msra.gmra.mrb[24].mxu1 %v24982_v25  ;;  %20577 = vmatmul.mubr.f32.gmra.mrb[20].mxu0 %v24915_v26  ;;  %v22324_v25 = vpack.c.bf16 %v25173_v13, %v25171_v33  ;;  %v18485_v13 = vld [vmem:[%s26676_s3 + $0x48] sm:$0xff] }
 0x41b   :  { %22286 = vmatpush3.bf16.msra.mxu1 %v25029_v46  ;;  %20682 = vmatprep.mubr.msk.f32.mxu1 %vm23495_vm0, %v23496_v8  ;;  %v9438_v31 = vand.u32 4294901760, %v9437_v24 }
 0x41c   :  { %22287 = vmatprep.subr.bf16.mxu1 %v23494_v3  ;;  %20579 = vmatprep.mubr.msk.f32.mxu0 %vm23495_vm0, %v23496_v8 }
 0x41e   :  { %20683 = vmatmul.mubr.f32.gmra.mrb[26].mxu1 %v25001_v30  ;;  %20580 = vmatmul.mubr.f32.gmra.mrb[22].mxu0 %v24925_v21 }
 0x41f   :  { %20685 = vmatprep.mubr.msk.f32.mxu1 %vm23495_vm0, %v23496_v8  ;;  %20586 = vmatprep.mubr.msk.f32.mxu0 %vm23495_vm0, %v23496_v8 }
 0x422   :  { %20686 = vmatmul.mubr.f32.gmra.mrb[28].mxu1 %v25022_v41  ;;  %20587 = vmatmul.mubr.f32.vlgmr.msra.gmra.mrb[18].mxu0 %v24906_v53  ;;  %v2305_v53 = vld [vmem:[%s26684_s11 + $0x28] sm:$0xff] }
 0x423   :  { %20692 = vmatprep.mubr.msk.f32.mxu1 %vm23495_vm0, %v23496_v8  ;;  %20589 = vmatprep.mubr.msk.f32.mxu0 %vm23495_vm0, %v23496_v8  ;;  %v8820_v61 = vand.u32 4294901760, %v2305_v53 }
 0x424   :  { %22319 = vmatpush3.bf16.msra.mxu0 %v25168_v38 }
 0x425   :  { %v8912_v42 = vsub.f32 %v2305_v53, %v8820_v61  ;;  %22320 = vmatprep.subr.bf16.mxu0 %v23494_v3  ;;  %v25206_v53 = vand.u32 4294901760, %v9893_v43 }
 0x426   :  { %20693 = vmatmul.mubr.f32.vlgmr.msra.gmra.mrb[24].mxu1 %v8331_v54  ;;  %20590 = vmatmul.mubr.f32.gmra.mrb[20].mxu0 %v24915_v26  ;;  %v25158_v26 = vpack.c.bf16 %v8820_v61, %v8817_v1  ;;  %v25209_v1 = vsub.f32 %v24263_v9, %v9899_v39 }
 0x427   :  { %22289 = vmatpush3.bf16.msra.mxu1 %v22288_v45  ;;  %20695 = vmatprep.mubr.msk.f32.mxu1 %vm23495_vm0, %v23496_v8  ;;  %v8913_v34 = vand.u32 4294901760, %v8912_v42  ;;  %v22301_v37 = vpack.c.bf16 %v8912_v42, %v8905_v56  ;;  %v25213_v56 = vsub.f32 %v24257_v5, %v9896_v35 }
 0x428   :  { %22290 = vmatprep.subr.bf16.mxu1 %v23494_v3  ;;  %20592 = vmatprep.mubr.msk.f32.mxu0 %vm23495_vm0, %v23496_v8 }
 0x429   :  { %v8914_v63 = vsub.f32 %v8912_v42, %v8913_v34  ;;  %v22309_v20 = vpack.c.bf16 %v8913_v34, %v8906_v16  ;;  %v25216_v42 = vand.u32 4294901760, %v24261_v7  ;;  %v25219_v16 = vsub.f32 %v9893_v43, %v25206_v53 }
 0x42a   :  { %20696 = vmatmul.mubr.f32.gmra.mrb[26].mxu1 %v8341_v58  ;;  %20593 = vmatmul.mubr.f32.gmra.mrb[22].mxu0 %v24925_v21  ;;  %v8908_v21 = vand.u32 4294901760, %v8907_v12  ;;  %v25221_v34 = vpack.c.bf16 %v9899_v39, %v9896_v35  ;;  %v9993_v12 = vand.u32 4294901760, %v25209_v1  ;;  %v9986_v5 = vand.u32 4294901760, %v25213_v56 }
 0x42b   :  { %20698 = vmatprep.mubr.msk.f32.mxu1 %vm23495_vm0, %v23496_v8  ;;  %20773 = vmatprep.mubr.msk.f32.mxu0 %vm23495_vm0, %v23496_v8  ;;  %v8915_v51 = vand.u32 4294901760, %v8914_v63  ;;  %v9999_v63 = vsub.f32 %v24261_v7, %v25216_v42 }
 0x42c   :  { %v22351_v35 = vpack.c.bf16 %v9993_v12, %v9986_v5 }
 0x42d   :  { %v22297_v2 = vpack.c.bf16 %v8915_v51, %v8908_v21  ;;  %v9975_v21 = vand.u32 4294901760, %v25219_v16  ;;  %v9994_v51 = vsub.f32 %v25209_v1, %v9993_v12 }
 0x42e   :  { %20699 = vmatmul.mubr.f32.gmra.mrb[28].mxu1 %v8351_v14  ;;  %v18483_v14 = vld [vmem:[%s26675_s2 + $0x30] sm:$0xff] }
 0x42f   :  { %20705 = vmatprep.mubr.msk.f32.mxu1 %vm23495_vm0, %v23496_v8  ;;  %v9890_v57 = vsel %vm1193_vm2, %v18483_v14, 0  ;;  %v9995_v7 = vand.u32 4294901760, %v9994_v51 }
 0x430   :  { %v25197_v15 = vand.u32 4294901760, %v9890_v57 }
 0x432   :  { %20706 = vmatmul.mubr.f32.vlgmr.msra.gmra.mrb[24].mxu1 %v24965_v19  ;;  %v25202_v45 = vsub.f32 %v9890_v57, %v25197_v15 }
 0x433   :  { %22292 = vmatpush3.bf16.msra.mxu1 %v25029_v46  ;;  %20708 = vmatprep.mubr.msk.f32.mxu1 %vm23495_vm0, %v23496_v8 }
 0x434   :  { %22294 = vmatprep.subr.bf16.mxu1 %v25158_v26  ;;  %v9965_v61 = vand.u32 4294901760, %v25202_v45 }
 0x436   :  { %20709 = vmatmul.mubr.f32.gmra.mrb[26].mxu1 %v24984_v32  ;;  %v9966_v9 = vsub.f32 %v25202_v45, %v9965_v61 }
 0x437   :  { %20711 = vmatprep.mubr.msk.f32.mxu1 %vm23495_vm0, %v23496_v8 }
 0x43a   :  { %20712 = vmatmul.mubr.f32.gmra.mrb[28].mxu1 %v25003_v60 }
 0x43b   :  { %20718 = vmatprep.mubr.msk.f32.mxu1 %vm23495_vm0, %v23496_v8 }
 0x43e   :  { %20719 = vmatmul.mubr.f32.vlgmr.msra.gmra.mrb[24].mxu1 %v24965_v19  ;;  %v9430_v19 = vsub.f32 %v25171_v33, %v9429_v59  ;;  %v25334_v33 = vpop.permute.xlu1 %12053 }
 0x43f   :  { %20721 = vmatprep.mubr.msk.f32.mxu1 %vm23495_vm0, %v23496_v8  ;;  %22296 = vmatpush3.bf16.msra.mxu1 %v25158_v26 }
 0x440   :  { %22298 = vmatprep.subr.bf16.mxu1 %v22297_v2  ;;  %v9431_v48 = vand.u32 4294901760, %v9430_v19 }
 0x442   :  { %20722 = vmatmul.mubr.f32.gmra.mrb[26].mxu1 %v24984_v32  ;;  %v25180_v55 = vpack.c.bf16 %v9438_v31, %v9431_v48  ;;  %v25184_v32 = vpack.c.bf16 %v9436_v11, %v9429_v59  ;;  %v22343_v48 = vpack.c.bf16 %v25209_v1, %v25213_v56 }
 0x443   :  { %20724 = vmatprep.mubr.msk.f32.mxu1 %vm23495_vm0, %v23496_v8 }
 0x446   :  { %20725 = vmatmul.mubr.f32.gmra.mrb[28].mxu1 %v25003_v60 }
 0x4d1   :  { %v20648_v62 = vpop.f32.mrb[22].mxu1 }
 0x4d2   :  { %v8242_v4 = vmax.f32 %v20648_v62, 0.0  ;;  %v8231_v6 = vpop.f32.mrb[23].mxu1 }
 0x4d3   :  { %v8241_v54 = vmax.f32 %v8231_v6, 0.0 }
 0x4d4   :  { %v8814_v30 = vsel %vm2852_vm3, %v8242_v4, 0 }
 0x4d5   :  { %v8893_v60 = vand.u32 4294901760, %v8814_v30  ;;  %v8811_v52 = vsel %vm2852_vm3, %v8241_v54, 0 }
 0x4d6   :  { %v8883_v0 = vand.u32 4294901760, %v8811_v52 }
 0x4d7   :  { %v8894_v40 = vsub.f32 %v8814_v30, %v8893_v60 }
 0x4d8   :  { %v8884_v58 = vsub.f32 %v8811_v52, %v8883_v0 }
 0x4d9   :  { %v8895_v41 = vand.u32 4294901760, %v8894_v40 }
 0x4da   :  { %v8885_v44 = vand.u32 4294901760, %v8884_v58 }
 0x4db   :  { %v8896_v46 = vsub.f32 %v8894_v40, %v8895_v41 }
 0x4dc   :  { %v8886_v23 = vsub.f32 %v8884_v58, %v8885_v44 }
 0x4dd   :  { %v8897_v27 = vand.u32 4294901760, %v8896_v46 }
 0x4de   :  { %v8887_v18 = vand.u32 4294901760, %v8886_v23 }
 0x4e0   :  { %20731 = vmatprep.mubr.f32.mxu1 %v8887_v18 }
 0x4e1   :  { %20732 = vmatmul.mubr.f32.vlgmr.msra.gmra.mrb[12].mxu1 %v8897_v27 }
 0x4e2   :  { %20738 = vmatprep.mubr.f32.mxu1 %v8883_v0  ;;  %22300 = vmatpush3.bf16.msra.mxu1 %v22297_v2  ;;  %v9967_v2 = vand.u32 4294901760, %v9966_v9 }
 0x4e3   :  { %22302 = vmatprep.subr.bf16.mxu1 %v22301_v37 }
 0x4e9   :  { %20739 = vmatmul.mubr.f32.vlgmr.msra.gmra.mrb[12].mxu1 %v8893_v60 }
 0x4ea   :  { %20745 = vmatprep.mubr.f32.mxu1 %v8884_v58  ;;  %22304 = vmatpush3.bf16.msra.mxu1 %v22301_v37  ;;  %v9976_v37 = vsub.f32 %v25219_v16, %v9975_v21 }
 0x4eb   :  { %22306 = vmatprep.subr.bf16.mxu1 %v25158_v26 }
 0x4ec   :  { %v9977_v10 = vand.u32 4294901760, %v9976_v37 }
 0x4f1   :  { %20746 = vmatmul.mubr.f32.vlgmr.msra.gmra.mrb[12].mxu1 %v8894_v40 }
 0x4f2   :  { %20752 = vmatprep.mubr.f32.mxu1 %v8885_v44  ;;  %22308 = vmatpush3.bf16.msra.mxu1 %v25158_v26 }
 0x4f3   :  { %22310 = vmatprep.subr.bf16.mxu1 %v22309_v20 }
 0x4f9   :  { %20753 = vmatmul.mubr.f32.vlgmr.msra.gmra.mrb[12].mxu1 %v8895_v41 }
 0x4fa   :  { %20759 = vmatprep.mubr.f32.mxu1 %v8883_v0  ;;  %22312 = vmatpush3.bf16.msra.mxu1 %v22309_v20  ;;  %v25242_v20 = vand.u32 4294901760, %v9999_v63 }
 0x4fb   :  { %22314 = vmatprep.subr.bf16.mxu1 %v25158_v26 }
 0x4fc   :  { %v10001_v29 = vsub.f32 %v9999_v63, %v25242_v20 }
 0x4fe   :  { %v10002_v59 = vand.u32 4294901760, %v10001_v29 }
 0x501   :  { %20760 = vmatmul.mubr.f32.vlgmr.msra.gmra.mrb[12].mxu1 %v8893_v60 }
 0x502   :  { %22316 = vmatpush3.bf16.msra.mxu1 %v25158_v26  ;;  %20766 = vmatprep.mubr.f32.mxu1 %v8883_v0  ;;  %v9987_v26 = vsub.f32 %v25213_v56, %v9986_v5  ;;  %v18487_v56 = vld [vmem:[%s26676_s3 + $0x58] sm:$0xff] }
 0x503   :  { %22336 = vmatprep.subr.bf16.mxu1 %v25221_v34  ;;  %v10429_v5 = vsel %vm2852_vm3, %v18487_v56, 0 }
 0x504   :  { %v9988_v36 = vand.u32 4294901760, %v9987_v26  ;;  %v25368_v37 = vand.u32 4294901760, %v10429_v5 }
 0x506   :  { %v22339_v28 = vpack.c.bf16 %v9995_v7, %v9988_v36  ;;  %v10519_v29 = vsub.f32 %v10429_v5, %v25368_v37  ;;  %v18489_v5 = vld [vmem:[%s26675_s2 + $0x48] sm:$0xff] }
 0x509   :  { %20767 = vmatmul.mubr.f32.vlgmr.msra.gmra.mrb[12].mxu1 %v8893_v60 }
 0x50a   :  { %22338 = vmatpush3.bf16.msra.mxu1 %v25221_v34  ;;  %20853 = vmatprep.mubr.f32.mxu1 %v9967_v2 }
 0x50b   :  { %20851 = vmatprep.subr.mxu1 %v25216_v42 }
 0x50e   :  { %20852 = vmatpush3.msra.mxu1 %v25216_v42 }
 0x50f   :  { %20854 = vmatmul.mubr.f32.vlgmr.msra.gmra.mrb[30].mxu1 %v9977_v10  ;;  %22340 = vmatprep.subr.bf16.mxu1 %v22339_v28 }
 0x510   :  { %22342 = vmatpush3.bf16.msra.mxu1 %v22339_v28  ;;  %20862 = vmatprep.mubr.f32.mxu1 %v25197_v15 }
 0x511   :  { %20860 = vmatprep.subr.mxu1 %v10002_v59  ;;  %v8791_v11 = vpop.f32.mrb[24].mxu1 }
 0x512   :  { %v8807_v19 = vmax.f32 %v8791_v11, 0.0  ;;  %v20720_v24 = vpop.f32.mrb[25].mxu1 }
 0x513   :  { %v10520_v24 = vand.u32 4294901760, %v10519_v29 }
 0x514   :  { %v9321_v31 = vsel %vm2852_vm3, %v8807_v19, 0  ;;  %20861 = vmatpush3.msra.mxu1 %v10002_v59 }
 0x515   :  { %v25252_v62 = vand.u32 4294901760, %v9321_v31  ;;  %22344 = vmatprep.subr.bf16.mxu1 %v22343_v48  ;;  %v8797_v4 = vpop.f32.mrb[26].mxu1 }
 0x516   :  { %v8808_v6 = vmax.f32 %v8797_v4, 0.0  ;;  %v20723_v54 = vpop.f32.mrb[27].mxu1 }
 0x517   :  { %v25255_v30 = vsub.f32 %v9321_v31, %v25252_v62  ;;  %20863 = vmatmul.mubr.f32.vlgmr.msra.gmra.mrb[30].mxu1 %v25206_v53 }
 0x518   :  { %v9324_v60 = vsel %vm2852_vm3, %v8808_v6, 0  ;;  %22346 = vmatpush3.bf16.msra.mxu1 %v22343_v48  ;;  %20871 = vmatprep.mubr.f32.mxu1 %v25202_v45 }
 0x519   :  { %v9398_v52 = vand.u32 4294901760, %v25255_v30  ;;  %v25261_v0 = vand.u32 4294901760, %v9324_v60  ;;  %20869 = vmatprep.subr.mxu1 %v9999_v63  ;;  %v8803_v40 = vpop.f32.mrb[28].mxu1 }
 0x51a   :  { %v8809_v58 = vmax.f32 %v8803_v40, 0.0  ;;  %v20726_v41 = vpop.f32.mrb[29].mxu1 }
 0x51b   :  { %v9399_v44 = vsub.f32 %v25255_v30, %v9398_v52  ;;  %v9407_v46 = vsub.f32 %v9324_v60, %v25261_v0  ;;  %v2307_v60 = vld [vmem:[%s26684_s11 + $0x38] sm:$0xff] }
 0x51c   :  { %v9327_v23 = vsel %vm2852_vm3, %v8809_v58, 0  ;;  %20870 = vmatpush3.msra.mxu1 %v9999_v63 }
 0x51d   :  { %v9400_v18 = vand.u32 4294901760, %v9399_v44  ;;  %v25268_v27 = vand.u32 4294901760, %v9327_v23  ;;  %22348 = vmatprep.subr.bf16.mxu1 %v25221_v34  ;;  %v9408_v14 = vand.u32 4294901760, %v9407_v46 }
 0x51f   :  { %v9417_v57 = vsub.f32 %v9327_v23, %v25268_v27  ;;  %20872 = vmatmul.mubr.f32.vlgmr.msra.gmra.mrb[30].mxu1 %v25219_v16  ;;  %20774 = vmatmul.mubr.f32.vlgmr.msra.gmra.mrb[18].mxu0 %v9400_v18  ;;  %v9409_v17 = vsub.f32 %v9407_v46, %v9408_v14 }
 0x520   :  { %22350 = vmatpush3.bf16.msra.mxu1 %v25221_v34  ;;  %20776 = vmatprep.mubr.msk.f32.mxu0 %vm23495_vm0, %v23496_v8 }
 0x521   :  { %20878 = vmatprep.subr.mxu1 %v25216_v42  ;;  %v9410_v43 = vand.u32 4294901760, %v9409_v17  ;;  %20880 = vmatprep.mubr.f32.mxu1 %v9965_v61  ;;  %v9418_v39 = vand.u32 4294901760, %v9417_v57 }
 0x522   :  { %22322 = vmatpush3.bf16.msra.mxu0 %v25180_v55  ;;  %v10423_v55 = vsel %vm2852_vm3, %v18485_v13, 0 }
 0x523   :  { %20777 = vmatmul.mubr.f32.gmra.mrb[20].mxu0 %v9410_v43  ;;  %v9419_v9 = vsub.f32 %v9417_v57, %v9418_v39  ;;  %22323 = vmatprep.subr.bf16.mxu0 %v23494_v3  ;;  %v25349_v61 = vand.u32 4294901760, %v10423_v55 }
 0x524   :  { %20879 = vmatpush3.msra.mxu1 %v25216_v42  ;;  %20779 = vmatprep.mubr.msk.f32.mxu0 %vm23495_vm0, %v23496_v8 }
 0x525   :  { %22352 = vmatprep.subr.bf16.mxu1 %v22351_v35  ;;  %v9420_v45 = vand.u32 4294901760, %v9419_v9 }
 0x527   :  { %20881 = vmatmul.mubr.f32.vlgmr.msra.gmra.mrb[30].mxu1 %v9975_v21  ;;  %20780 = vmatmul.mubr.f32.gmra.mrb[22].mxu0 %v9420_v45 }
 0x528   :  { %22354 = vmatpush3.bf16.msra.mxu1 %v22351_v35  ;;  %20786 = vmatprep.mubr.msk.f32.mxu0 %vm23495_vm0, %v23496_v8 }
 0x529   :  { %20887 = vmatprep.subr.mxu1 %v25242_v20  ;;  %20889 = vmatprep.mubr.f32.mxu1 %v25197_v15 }
 0x52b   :  { %20787 = vmatmul.mubr.f32.vlgmr.msra.gmra.mrb[18].mxu0 %v25252_v62 }
 0x52c   :  { %20888 = vmatpush3.msra.mxu1 %v25242_v20  ;;  %20789 = vmatprep.mubr.msk.f32.mxu0 %vm23495_vm0, %v23496_v8 }
 0x52d   :  { %22356 = vmatprep.subr.bf16.mxu1 %v25221_v34  ;;  %22325 = vmatpush3.bf16.msra.mxu0 %v22324_v25  ;;  %v10417_v25 = vpop.permute.xlu0 %10416 }
 0x52e   :  { %22326 = vmatprep.subr.bf16.mxu0 %v23494_v3 }
 0x52f   :  { %20890 = vmatmul.mubr.f32.vlgmr.msra.gmra.mrb[30].mxu1 %v25206_v53  ;;  %20790 = vmatmul.mubr.f32.gmra.mrb[20].mxu0 %v25261_v0 }
 0x530   :  { %22358 = vmatpush3.bf16.msra.mxu1 %v25221_v34  ;;  %20792 = vmatprep.mubr.msk.f32.mxu0 %vm23495_vm0, %v23496_v8  ;;  %v10499_v34 = vsub.f32 %v10423_v55, %v25349_v61 }
 0x531   :  { %20896 = vmatprep.subr.mxu1 %v25216_v42  ;;  %20898 = vmatprep.mubr.f32.mxu1 %v25197_v15  ;;  %v18486_v15 = vld [vmem:[%s26676_s3 + $0x50] sm:$0xff] }
 0x532   :  { %v10500_v2 = vand.u32 4294901760, %v10499_v34 }
 0x533   :  { %20793 = vmatmul.mubr.f32.gmra.mrb[22].mxu0 %v25268_v27 }
 0x534   :  { %20897 = vmatpush3.msra.mxu1 %v25216_v42  ;;  %20799 = vmatprep.mubr.msk.f32.mxu0 %vm23495_vm0, %v23496_v8  ;;  %v10501_v10 = vsub.f32 %v10499_v34, %v10500_v2 }
 0x536   :  { %v10502_v11 = vand.u32 4294901760, %v10501_v10 }
 0x537   :  { %20899 = vmatmul.mubr.f32.vlgmr.msra.gmra.mrb[30].mxu1 %v25206_v53  ;;  %20800 = vmatmul.mubr.f32.vlgmr.msra.gmra.mrb[18].mxu0 %v25255_v30  ;;  %v10432_v53 = vand.u32 4294901760, %v10417_v25  ;;  %v2306_v30 = vld [vmem:[%s26684_s11 + $0x30] sm:$0xff] }
 0x538   :  { %20802 = vmatprep.mubr.msk.f32.mxu0 %vm23495_vm0, %v23496_v8  ;;  %22328 = vmatpush3.bf16.msra.mxu0 %v25168_v38 }
 0x539   :  { %22329 = vmatprep.subr.bf16.mxu0 %v23494_v3  ;;  %v10530_v42 = vsub.f32 %v10417_v25, %v10432_v53 }
 0x53b   :  { %20803 = vmatmul.mubr.f32.gmra.mrb[20].mxu0 %v9407_v46  ;;  %v10531_v63 = vand.u32 4294901760, %v10530_v42 }
 0x53c   :  { %20805 = vmatprep.mubr.msk.f32.mxu0 %vm23495_vm0, %v23496_v8 }
 0x53d   :  { %v10532_v20 = vsub.f32 %v10530_v42, %v10531_v63 }
 0x53f   :  { %20806 = vmatmul.mubr.f32.gmra.mrb[22].mxu0 %v9417_v57  ;;  %v10533_v28 = vand.u32 4294901760, %v10532_v20 }
 0x540   :  { %20812 = vmatprep.mubr.msk.f32.mxu0 %vm23495_vm0, %v23496_v8 }
 0x543   :  { %20813 = vmatmul.mubr.f32.vlgmr.msra.gmra.mrb[18].mxu0 %v9398_v52  ;;  %v10986_v52 = vand.u32 4294901760, %v2306_v30 }
 0x544   :  { %20815 = vmatprep.mubr.msk.f32.mxu0 %vm23495_vm0, %v23496_v8  ;;  %22331 = vmatpush3.bf16.msra.mxu0 %v25184_v32  ;;  %v10419_v32 = vpop.permute.xlu1 %10418 }
 0x545   :  { %22332 = vmatprep.subr.bf16.mxu0 %v23494_v3  ;;  %v10435_v1 = vand.u32 4294901760, %v10419_v32  ;;  %v11074_v58 = vsub.f32 %v2306_v30, %v10986_v52  ;;  %v18492_v30 = vld [vmem:[%s26676_s3 + $0x70] sm:$0xff] }
 0x547   :  { %20816 = vmatmul.mubr.f32.gmra.mrb[20].mxu0 %v9408_v14  ;;  %v10537_v16 = vsub.f32 %v10419_v32, %v10435_v1  ;;  %v25364_v21 = vpack.c.bf16 %v10435_v1, %v10432_v53  ;;  %v11075_v44 = vand.u32 4294901760, %v11074_v58 }
 0x548   :  { %20818 = vmatprep.mubr.msk.f32.mxu0 %vm23495_vm0, %v23496_v8 }
 0x549   :  { %v10538_v51 = vand.u32 4294901760, %v10537_v16  ;;  %v22366_v6 = vpack.c.bf16 %v10537_v16, %v10530_v42  ;;  %v11076_v23 = vsub.f32 %v11074_v58, %v11075_v44 }
 0x54b   :  { %20819 = vmatmul.mubr.f32.gmra.mrb[22].mxu0 %v9418_v39  ;;  %v10539_v7 = vsub.f32 %v10537_v16, %v10538_v51  ;;  %v22372_v54 = vpack.c.bf16 %v10538_v51, %v10531_v63 }
 0x54c   :  { %20825 = vmatprep.mubr.msk.f32.mxu0 %vm23495_vm0, %v23496_v8 }
 0x54d   :  { %v10540_v59 = vand.u32 4294901760, %v10539_v7 }
 0x54f   :  { %20826 = vmatmul.mubr.f32.vlgmr.msra.gmra.mrb[18].mxu0 %v25252_v62  ;;  %v22363_v48 = vpack.c.bf16 %v10540_v59, %v10533_v28 }
 0x550   :  { %20828 = vmatprep.mubr.msk.f32.mxu0 %vm23495_vm0, %v23496_v8  ;;  %22334 = vmatpush3.bf16.msra.mxu0 %v25168_v38  ;;  %v10426_v38 = vsel %vm2852_vm3, %v18486_v15, 0 }
 0x551   :  { %22359 = vmatprep.subr.bf16.mxu0 %v23494_v3  ;;  %v25359_v12 = vand.u32 4294901760, %v10426_v38 }
 0x553   :  { %20829 = vmatmul.mubr.f32.gmra.mrb[20].mxu0 %v25261_v0  ;;  %v10509_v26 = vsub.f32 %v10426_v38, %v25359_v12 }
 0x554   :  { %20831 = vmatprep.mubr.msk.f32.mxu0 %vm23495_vm0, %v23496_v8 }
 0x555   :  { %v10510_v36 = vand.u32 4294901760, %v10509_v26 }
 0x557   :  { %20832 = vmatmul.mubr.f32.gmra.mrb[22].mxu0 %v25268_v27  ;;  %v10511_v19 = vsub.f32 %v10509_v26, %v10510_v36 }
 0x558   :  { %20838 = vmatprep.mubr.msk.f32.mxu0 %vm23495_vm0, %v23496_v8 }
 0x559   :  { %v10512_v31 = vand.u32 4294901760, %v10511_v19 }
 0x55b   :  { %20839 = vmatmul.mubr.f32.vlgmr.msra.gmra.mrb[18].mxu0 %v25252_v62  ;;  %v10521_v62 = vsub.f32 %v10519_v29, %v10520_v24 }
 0x55c   :  { %22361 = vmatpush3.bf16.msra.mxu0 %v25364_v21  ;;  %20841 = vmatprep.mubr.msk.f32.mxu0 %vm23495_vm0, %v23496_v8 }
 0x55d   :  { %22362 = vmatprep.subr.bf16.mxu0 %v23494_v3  ;;  %v10522_v4 = vand.u32 4294901760, %v10521_v62 }
 0x55f   :  { %20842 = vmatmul.mubr.f32.gmra.mrb[20].mxu0 %v25261_v0  ;;  %v10989_v0 = vand.u32 4294901760, %v2307_v60 }
 0x560   :  { %20844 = vmatprep.mubr.msk.f32.mxu0 %vm23495_vm0, %v23496_v8 }
 0x561   :  { %v25419_v40 = vpack.c.bf16 %v10989_v0, %v10986_v52  ;;  %v11081_v41 = vsub.f32 %v2307_v60, %v10989_v0 }
 0x563   :  { %20845 = vmatmul.mubr.f32.gmra.mrb[22].mxu0 %v25268_v27  ;;  %22378 = vmatprep.subr.bf16.mxu1 %v25419_v40  ;;  %v11082_v46 = vand.u32 4294901760, %v11081_v41  ;;  %v11077_v27 = vand.u32 4294901760, %v11076_v23  ;;  %v22385_v17 = vpack.c.bf16 %v11081_v41, %v11074_v58 }
 0x564   :  { %20905 = vmatprep.mubr.msk.f32.mxu0 %vm23495_vm0, %v23496_v8  ;;  %22380 = vmatpush3.bf16.msra.mxu1 %v25419_v40 }
 0x565   :  { %v11083_v18 = vsub.f32 %v11081_v41, %v11082_v46  ;;  %v22393_v43 = vpack.c.bf16 %v11082_v46, %v11075_v44 }
 0x567   :  { %20906 = vmatmul.mubr.f32.vlgmr.msra.gmra.mrb[24].mxu0 %v10502_v11  ;;  %v11084_v14 = vand.u32 4294901760, %v11083_v18 }
 0x568   :  { %22364 = vmatpush3.bf16.msra.mxu0 %v22363_v48  ;;  %20908 = vmatprep.mubr.msk.f32.mxu0 %vm23495_vm0, %v23496_v8  ;;  %v12588_v48 = vpop.permute.xlu1 %12587 }
 0x569   :  { %22365 = vmatprep.subr.bf16.mxu0 %v23494_v3  ;;  %v22381_v57 = vpack.c.bf16 %v11084_v14, %v11077_v27 }
 0x56b   :  { %20909 = vmatmul.mubr.f32.gmra.mrb[26].mxu0 %v10512_v31  ;;  %22382 = vmatprep.subr.bf16.mxu1 %v22381_v57  ;;  %v18491_v31 = vld [vmem:[%s26676_s3 + $0x68] sm:$0xff] }
 0x56c   :  { %20911 = vmatprep.mubr.msk.f32.mxu0 %vm23495_vm0, %v23496_v8 }
 0x56f   :  { %20912 = vmatmul.mubr.f32.gmra.mrb[28].mxu0 %v10522_v4  ;;  %v12604_v4 = vand.u32 4294901760, %v12588_v48 }
 0x570   :  { %20918 = vmatprep.mubr.msk.f32.mxu0 %vm23495_vm0, %v23496_v8 }
 0x571   :  { %v25500_v52 = vsub.f32 %v12588_v48, %v12604_v4 }
 0x573   :  { %20919 = vmatmul.mubr.f32.vlgmr.msra.gmra.mrb[24].mxu0 %v25349_v61  ;;  %v12707_v41 = vand.u32 4294901760, %v25500_v52 }
 0x574   :  { %22367 = vmatpush3.bf16.msra.mxu0 %v22366_v6  ;;  %20921 = vmatprep.mubr.msk.f32.mxu0 %vm23495_vm0, %v23496_v8 }
 0x575   :  { %22368 = vmatprep.subr.bf16.mxu0 %v23494_v3  ;;  %v12708_v27 = vsub.f32 %v25500_v52, %v12707_v41 }
 0x577   :  { %20922 = vmatmul.mubr.f32.gmra.mrb[26].mxu0 %v25359_v12 }
 0x578   :  { %20924 = vmatprep.mubr.msk.f32.mxu0 %vm23495_vm0, %v23496_v8 }
 0x57b   :  { %20925 = vmatmul.mubr.f32.gmra.mrb[28].mxu0 %v25368_v37 }
 0x57c   :  { %20931 = vmatprep.mubr.msk.f32.mxu0 %vm23495_vm0, %v23496_v8 }
 0x57f   :  { %20932 = vmatmul.mubr.f32.vlgmr.msra.gmra.mrb[24].mxu0 %v10499_v34  ;;  %v18488_v34 = vld [vmem:[%s26675_s2 + $0x40] sm:$0xff] }
 0x580   :  { %22370 = vmatpush3.bf16.msra.mxu0 %v25364_v21  ;;  %20934 = vmatprep.mubr.msk.f32.mxu0 %vm23495_vm0, %v23496_v8 }
 0x581   :  { %22371 = vmatprep.subr.bf16.mxu0 %v23494_v3 }
 0x583   :  { %20935 = vmatmul.mubr.f32.gmra.mrb[26].mxu0 %v10509_v26 }
 0x584   :  { %20937 = vmatprep.mubr.msk.f32.mxu0 %vm23495_vm0, %v23496_v8 }
 0x587   :  { %20938 = vmatmul.mubr.f32.gmra.mrb[28].mxu0 %v10519_v29 }
 0x588   :  { %20944 = vmatprep.mubr.msk.f32.mxu0 %vm23495_vm0, %v23496_v8 }
 0x58b   :  { %20945 = vmatmul.mubr.f32.vlgmr.msra.gmra.mrb[24].mxu0 %v10500_v2 }
 0x58c   :  { %22373 = vmatpush3.bf16.msra.mxu0 %v22372_v54  ;;  %20947 = vmatprep.mubr.msk.f32.mxu0 %vm23495_vm0, %v23496_v8  ;;  %v12595_v54 = vsel %vm2852_vm3, %v18491_v31, 0 }
 0x58d   :  { %22374 = vmatprep.subr.bf16.mxu0 %v23494_v3 }
 0x58f   :  { %20948 = vmatmul.mubr.f32.gmra.mrb[26].mxu0 %v10510_v36 }
 0x590   :  { %20950 = vmatprep.mubr.msk.f32.mxu0 %vm23495_vm0, %v23496_v8 }
 0x593   :  { %20951 = vmatmul.mubr.f32.gmra.mrb[28].mxu0 %v10520_v24  ;;  %v12586_v24 = vpop.permute.xlu0 %12585 }
 0x594   :  { %20957 = vmatprep.mubr.msk.f32.mxu0 %vm23495_vm0, %v23496_v8  ;;  %v12601_v62 = vand.u32 4294901760, %v12586_v24 }
 0x596   :  { %v25498_v60 = vsub.f32 %v12586_v24, %v12601_v62 }
 0x597   :  { %20958 = vmatmul.mubr.f32.vlgmr.msra.gmra.mrb[24].mxu0 %v25349_v61 }
 0x598   :  { %22376 = vmatpush3.bf16.msra.mxu0 %v25364_v21  ;;  %20960 = vmatprep.mubr.msk.f32.mxu0 %vm23495_vm0, %v23496_v8  ;;  %v12062_v21 = vsel %vm1193_vm2, %v18489_v5, 0  ;;  %v12700_v58 = vand.u32 4294901760, %v25498_v60 }
 0x599   :  { %22401 = vmatprep.subr.bf16.mxu0 %v23494_v3  ;;  %v25459_v2 = vand.u32 4294901760, %v12062_v21 }
 0x59a   :  { %v12701_v18 = vsub.f32 %v25498_v60, %v12700_v58 }
 0x59b   :  { %20961 = vmatmul.mubr.f32.gmra.mrb[26].mxu0 %v25359_v12  ;;  %v12143_v20 = vsub.f32 %v12062_v21, %v25459_v2 }
 0x59c   :  { %20963 = vmatprep.mubr.msk.f32.mxu0 %vm23495_vm0, %v23496_v8 }
 0x59d   :  { %v12144_v36 = vand.u32 4294901760, %v12143_v20 }
 0x59f   :  { %20964 = vmatmul.mubr.f32.gmra.mrb[28].mxu0 %v25368_v37  ;;  %v12145_v28 = vsub.f32 %v12143_v20, %v12144_v36 }
 0x5a0   :  { %20970 = vmatprep.mubr.msk.f32.mxu0 %vm23495_vm0, %v23496_v8 }
 0x5a1   :  { %v12146_v11 = vand.u32 4294901760, %v12145_v28 }
 0x5a3   :  { %20971 = vmatmul.mubr.f32.vlgmr.msra.gmra.mrb[24].mxu0 %v25349_v61 }
 0x5a4   :  { %20973 = vmatprep.mubr.msk.f32.mxu0 %vm23495_vm0, %v23496_v8 }
 0x5a7   :  { %20974 = vmatmul.mubr.f32.gmra.mrb[26].mxu0 %v25359_v12  ;;  %v12059_v12 = vsel %vm1193_vm2, %v18488_v34, 0 }
 0x5a8   :  { %20976 = vmatprep.mubr.msk.f32.mxu0 %vm23495_vm0, %v23496_v8  ;;  %v25454_v63 = vand.u32 4294901760, %v12059_v12 }
 0x5aa   :  { %v12133_v51 = vsub.f32 %v12059_v12, %v25454_v63 }
 0x5ab   :  { %20977 = vmatmul.mubr.f32.gmra.mrb[28].mxu0 %v25368_v37  ;;  %v25462_v37 = vand.u32 4294901760, %v25334_v33 }
 0x5ac   :  { %21025 = vmatprep.mubr.msk.f32.mxu0 %vm23495_vm0, %v23496_v8  ;;  %v12134_v26 = vand.u32 4294901760, %v12133_v51 }
 0x5ad   :  { %v12168_v10 = vsub.f32 %v25334_v33, %v25462_v37 }
 0x5ae   :  { %v12135_v7 = vsub.f32 %v12133_v51, %v12134_v26 }
 0x5af   :  { %v12169_v59 = vand.u32 4294901760, %v12168_v10 }
 0x5b0   :  { %v12136_v29 = vand.u32 4294901760, %v12135_v7 }
 0x5b1   :  { %v12170_v19 = vsub.f32 %v12168_v10, %v12169_v59 }
 0x5b3   :  { %v12171_v33 = vand.u32 4294901760, %v12170_v19 }
 0x60a   :  { %v20900_v39 = vpop.f32.mrb[30].mxu1 }
 0x60b   :  { %v10411_v35 = vmax.f32 %v20900_v39, 0.0  ;;  %v10400_v9 = vpop.f32.mrb[31].mxu1  ;;  %v22444_v39 = vpack.c.bf16 %v12604_v4, %v12601_v62  ;;  %v2308_v62 = vld [vmem:[%s26684_s11 + $0x40] sm:$0xff]  ;;  %v2309_v4 = vld [vmem:[%s26684_s11 + $0x48] sm:$0xff] }
 0x60c   :  { %v10410_v45 = vmax.f32 %v10400_v9, 0.0 }
 0x60d   :  { %v10983_v13 = vsel %vm2852_vm3, %v10411_v35, 0 }
 0x60e   :  { %v11062_v55 = vand.u32 4294901760, %v10983_v13  ;;  %v10980_v25 = vsel %vm2852_vm3, %v10410_v45, 0 }
 0x60f   :  { %v11052_v32 = vand.u32 4294901760, %v10980_v25 }
 0x610   :  { %v11063_v15 = vsub.f32 %v10983_v13, %v11062_v55 }
 0x611   :  { %v11053_v53 = vsub.f32 %v10980_v25, %v11052_v32 }
 0x612   :  { %v11064_v1 = vand.u32 4294901760, %v11063_v15 }
 0x613   :  { %v11054_v61 = vand.u32 4294901760, %v11053_v53 }
 0x614   :  { %v11065_v38 = vsub.f32 %v11063_v15, %v11064_v1 }
 0x615   :  { %v11055_v56 = vsub.f32 %v11053_v53, %v11054_v61 }
 0x616   :  { %v11066_v16 = vand.u32 4294901760, %v11065_v38 }
 0x617   :  { %v11056_v42 = vand.u32 4294901760, %v11055_v56  ;;  %v22450_v56 = vpack.c.bf16 %v25500_v52, %v25498_v60  ;;  %v13155_v60 = vand.u32 4294901760, %v2308_v62  ;;  %v13158_v52 = vand.u32 4294901760, %v2309_v4 }
 0x619   :  { %20983 = vmatprep.mubr.f32.mxu1 %v11056_v42 }
 0x61a   :  { %20984 = vmatmul.mubr.f32.vlgmr.msra.gmra.mrb[12].mxu1 %v11066_v16  ;;  %v22456_v16 = vpack.c.bf16 %v12707_v41, %v12700_v58  ;;  %v25626_v58 = vpack.c.bf16 %v13158_v52, %v13155_v60 }
 0x61b   :  { %20990 = vmatprep.mubr.f32.mxu1 %v11052_v32  ;;  %22384 = vmatpush3.bf16.msra.mxu1 %v22381_v57 }
 0x61c   :  { %22386 = vmatprep.subr.bf16.mxu1 %v22385_v17 }
 0x622   :  { %20991 = vmatmul.mubr.f32.vlgmr.msra.gmra.mrb[12].mxu1 %v11062_v55 }
 0x623   :  { %20997 = vmatprep.mubr.f32.mxu1 %v11053_v53  ;;  %22388 = vmatpush3.bf16.msra.mxu1 %v22385_v17 }
 0x624   :  { %22390 = vmatprep.subr.bf16.mxu1 %v25419_v40 }
 0x62a   :  { %20998 = vmatmul.mubr.f32.vlgmr.msra.gmra.mrb[12].mxu1 %v11063_v15 }
 0x62b   :  { %21004 = vmatprep.mubr.f32.mxu1 %v11054_v61  ;;  %22392 = vmatpush3.bf16.msra.mxu1 %v25419_v40 }
 0x62c   :  { %22394 = vmatprep.subr.bf16.mxu1 %v22393_v43 }
 0x632   :  { %21005 = vmatmul.mubr.f32.vlgmr.msra.gmra.mrb[12].mxu1 %v11064_v1 }
 0x633   :  { %21011 = vmatprep.mubr.f32.mxu1 %v11052_v32  ;;  %22396 = vmatpush3.bf16.msra.mxu1 %v22393_v43  ;;  %v12702_v43 = vand.u32 4294901760, %v12701_v18 }
 0x634   :  { %22398 = vmatprep.subr.bf16.mxu1 %v25419_v40 }
 0x63a   :  { %21012 = vmatmul.mubr.f32.vlgmr.msra.gmra.mrb[12].mxu1 %v11062_v55 }
 0x63b   :  { %22400 = vmatpush3.bf16.msra.mxu1 %v25419_v40  ;;  %21018 = vmatprep.mubr.f32.mxu1 %v11052_v32  ;;  %v25505_v40 = vand.u32 4294901760, %v12595_v54 }
 0x63c   :  { %22420 = vmatprep.subr.bf16.mxu1 %v24273_v22 }
 0x63d   :  { %v12678_v46 = vsub.f32 %v12595_v54, %v25505_v40 }
 0x63f   :  { %v12679_v57 = vand.u32 4294901760, %v12678_v46 }
 0x641   :  { %v12680_v9 = vsub.f32 %v12678_v46, %v12679_v57 }
 0x642   :  { %21019 = vmatmul.mubr.f32.vlgmr.msra.gmra.mrb[12].mxu1 %v11062_v55 }
 0x643   :  { %22422 = vmatpush3.bf16.msra.mxu1 %v24273_v22  ;;  %21105 = vmatprep.mubr.f32.mxu1 %v12136_v29  ;;  %v12681_v55 = vand.u32 4294901760, %v12680_v9 }
 0x644   :  { %21103 = vmatprep.subr.mxu1 %v25462_v37 }
 0x647   :  { %21104 = vmatpush3.msra.mxu1 %v25462_v37 }
 0x648   :  { %21106 = vmatmul.mubr.f32.vlgmr.msra.gmra.mrb[32].mxu1 %v12146_v11  ;;  %22424 = vmatprep.subr.bf16.mxu1 %v24279_v49 }
 0x649   :  { %22426 = vmatpush3.bf16.msra.mxu1 %v24279_v49  ;;  %21114 = vmatprep.mubr.f32.mxu1 %v25454_v63  ;;  %v18490_v49 = vld [vmem:[%s26676_s3 + $0x60] sm:$0xff] }
 0x64a   :  { %21112 = vmatprep.subr.mxu1 %v12171_v33 }
 0x64d   :  { %21113 = vmatpush3.msra.mxu1 %v12171_v33 }
 0x64e   :  { %22428 = vmatprep.subr.bf16.mxu1 %v24277_v47 }
 0x650   :  { %21115 = vmatmul.mubr.f32.vlgmr.msra.gmra.mrb[32].mxu1 %v25459_v2 }
 0x651   :  { %22430 = vmatpush3.bf16.msra.mxu1 %v24277_v47  ;;  %21123 = vmatprep.mubr.f32.mxu1 %v12133_v51  ;;  %v12592_v47 = vsel %vm2852_vm3, %v18490_v49, 0 }
 0x652   :  { %21121 = vmatprep.subr.mxu1 %v12168_v10  ;;  %v25490_v6 = vand.u32 4294901760, %v12592_v47 }
 0x654   :  { %v25503_v0 = vsub.f32 %v12592_v47, %v25490_v6 }
 0x655   :  { %21122 = vmatpush3.msra.mxu1 %v12168_v10  ;;  %v2318_v10 = vld [vmem:[%s26685_s12 + $0x30] sm:$0xff] }
 0x656   :  { %22432 = vmatprep.subr.bf16.mxu1 %v24273_v22  ;;  %v12669_v44 = vand.u32 4294901760, %v25503_v0  ;;  %v11499_v29 = vand.u32 4294901760, %v2318_v10 }
 0x658   :  { %21124 = vmatmul.mubr.f32.vlgmr.msra.gmra.mrb[32].mxu1 %v12143_v20  ;;  %v12670_v14 = vsub.f32 %v25503_v0, %v12669_v44  ;;  %v25612_v48 = vsub.f32 %v2318_v10, %v11499_v29  ;;  %v14220_v10 = vld [vmem:[%s26688_s15 + $0x18] sm:$0xff] }
 0x659   :  { %22434 = vmatpush3.bf16.msra.mxu1 %v24273_v22  ;;  %21132 = vmatprep.mubr.f32.mxu1 %v12134_v26 }
 0x65a   :  { %21130 = vmatprep.subr.mxu1 %v25462_v37  ;;  %v12671_v35 = vand.u32 4294901760, %v12670_v14 }
 0x65d   :  { %21131 = vmatpush3.msra.mxu1 %v25462_v37 }
 0x65e   :  { %22436 = vmatprep.subr.bf16.mxu1 %v24281_v50 }
 0x660   :  { %21133 = vmatmul.mubr.f32.vlgmr.msra.gmra.mrb[32].mxu1 %v12144_v36  ;;  %v2319_v36 = vld [vmem:[%s26685_s12 + $0x38] sm:$0xff] }
 0x661   :  { %22438 = vmatpush3.bf16.msra.mxu1 %v24281_v50  ;;  %21141 = vmatprep.mubr.f32.mxu1 %v25454_v63  ;;  %v12598_v50 = vsel %vm2852_vm3, %v18492_v30, 0  ;;  %v11502_v28 = vand.u32 4294901760, %v2319_v36 }
 0x662   :  { %21139 = vmatprep.subr.mxu1 %v12169_v59  ;;  %v25514_v23 = vand.u32 4294901760, %v12598_v50 }
 0x663   :  { %v25604_v19 = vpack.c.bf16 %v11502_v28, %v11499_v29  ;;  %v11604_v47 = vsub.f32 %v2319_v36, %v11502_v28  ;;  %v14219_v36 = vld [vmem:[%s26688_s15 + $0x10] sm:$0xff] }
 0x664   :  { %v12688_v17 = vsub.f32 %v12598_v50, %v25514_v23 }
 0x665   :  { %21140 = vmatpush3.msra.mxu1 %v12169_v59  ;;  %22403 = vmatpush3.bf16.msra.mxu0 %v25604_v19  ;;  %v11605_v54 = vand.u32 4294901760, %v11604_v47 }
 0x666   :  { %22440 = vmatprep.subr.bf16.mxu1 %v24273_v22  ;;  %v12689_v45 = vand.u32 4294901760, %v12688_v17  ;;  %22404 = vmatprep.subr.bf16.mxu0 %v23494_v3 }
 0x667   :  { %v11606_v50 = vsub.f32 %v11604_v47, %v11605_v54 }
 0x668   :  { %21142 = vmatmul.mubr.f32.vlgmr.msra.gmra.mrb[32].mxu1 %v25459_v2  ;;  %v12690_v25 = vsub.f32 %v12688_v17, %v12689_v45 }
 0x669   :  { %22442 = vmatpush3.bf16.msra.mxu1 %v24273_v22  ;;  %21150 = vmatprep.mubr.f32.mxu1 %v25454_v63  ;;  %v12709_v22 = vand.u32 4294901760, %v12708_v27  ;;  %v11607_v18 = vand.u32 4294901760, %v11606_v50 }
 0x66a   :  { %21148 = vmatprep.subr.mxu1 %v25462_v37  ;;  %v12691_v53 = vand.u32 4294901760, %v12690_v25 }
 0x66b   :  { %v22447_v13 = vpack.c.bf16 %v12709_v22, %v12702_v43 }
 0x66d   :  { %21149 = vmatpush3.msra.mxu1 %v25462_v37 }
 0x66e   :  { %22443 = vmatprep.subr.bf16.mxu1 %v23494_v3 }
 0x670   :  { %21151 = vmatmul.mubr.f32.vlgmr.msra.gmra.mrb[32].mxu1 %v25459_v2 }
 0x671   :  { %22445 = vmatpush3.bf16.msra.mxu1 %v22444_v39  ;;  %21157 = vmatprep.mubr.msk.f32.mxu1 %vm23495_vm0, %v23496_v8 }
 0x672   :  { %22446 = vmatprep.subr.bf16.mxu1 %v23494_v3 }
 0x674   :  { %21158 = vmatmul.mubr.f32.vlgmr.msra.gmra.mrb[34].mxu1 %v12671_v35 }
 0x675   :  { %22448 = vmatpush3.bf16.msra.mxu1 %v22447_v13  ;;  %21160 = vmatprep.mubr.msk.f32.mxu1 %vm23495_vm0, %v23496_v8 }
 0x676   :  { %22449 = vmatprep.subr.bf16.mxu1 %v23494_v3  ;;  %v10960_v32 = vpop.f32.mrb[24].mxu0 }
 0x677   :  { %v20972_v15 = vpop.f32.mrb[25].mxu0  ;;  %v10976_v34 = vmax.f32 %v10960_v32, 0.0  ;;  %v2320_v32 = vld [vmem:[%s26685_s12 + $0x40] sm:$0xff] }
 0x678   :  { %21161 = vmatmul.mubr.f32.gmra.mrb[36].mxu1 %v12681_v55  ;;  %v2321_v15 = vld [vmem:[%s26685_s12 + $0x48] sm:$0xff] }
 0x679   :  { %21163 = vmatprep.mubr.msk.f32.mxu1 %vm23495_vm0, %v23496_v8  ;;  %v11490_v12 = vsel %vm2852_vm3, %v10976_v34, 0 }
 0x67a   :  { %v10966_v1 = vpop.f32.mrb[26].mxu0  ;;  %v25579_v5 = vand.u32 4294901760, %v11490_v12 }
 0x67b   :  { %v20975_v61 = vpop.f32.mrb[27].mxu0  ;;  %v10977_v63 = vmax.f32 %v10966_v1, 0.0  ;;  %v13671_v1 = vand.u32 4294901760, %v2321_v15 }
 0x67c   :  { %21164 = vmatmul.mubr.f32.gmra.mrb[38].mxu1 %v12691_v53  ;;  %v25583_v21 = vsub.f32 %v11490_v12, %v25579_v5  ;;  %v13668_v53 = vand.u32 4294901760, %v2320_v32 }
 0x67d   :  { %21170 = vmatprep.mubr.msk.f32.mxu1 %vm23495_vm0, %v23496_v8  ;;  %v11493_v51 = vsel %vm2852_vm3, %v10977_v63, 0 }
 0x67e   :  { %v10972_v38 = vpop.f32.mrb[28].mxu0  ;;  %v11567_v26 = vand.u32 4294901760, %v25583_v21  ;;  %v25587_v37 = vand.u32 4294901760, %v11493_v51  ;;  %v25697_v61 = vpack.c.bf16 %v13671_v1, %v13668_v53 }
 0x67f   :  { %v20978_v42 = vpop.f32.mrb[29].mxu0  ;;  %v10978_v2 = vmax.f32 %v10972_v38, 0.0  ;;  %v25704_v38 = vsub.f32 %v2320_v32, %v13668_v53 }
 0x680   :  { %21171 = vmatmul.mubr.f32.vlgmr.msra.gmra.mrb[34].mxu1 %v25490_v6  ;;  %v11568_v7 = vsub.f32 %v25583_v21, %v11567_v26  ;;  %v25600_v59 = vsub.f32 %v11493_v51, %v25587_v37 }
 0x681   :  { %22451 = vmatpush3.bf16.msra.mxu1 %v22450_v56  ;;  %21173 = vmatprep.mubr.msk.f32.mxu1 %vm23495_vm0, %v23496_v8  ;;  %v11496_v20 = vsel %vm2852_vm3, %v10978_v2, 0  ;;  %v25706_v56 = vsub.f32 %v2321_v15, %v13671_v1  ;;  %v13767_v42 = vand.u32 4294901760, %v25704_v38 }
 0x682   :  { %22452 = vmatprep.subr.bf16.mxu1 %v23494_v3  ;;  %v25602_v11 = vand.u32 4294901760, %v11496_v20  ;;  %v11569_v33 = vand.u32 4294901760, %v11568_v7  ;;  %v11577_v24 = vand.u32 4294901760, %v25600_v59 }
 0x683   :  { %v13768_v34 = vsub.f32 %v25704_v38, %v13767_v42  ;;  %v22492_v51 = vpack.c.bf16 %v25706_v56, %v25704_v38  ;;  %v14215_v38 = vlaneseq }
 0x684   :  { %21174 = vmatmul.mubr.f32.gmra.mrb[36].mxu1 %v25505_v40  ;;  %v25608_v49 = vsub.f32 %v11496_v20, %v25602_v11  ;;  %21026 = vmatmul.mubr.f32.vlgmr.msra.gmra.mrb[18].mxu0 %v11569_v33  ;;  %v11578_v31 = vsub.f32 %v25600_v59, %v11577_v24  ;;  %v14218_v20 = vld [vmem:[%s26688_s15 + $0x8] sm:$0xff] }
 0x685   :  { %21176 = vmatprep.mubr.msk.f32.mxu1 %vm23495_vm0, %v23496_v8  ;;  %21028 = vmatprep.mubr.msk.f32.mxu0 %vm23495_vm0, %v23496_v8 }
 0x686   :  { %v11579_v30 = vand.u32 4294901760, %v11578_v31 }
 0x688   :  { %21177 = vmatmul.mubr.f32.gmra.mrb[38].mxu1 %v25514_v23  ;;  %21029 = vmatmul.mubr.f32.gmra.mrb[20].mxu0 %v11579_v30 }
 0x689   :  { %21183 = vmatprep.mubr.msk.f32.mxu1 %vm23495_vm0, %v23496_v8  ;;  %21031 = vmatprep.mubr.msk.f32.mxu0 %vm23495_vm0, %v23496_v8 }
 0x68c   :  { %21184 = vmatmul.mubr.f32.vlgmr.msra.gmra.mrb[34].mxu1 %v25503_v0  ;;  %v11587_v0 = vand.u32 4294901760, %v25608_v49 }
 0x68d   :  { %22454 = vmatpush3.bf16.msra.mxu1 %v22444_v39  ;;  %21186 = vmatprep.mubr.msk.f32.mxu1 %vm23495_vm0, %v23496_v8 }
 0x68e   :  { %22455 = vmatprep.subr.bf16.mxu1 %v23494_v3  ;;  %v11588_v41 = vsub.f32 %v25608_v49, %v11587_v0 }
 0x690   :  { %21187 = vmatmul.mubr.f32.gmra.mrb[36].mxu1 %v12678_v46  ;;  %v13250_v46 = vsub.f32 %v2309_v4, %v13158_v52  ;;  %v11589_v27 = vand.u32 4294901760, %v11588_v41  ;;  %v14224_v4 = vld [vmem:[%s26688_s15 + $0x38] sm:$0xff]  ;;  %v14266_v52 = vld [vmem:[%s26689_s16 + $0x8] sm:$0xff] }
 0x691   :  { %21189 = vmatprep.mubr.msk.f32.mxu1 %vm23495_vm0, %v23496_v8  ;;  %v14268_v41 = vld [vmem:[%s26689_s16 + $0x18] sm:$0xff] }
 0x692   :  { %21032 = vmatmul.mubr.f32.gmra.mrb[22].mxu0 %v11589_v27  ;;  %v14271_v27 = vld [vmem:[%s26689_s16 + $0x30] sm:$0xff] }
 0x693   :  { %21038 = vmatprep.mubr.msk.f32.mxu0 %vm23495_vm0, %v23496_v8 }
 0x694   :  { %21190 = vmatmul.mubr.f32.gmra.mrb[38].mxu1 %v12688_v17 }
 0x695   :  { %21196 = vmatprep.mubr.msk.f32.mxu1 %vm23495_vm0, %v23496_v8 }
 0x698   :  { %21197 = vmatmul.mubr.f32.vlgmr.msra.gmra.mrb[34].mxu1 %v12669_v44  ;;  %v13243_v44 = vsub.f32 %v2308_v62, %v13155_v60 }
 0x699   :  { %22457 = vmatpush3.bf16.msra.mxu1 %v22456_v16  ;;  %21199 = vmatprep.mubr.msk.f32.mxu1 %vm23495_vm0, %v23496_v8  ;;  %v13774_v16 = vand.u32 4294901760, %v25706_v56 }
 0x69a   :  { %22458 = vmatprep.subr.bf16.mxu1 %v23494_v3  ;;  %v13244_v14 = vand.u32 4294901760, %v13243_v44  ;;  %v25646_v13 = vpack.c.bf16 %v13250_v46, %v13243_v44 }
 0x69b   :  { %v13775_v12 = vsub.f32 %v25706_v56, %v13774_v16  ;;  %v25716_v2 = vpack.c.bf16 %v13774_v16, %v13767_v42  ;;  %v25821_v56 = vand.u32 127, %v14215_v38 }
 0x69c   :  { %21200 = vmatmul.mubr.f32.gmra.mrb[36].mxu1 %v12679_v57  ;;  %v13251_v57 = vand.u32 4294901760, %v13250_v46  ;;  %v13245_v43 = vsub.f32 %v13243_v44, %v13244_v14  ;;  %v14267_v44 = vld [vmem:[%s26689_s16 + $0x10] sm:$0xff] }
 0x69d   :  { %21202 = vmatprep.mubr.msk.f32.mxu1 %vm23495_vm0, %v23496_v8  ;;  %v13776_v63 = vand.u32 4294901760, %v13775_v12 }
 0x69e   :  { %v13246_v22 = vand.u32 4294901760, %v13245_v43  ;;  %v25663_v55 = vpack.c.bf16 %v13251_v57, %v13244_v14 }
 0x6a0   :  { %21203 = vmatmul.mubr.f32.gmra.mrb[38].mxu1 %v12689_v45  ;;  %v22408_v45 = vpack.c.bf16 %v11604_v47, %v25612_v48 }
 0x6a1   :  { %21209 = vmatprep.mubr.msk.f32.mxu1 %vm23495_vm0, %v23496_v8 }
 0x6a4   :  { %21210 = vmatmul.mubr.f32.vlgmr.msra.gmra.mrb[34].mxu1 %v25490_v6 }
 0x6a5   :  { %22460 = vmatpush3.bf16.msra.mxu1 %v22444_v39  ;;  %21212 = vmatprep.mubr.msk.f32.mxu1 %vm23495_vm0, %v23496_v8  ;;  %v13252_v39 = vsub.f32 %v13250_v46, %v13251_v57  ;;  %v14270_v46 = vld [vmem:[%s26689_s16 + $0x28] sm:$0xff] }
 0x6a6   :  { %22462 = vmatprep.subr.bf16.mxu1 %v25626_v58 }
 0x6a7   :  { %v13253_v35 = vand.u32 4294901760, %v13252_v39 }
 0x6a8   :  { %21213 = vmatmul.mubr.f32.gmra.mrb[36].mxu1 %v25505_v40 }
 0x6a9   :  { %21215 = vmatprep.mubr.msk.f32.mxu1 %vm23495_vm0, %v23496_v8  ;;  %v25637_v9 = vpack.c.bf16 %v13253_v35, %v13246_v22 }
 0x6ac   :  { %21216 = vmatmul.mubr.f32.gmra.mrb[38].mxu1 %v25514_v23 }
 0x6ad   :  { %21222 = vmatprep.mubr.msk.f32.mxu1 %vm23495_vm0, %v23496_v8 }
 0x6b0   :  { %21223 = vmatmul.mubr.f32.vlgmr.msra.gmra.mrb[34].mxu1 %v25490_v6  ;;  %v11598_v6 = vand.u32 4294901760, %v25612_v48 }
 0x6b1   :  { %21225 = vmatprep.mubr.msk.f32.mxu1 %vm23495_vm0, %v23496_v8  ;;  %22464 = vmatpush3.bf16.msra.mxu1 %v25626_v58 }
 0x6b2   :  { %22466 = vmatprep.subr.bf16.mxu1 %v25637_v9  ;;  %v22414_v25 = vpack.c.bf16 %v11605_v54, %v11598_v6 }
 0x6b4   :  { %21226 = vmatmul.mubr.f32.gmra.mrb[36].mxu1 %v25505_v40  ;;  %v11599_v40 = vsub.f32 %v25612_v48, %v11598_v6  ;;  %v14223_v6 = vld [vmem:[%s26688_s15 + $0x30] sm:$0xff] }
 0x6b5   :  { %21228 = vmatprep.mubr.msk.f32.mxu1 %vm23495_vm0, %v23496_v8 }
 0x6b8   :  { %21229 = vmatmul.mubr.f32.gmra.mrb[38].mxu1 %v25514_v23  ;;  %v11600_v23 = vand.u32 4294901760, %v11599_v40 }
 0x6ba   :  { %v22405_v17 = vpack.c.bf16 %v11607_v18, %v11600_v23  ;;  %v14269_v23 = vld [vmem:[%s26689_s16 + $0x20] sm:$0xff]  ;;  %v14272_v18 = vld [vmem:[%s26689_s16 + $0x38] sm:$0xff] }
 0x6bc   :  { %22406 = vmatpush3.bf16.msra.mxu0 %v22405_v17 }
 0x6bd   :  { %22407 = vmatprep.subr.bf16.mxu0 %v23494_v3 }
 0x6bf   :  { %21039 = vmatmul.mubr.f32.vlgmr.msra.gmra.mrb[18].mxu0 %v25579_v5 }
 0x6c0   :  { %21041 = vmatprep.mubr.msk.f32.mxu0 %vm23495_vm0, %v23496_v8  ;;  %22409 = vmatpush3.bf16.msra.mxu0 %v22408_v45 }
 0x6c1   :  { %22410 = vmatprep.subr.bf16.mxu0 %v23494_v3 }
 0x6c3   :  { %21042 = vmatmul.mubr.f32.gmra.mrb[20].mxu0 %v25587_v37 }
 0x6c4   :  { %21044 = vmatprep.mubr.msk.f32.mxu0 %vm23495_vm0, %v23496_v8 }
 0x6c7   :  { %21045 = vmatmul.mubr.f32.gmra.mrb[22].mxu0 %v25602_v11 }
 0x6c8   :  { %21051 = vmatprep.mubr.msk.f32.mxu0 %vm23495_vm0, %v23496_v8 }
 0x6cb   :  { %21052 = vmatmul.mubr.f32.vlgmr.msra.gmra.mrb[18].mxu0 %v25583_v21 }
 0x6cc   :  { %21054 = vmatprep.mubr.msk.f32.mxu0 %vm23495_vm0, %v23496_v8  ;;  %22412 = vmatpush3.bf16.msra.mxu0 %v25604_v19 }
 0x6cd   :  { %22413 = vmatprep.subr.bf16.mxu0 %v23494_v3 }
 0x6cf   :  { %21055 = vmatmul.mubr.f32.gmra.mrb[20].mxu0 %v25600_v59 }
 0x6d0   :  { %21057 = vmatprep.mubr.msk.f32.mxu0 %vm23495_vm0, %v23496_v8 }
 0x6d3   :  { %21058 = vmatmul.mubr.f32.gmra.mrb[22].mxu0 %v25608_v49  ;;  %v14222_v49 = vld [vmem:[%s26688_s15 + $0x28] sm:$0xff] }
 0x6d4   :  { %21064 = vmatprep.mubr.msk.f32.mxu0 %vm23495_vm0, %v23496_v8 }
 0x6d7   :  { %21065 = vmatmul.mubr.f32.vlgmr.msra.gmra.mrb[18].mxu0 %v11567_v26  ;;  %v23501_v26 = vmov 0  }
 0x6d8   :  { %21067 = vmatprep.mubr.msk.f32.mxu0 %vm23495_vm0, %v23496_v8  ;;  %22415 = vmatpush3.bf16.msra.mxu0 %v22414_v25 }
 0x6d9   :  { %22416 = vmatprep.subr.bf16.mxu0 %v23494_v3  ;;  %23469 = vset.pattern.permute.xlu1 %v23501_v26 }
 0x6da   :  { %23468 = vset.pattern.permute.xlu0 %v23501_v26  ;;  %14229 = vperm.xlu1 %23469, %v14218_v20  }
 0x6db   :  { %21068 = vmatmul.mubr.f32.gmra.mrb[20].mxu0 %v11577_v24  ;;  %v14221_v24 = vld [vmem:[%s26688_s15 + $0x20] sm:$0xff] }
 0x6dc   :  { %21070 = vmatprep.mubr.msk.f32.mxu0 %vm23495_vm0, %v23496_v8 }
 0x6de   :  { %14232 = vperm.xlu1 %23469, %v14219_v36  }
 0x6df   :  { %21071 = vmatmul.mubr.f32.gmra.mrb[22].mxu0 %v11587_v0  ;;  %v14265_v0 = vld [vmem:[%s26689_s16] sm:$0xff] }
 0x6e0   :  { %21077 = vmatprep.mubr.msk.f32.mxu0 %vm23495_vm0, %v23496_v8 }
 0x6e2   :  { %14238 = vperm.xlu1 %23469, %v14221_v24  }
 0x6e3   :  { %21078 = vmatmul.mubr.f32.vlgmr.msra.gmra.mrb[18].mxu0 %v25579_v5 }
 0x6e4   :  { %21080 = vmatprep.mubr.msk.f32.mxu0 %vm23495_vm0, %v23496_v8  ;;  %22418 = vmatpush3.bf16.msra.mxu0 %v25604_v19 }
 0x6e5   :  { %22485 = vmatprep.subr.bf16.mxu0 %v23494_v3 }
 0x6e6   :  { %14244 = vperm.xlu1 %23469, %v14223_v6  }
 0x6e7   :  { %21081 = vmatmul.mubr.f32.gmra.mrb[20].mxu0 %v25587_v37 }
 0x6e8   :  { %21083 = vmatprep.mubr.msk.f32.mxu0 %vm23495_vm0, %v23496_v8 }
 0x6ea   :  { %14274 = vperm.xlu1 %23469, %v14265_v0  }
 0x6eb   :  { %21084 = vmatmul.mubr.f32.gmra.mrb[22].mxu0 %v25602_v11 }
 0x6ec   :  { %21090 = vmatprep.mubr.msk.f32.mxu0 %vm23495_vm0, %v23496_v8 }
 0x6ee   :  { %14280 = vperm.xlu1 %23469, %v14267_v44  }
 0x6ef   :  { %21091 = vmatmul.mubr.f32.vlgmr.msra.gmra.mrb[18].mxu0 %v25579_v5  ;;  %v13769_v5 = vand.u32 4294901760, %v13768_v34 }
 0x6f0   :  { %21093 = vmatprep.mubr.msk.f32.mxu0 %vm23495_vm0, %v23496_v8  ;;  %22487 = vmatpush3.bf16.msra.mxu0 %v25697_v61 }
 0x6f1   :  { %22488 = vmatprep.subr.bf16.mxu0 %v23494_v3  ;;  %v25712_v21 = vpack.c.bf16 %v13776_v63, %v13769_v5 }
 0x6f2   :  { %14286 = vperm.xlu1 %23469, %v14269_v23  }
 0x6f3   :  { %21094 = vmatmul.mubr.f32.gmra.mrb[20].mxu0 %v25587_v37  ;;  %v14217_v37 = vld [vmem:[%s26688_s15] sm:$0xff] }
 0x6f4   :  { %21096 = vmatprep.mubr.msk.f32.mxu0 %vm23495_vm0, %v23496_v8  ;;  %14226 = vperm.xlu0 %23468, %v14217_v37  }
 0x6f6   :  { %14292 = vperm.xlu1 %23469, %v14271_v27  }
 0x6f7   :  { %21097 = vmatmul.mubr.f32.gmra.mrb[22].mxu0 %v25602_v11 }
 0x6f8   :  { %21277 = vmatprep.mubr.msk.f32.mxu0 %vm23495_vm0, %v23496_v8  ;;  %14235 = vperm.xlu0 %23468, %v14220_v10  }
 0x6fc   :  { %14241 = vperm.xlu0 %23468, %v14222_v49  }
 0x700   :  { %14247 = vperm.xlu0 %23468, %v14224_v4  }
 0x704   :  { %14277 = vperm.xlu0 %23468, %v14266_v52  }
 0x708   :  { %14283 = vperm.xlu0 %23468, %v14268_v41  }
 0x70c   :  { %14289 = vperm.xlu0 %23468, %v14270_v46  }
 0x710   :  { %14295 = vperm.xlu0 %23468, %v14272_v18  }
 0x743   :  { %v21152_v7 = vpop.f32.mrb[32].mxu1 }
 0x744   :  { %v12580_v29 = vmax.f32 %v21152_v7, 0.0  ;;  %v12569_v28 = vpop.f32.mrb[33].mxu1 }
 0x745   :  { %v12579_v59 = vmax.f32 %v12569_v28, 0.0 }
 0x746   :  { %v13152_v11 = vsel %vm2852_vm3, %v12580_v29, 0 }
 0x747   :  { %v13231_v19 = vand.u32 4294901760, %v13152_v11  ;;  %v13149_v33 = vsel %vm2852_vm3, %v12579_v59, 0 }
 0x748   :  { %v13221_v48 = vand.u32 4294901760, %v13149_v33 }
 0x749   :  { %v13232_v47 = vsub.f32 %v13152_v11, %v13231_v19 }
 0x74a   :  { %v13222_v31 = vsub.f32 %v13149_v33, %v13221_v48 }
 0x74b   :  { %v13233_v62 = vand.u32 4294901760, %v13232_v47 }
 0x74c   :  { %v13223_v54 = vand.u32 4294901760, %v13222_v31 }
 0x74d   :  { %v13234_v30 = vsub.f32 %v13232_v47, %v13233_v62 }
 0x74e   :  { %v13224_v60 = vsub.f32 %v13222_v31, %v13223_v54 }
 0x74f   :  { %v13235_v50 = vand.u32 4294901760, %v13234_v30 }
 0x750   :  { %v13225_v40 = vand.u32 4294901760, %v13224_v60 }
 0x752   :  { %21235 = vmatprep.mubr.f32.mxu1 %v13225_v40 }
 0x753   :  { %21236 = vmatmul.mubr.f32.vlgmr.msra.gmra.mrb[12].mxu1 %v13235_v50 }
 0x754   :  { %21242 = vmatprep.mubr.f32.mxu1 %v13221_v48  ;;  %22468 = vmatpush3.bf16.msra.mxu1 %v25637_v9 }
 0x755   :  { %22470 = vmatprep.subr.bf16.mxu1 %v25646_v13 }
 0x759   :  { %v14230_v29 = vpop.permute.xlu1 %14229 }
 0x75a   :  { %vm14250_vm5 = vcmp.eq.s32.totalorder %v25821_v56, %v14230_v29 }
 0x75b   :  { %21243 = vmatmul.mubr.f32.vlgmr.msra.gmra.mrb[12].mxu1 %v13231_v19 }
 0x75c   :  { %21249 = vmatprep.mubr.f32.mxu1 %v13222_v31  ;;  %22472 = vmatpush3.bf16.msra.mxu1 %v25646_v13 }
 0x75d   :  { %22474 = vmatprep.subr.bf16.mxu1 %v25626_v58  ;;  %v14233_v28 = vpop.permute.xlu1 %14232 }
 0x75e   :  { %vm14251_vm6 = vcmp.eq.s32.totalorder %v25821_v56, %v14233_v28 }
 0x75f   :  { %v25861_v33 = vsel %vm14251_vm6, 1.0, %v23496_v8 }
 0x760   :  { %v14320_v31 = vsel %vm2852_vm3, %v25861_v33, 0 }
 0x761   :  { %v14239_v11 = vpop.permute.xlu1 %14238 }
 0x762   :  { %vm14253_vm8 = vcmp.eq.s32.totalorder %v25821_v56, %v14239_v11 }
 0x763   :  { %21250 = vmatmul.mubr.f32.vlgmr.msra.gmra.mrb[12].mxu1 %v13232_v47  ;;  %v25875_v4 = vsel %vm14253_vm8, 1.0, %v23496_v8 }
 0x764   :  { %21256 = vmatprep.mubr.f32.mxu1 %v13223_v54  ;;  %22476 = vmatpush3.bf16.msra.mxu1 %v25626_v58  ;;  %v25879_v54 = vsub.f32 %v14320_v31, %v14320_v31  ;;  %v14326_v52 = vsel %vm2852_vm3, %v25875_v4, 0 }
 0x765   :  { %22478 = vmatprep.subr.bf16.mxu1 %v25663_v55  ;;  %v25897_v46 = vsub.f32 %v14326_v52, %v14326_v52 }
 0x766   :  { %v14426_v18 = vand.u32 4294901760, %v25879_v54 }
 0x76b   :  { %21257 = vmatmul.mubr.f32.vlgmr.msra.gmra.mrb[12].mxu1 %v13233_v62 }
 0x76c   :  { %21263 = vmatprep.mubr.f32.mxu1 %v13221_v48  ;;  %22480 = vmatpush3.bf16.msra.mxu1 %v25663_v55 }
 0x76d   :  { %22482 = vmatprep.subr.bf16.mxu1 %v25626_v58 }
 0x773   :  { %21264 = vmatmul.mubr.f32.vlgmr.msra.gmra.mrb[12].mxu1 %v13231_v19 }
 0x774   :  { %21270 = vmatprep.mubr.f32.mxu1 %v13221_v48  ;;  %22484 = vmatpush3.bf16.msra.mxu1 %v25626_v58  ;;  %v14245_v48 = vpop.permute.xlu1 %14244 }
 0x775   :  { %vm14255_vm10 = vcmp.eq.s32.totalorder %v25821_v56, %v14245_v48 }
 0x776   :  { %v25892_v41 = vsel %vm14255_vm10, 1.0, %v23496_v8 }
 0x778   :  { %v14275_v40 = vpop.permute.xlu1 %14274 }
 0x779   :  { %vm14297_vm12 = vcmp.eq.s32.totalorder %v25821_v56, %v14275_v40 }
 0x77b   :  { %21271 = vmatmul.mubr.f32.vlgmr.msra.gmra.mrb[12].mxu1 %v13231_v19  ;;  %v25857_v19 = vsel %vm14250_vm5, 1.0, %v23496_v8 }
 0x77c   :  { %v14317_v24 = vsel %vm2852_vm3, %v25857_v19, 0 }
 0x77d   :  { %v25871_v62 = vsub.f32 %v14317_v24, %v14317_v24 }
 0x77f   :  { %v14416_v0 = vand.u32 4294901760, %v25871_v62 }
 0x783   :  { %v13129_v14 = vpop.f32.mrb[34].mxu1 }
 0x784   :  { %v13145_v57 = vmax.f32 %v13129_v14, 0.0  ;;  %v21224_v17 = vpop.f32.mrb[35].mxu1  ;;  %v14417_v14 = vsub.f32 %v25871_v62, %v14416_v0 }
 0x786   :  { %v13659_v43 = vsel %vm2852_vm3, %v13145_v57, 0 }
 0x787   :  { %v25778_v39 = vand.u32 4294901760, %v13659_v43  ;;  %v13135_v22 = vpop.f32.mrb[36].mxu1 }
 0x788   :  { %v13146_v35 = vmax.f32 %v13135_v22, 0.0  ;;  %v21227_v9 = vpop.f32.mrb[37].mxu1 }
 0x789   :  { %v13735_v45 = vsub.f32 %v13659_v43, %v25778_v39  ;;  %v14332_v43 = vsel %vm2852_vm3, %v25892_v41, 0 }
 0x78a   :  { %v13662_v13 = vsel %vm2852_vm3, %v13146_v35, 0 }
 0x78b   :  { %v13736_v55 = vand.u32 4294901760, %v13735_v45  ;;  %v25782_v25 = vand.u32 4294901760, %v13662_v13  ;;  %v13141_v32 = vpop.f32.mrb[38].mxu1 }
 0x78c   :  { %v13147_v58 = vmax.f32 %v13141_v32, 0.0  ;;  %v21230_v15 = vpop.f32.mrb[39].mxu1 }
 0x78d   :  { %v13737_v53 = vsub.f32 %v13735_v45, %v13736_v55  ;;  %v13745_v1 = vsub.f32 %v13662_v13, %v25782_v25  ;;  %v25922_v15 = vsub.f32 %v14332_v43, %v14332_v43 }
 0x78e   :  { %v13665_v42 = vsel %vm2852_vm3, %v13147_v58, 0 }
 0x78f   :  { %v13738_v16 = vand.u32 4294901760, %v13737_v53  ;;  %v13754_v34 = vand.u32 4294901760, %v13665_v42  ;;  %v13746_v12 = vand.u32 4294901760, %v13745_v1 }
 0x791   :  { %v13755_v5 = vsub.f32 %v13665_v42, %v13754_v34  ;;  %21278 = vmatmul.mubr.f32.vlgmr.msra.gmra.mrb[18].mxu0 %v13738_v16  ;;  %v13747_v63 = vsub.f32 %v13745_v1, %v13746_v12 }
 0x792   :  { %21280 = vmatprep.mubr.msk.f32.mxu0 %vm23495_vm0, %v23496_v8  ;;  %22490 = vmatpush3.bf16.msra.mxu0 %v25712_v21  ;;  %v14227_v21 = vpop.permute.xlu0 %14226 }
 0x793   :  { %v13748_v26 = vand.u32 4294901760, %v13747_v63  ;;  %v13756_v37 = vand.u32 4294901760, %v13755_v5  ;;  %22491 = vmatprep.subr.bf16.mxu0 %v23494_v3  ;;  %vm14249_vm4 = vcmp.eq.s32.totalorder %v25821_v56, %v14227_v21 }
 0x795   :  { %21281 = vmatmul.mubr.f32.gmra.mrb[20].mxu0 %v13748_v26  ;;  %v13757_v20 = vsub.f32 %v13755_v5, %v13756_v37 }
 0x796   :  { %21283 = vmatprep.mubr.msk.f32.mxu0 %vm23495_vm0, %v23496_v8  ;;  %v14236_v59 = vpop.permute.xlu0 %14235 }
 0x797   :  { %v13758_v7 = vand.u32 4294901760, %v13757_v20  ;;  %vm14252_vm7 = vcmp.eq.s32.totalorder %v25821_v56, %v14236_v59 }
 0x798   :  { %v25867_v47 = vsel %vm14252_vm7, 1.0, %v23496_v8 }
 0x799   :  { %21284 = vmatmul.mubr.f32.gmra.mrb[22].mxu0 %v13758_v7  ;;  %v14323_v6 = vsel %vm2852_vm3, %v25867_v47, 0 }
 0x79a   :  { %21290 = vmatprep.mubr.msk.f32.mxu0 %vm23495_vm0, %v23496_v8  ;;  %v14242_v49 = vpop.permute.xlu0 %14241  ;;  %v25889_v50 = vsub.f32 %v14323_v6, %v14323_v6 }
 0x79b   :  { %vm14254_vm9 = vcmp.eq.s32.totalorder %v25821_v56, %v14242_v49 }
 0x79c   :  { %v25883_v60 = vsel %vm14254_vm9, 1.0, %v23496_v8 }
 0x79d   :  { %21291 = vmatmul.mubr.f32.vlgmr.msra.gmra.mrb[18].mxu0 %v25778_v39  ;;  %v14329_v44 = vsel %vm2852_vm3, %v25883_v60, 0 }
 0x79e   :  { %21293 = vmatprep.mubr.msk.f32.mxu0 %vm23495_vm0, %v23496_v8  ;;  %22493 = vmatpush3.bf16.msra.mxu0 %v22492_v51  ;;  %v14248_v30 = vpop.permute.xlu0 %14247  ;;  %v25911_v22 = vsub.f32 %v14329_v44, %v14329_v44 }
 0x79f   :  { %22494 = vmatprep.subr.bf16.mxu0 %v23494_v3  ;;  %vm14256_vm11 = vcmp.eq.s32.totalorder %v25821_v56, %v14248_v30 }
 0x7a0   :  { %v25900_v23 = vsel %vm14256_vm11, 1.0, %v23496_v8  ;;  %v14456_v63 = vand.u32 4294901760, %v25911_v22 }
 0x7a1   :  { %21294 = vmatmul.mubr.f32.gmra.mrb[20].mxu0 %v25782_v25  ;;  %v14335_v9 = vsel %vm2852_vm3, %v25900_v23, 0 }
 0x7a2   :  { %21296 = vmatprep.mubr.msk.f32.mxu0 %vm23495_vm0, %v23496_v8  ;;  %v25926_v16 = vsub.f32 %v14335_v9, %v14335_v9  ;;  %v14457_v59 = vsub.f32 %v25911_v22, %v14456_v63 }
 0x7a4   :  { %v14476_v11 = vand.u32 4294901760, %v25926_v16  ;;  %v14458_v6 = vand.u32 4294901760, %v14457_v59 }
 0x7a5   :  { %21297 = vmatmul.mubr.f32.gmra.mrb[22].mxu0 %v13754_v34 }
 0x7a6   :  { %21303 = vmatprep.mubr.msk.f32.mxu0 %vm23495_vm0, %v23496_v8  ;;  %v14477_v30 = vsub.f32 %v25926_v16, %v14476_v11 }
 0x7a8   :  { %v14478_v44 = vand.u32 4294901760, %v14477_v30 }
 0x7a9   :  { %21304 = vmatmul.mubr.f32.vlgmr.msra.gmra.mrb[18].mxu0 %v13735_v45  ;;  %v14436_v45 = vand.u32 4294901760, %v25889_v50 }
 0x7aa   :  { %21306 = vmatprep.mubr.msk.f32.mxu0 %vm23495_vm0, %v23496_v8  ;;  %22496 = vmatpush3.bf16.msra.mxu0 %v25697_v61 }
 0x7ab   :  { %22497 = vmatprep.subr.bf16.mxu0 %v23494_v3 }
 0x7ad   :  { %21307 = vmatmul.mubr.f32.gmra.mrb[20].mxu0 %v13745_v1  ;;  %v14418_v1 = vand.u32 4294901760, %v14417_v14 }
 0x7ae   :  { %21309 = vmatprep.mubr.msk.f32.mxu0 %vm23495_vm0, %v23496_v8 }
 0x7b1   :  { %21310 = vmatmul.mubr.f32.gmra.mrb[22].mxu0 %v13755_v5  ;;  %v14437_v5 = vsub.f32 %v25889_v50, %v14436_v45 }
 0x7b2   :  { %21316 = vmatprep.mubr.msk.f32.mxu0 %vm23495_vm0, %v23496_v8 }
 0x7b3   :  { %v14438_v28 = vand.u32 4294901760, %v14437_v5 }
 0x7b5   :  { %21317 = vmatmul.mubr.f32.vlgmr.msra.gmra.mrb[18].mxu0 %v13736_v55  ;;  %v14427_v55 = vsub.f32 %v25879_v54, %v14426_v18 }
 0x7b6   :  { %21319 = vmatprep.mubr.msk.f32.mxu0 %vm23495_vm0, %v23496_v8  ;;  %22499 = vmatpush3.bf16.msra.mxu0 %v25716_v2 }
 0x7b7   :  { %22500 = vmatprep.subr.bf16.mxu0 %v23494_v3  ;;  %v25831_v3 = vsel %vm14249_vm4, 1.0, %v23496_v8  ;;  %v14428_v20 = vand.u32 4294901760, %v14427_v55 }
 0x7b8   :  { %21371 = vmatprep.mubr.msk.f32.mxu1 %vm2852_vm3, %v25831_v3  ;;  %v14314_v51 = vsel %vm2852_vm3, %v25831_v3, 0 }
 0x7b9   :  { %21320 = vmatmul.mubr.f32.gmra.mrb[20].mxu0 %v13746_v12 }
 0x7ba   :  { %21322 = vmatprep.mubr.msk.f32.mxu0 %vm23495_vm0, %v23496_v8 }
 0x7bd   :  { %21323 = vmatmul.mubr.f32.gmra.mrb[22].mxu0 %v13756_v37 }
 0x7be   :  { %21329 = vmatprep.mubr.msk.f32.mxu0 %vm23495_vm0, %v23496_v8 }
 0x7c1   :  { %21330 = vmatmul.mubr.f32.vlgmr.msra.gmra.mrb[18].mxu0 %v25778_v39 }
 0x7c2   :  { %21332 = vmatprep.mubr.msk.f32.mxu0 %vm23495_vm0, %v23496_v8  ;;  %22502 = vmatpush3.bf16.msra.mxu0 %v25697_v61  ;;  %v25845_v61 = vsub.f32 %v14314_v51, %v14314_v51  ;;  %v14466_v51 = vand.u32 4294901760, %v25922_v15 }
 0x7c4   :  { %v14406_v2 = vand.u32 4294901760, %v25845_v61  ;;  %v14467_v31 = vsub.f32 %v25922_v15, %v14466_v51 }
 0x7c5   :  { %21333 = vmatmul.mubr.f32.gmra.mrb[20].mxu0 %v25782_v25 }
 0x7c6   :  { %21335 = vmatprep.mubr.msk.f32.mxu0 %vm23495_vm0, %v23496_v8  ;;  %v14407_v10 = vsub.f32 %v25845_v61, %v14406_v2  ;;  %v14468_v40 = vand.u32 4294901760, %v14467_v31 }
 0x7c8   :  { %v14408_v36 = vand.u32 4294901760, %v14407_v10 }
 0x7c9   :  { %21336 = vmatmul.mubr.f32.gmra.mrb[22].mxu0 %v13754_v34 }
 0x7ca   :  { %21342 = vmatprep.mubr.msk.f32.mxu0 %vm23495_vm0, %v23496_v8 }
 0x7cd   :  { %21343 = vmatmul.mubr.f32.vlgmr.msra.gmra.mrb[18].mxu0 %v25778_v39  ;;  %v25909_v39 = vsel %vm14297_vm12, 1.0, %v23496_v8 }
 0x7ce   :  { %21345 = vmatprep.mubr.msk.f32.mxu0 %vm23495_vm0, %v23496_v8  ;;  %v15098_v53 = vsel %vm1193_vm2, %v25909_v39, 0 }
 0x7cf   :  { %v25933_v37 = vsub.f32 %v15098_v53, %v15098_v53 }
 0x7d1   :  { %21346 = vmatmul.mubr.f32.gmra.mrb[20].mxu0 %v25782_v25  ;;  %v14446_v25 = vand.u32 4294901760, %v25897_v46  ;;  %v15191_v24 = vand.u32 4294901760, %v25933_v37 }
 0x7d2   :  { %21348 = vmatprep.mubr.msk.f32.mxu0 %vm23495_vm0, %v23496_v8 }
 0x7d3   :  { %v14447_v7 = vsub.f32 %v25897_v46, %v14446_v25  ;;  %v15192_v52 = vsub.f32 %v25933_v37, %v15191_v24 }
 0x7d5   :  { %21349 = vmatmul.mubr.f32.gmra.mrb[22].mxu0 %v13754_v34  ;;  %v14448_v49 = vand.u32 4294901760, %v14447_v7 }
 0x7d6   :  { %21355 = vmatprep.mubr.f32.mxu0 %v14408_v36 }
 0x84e   :  { %v21272_v27 = vpop.f32.mrb[12].mxu1 }
 0x84f   :  { %v14341_v57 = vand.u32 4294901760, %v21272_v27  ;;  %v13646_v17 = vpop.f32.mrb[13].mxu1 }
 0x850   :  { %v14338_v35 = vand.u32 4294901760, %v13646_v17 }
 0x851   :  { %v14493_v13 = vsub.f32 %v21272_v27, %v14341_v57  ;;  %v15193_v27 = vand.u32 4294901760, %v15192_v52 }
 0x852   :  { %v25920_v32 = vpack.c.bf16 %v14341_v57, %v14338_v35  ;;  %v14486_v58 = vsub.f32 %v13646_v17, %v14338_v35 }
 0x853   :  { %v14494_v42 = vand.u32 4294901760, %v14493_v13 }
 0x854   :  { %v14487_v34 = vand.u32 4294901760, %v14486_v58  ;;  %22504 = vmatprep.subr.bf16.mxu0 %v25920_v32  ;;  %v22511_v12 = vpack.c.bf16 %v14493_v13, %v14486_v58 }
 0x855   :  { %v14495_v26 = vsub.f32 %v14493_v13, %v14494_v42  ;;  %22506 = vmatpush3.bf16.msra.mxu0 %v25920_v32 }
 0x856   :  { %v14488_v21 = vsub.f32 %v14486_v58, %v14487_v34  ;;  %v22519_v10 = vpack.c.bf16 %v14494_v42, %v14487_v34 }
 0x857   :  { %v14496_v36 = vand.u32 4294901760, %v14495_v26 }
 0x858   :  { %v14489_v29 = vand.u32 4294901760, %v14488_v21  ;;  %21356 = vmatmul.mubr.f32.vlgmr.msra.gmra.mrb[30].mxu0 %v14418_v1 }
 0x859   :  { %21358 = vmatprep.mubr.f32.mxu0 %v14428_v20 }
 0x85a   :  { %v22507_v48 = vpack.c.bf16 %v14496_v36, %v14489_v29 }
 0x85c   :  { %22508 = vmatprep.subr.bf16.mxu1 %v22507_v48  ;;  %21359 = vmatmul.mubr.f32.gmra.mrb[32].mxu0 %v14438_v28 }
 0x85d   :  { %22510 = vmatpush3.bf16.msra.mxu1 %v22507_v48  ;;  %21361 = vmatprep.mubr.f32.mxu0 %v14448_v49 }
 0x85e   :  { %22512 = vmatprep.subr.bf16.mxu1 %v22511_v12 }
 0x860   :  { %21372 = vmatmul.mubr.msk.f32.vlgmr.msra.gmra.mrb[40].mxu1 %vm2852_vm3, %v25857_v19  ;;  %21362 = vmatmul.mubr.f32.gmra.mrb[34].mxu0 %v14458_v6 }
 0x861   :  { %22514 = vmatpush3.bf16.msra.mxu1 %v22511_v12  ;;  %21374 = vmatprep.mubr.msk.f32.mxu1 %vm2852_vm3, %v25861_v33 }
 0x862   :  { %22516 = vmatprep.subr.bf16.mxu1 %v25920_v32  ;;  %21364 = vmatprep.mubr.f32.mxu0 %v14468_v40 }
 0x864   :  { %21375 = vmatmul.mubr.msk.f32.gmra.mrb[42].mxu1 %vm2852_vm3, %v25867_v47  ;;  %21365 = vmatmul.mubr.f32.gmra.mrb[36].mxu0 %v14478_v44 }
 0x865   :  { %21377 = vmatprep.mubr.msk.f32.mxu1 %vm2852_vm3, %v25875_v4  ;;  %21453 = vmatprep.mubr.f32.mxu0 %v15193_v27 }
 0x868   :  { %21378 = vmatmul.mubr.msk.f32.gmra.mrb[44].mxu1 %vm2852_vm3, %v25883_v60 }
 0x869   :  { %21380 = vmatprep.mubr.msk.f32.mxu1 %vm2852_vm3, %v25892_v41 }
 0x86c   :  { %21381 = vmatmul.mubr.msk.f32.gmra.mrb[46].mxu1 %vm2852_vm3, %v25900_v23 }
 0x86d   :  { %21387 = vmatprep.mubr.f32.mxu1 %v25845_v61  ;;  %v14278_v61 = vpop.permute.xlu0 %14277 }
 0x86e   :  { %vm14298_vm13 = vcmp.eq.s32.totalorder %v25821_v56, %v14278_v61 }
 0x870   :  { %21388 = vmatmul.mubr.f32.vlgmr.msra.gmra.mrb[40].mxu1 %v25871_v62 }
 0x871   :  { %22518 = vmatpush3.bf16.msra.mxu1 %v25920_v32  ;;  %21390 = vmatprep.mubr.f32.mxu1 %v25879_v54  ;;  %v14284_v62 = vpop.permute.xlu0 %14283 }
 0x872   :  { %22520 = vmatprep.subr.bf16.mxu1 %v22519_v10  ;;  %vm14300_vm15 = vcmp.eq.s32.totalorder %v25821_v56, %v14284_v62 }
 0x873   :  { %v26015_v14 = vsel %vm14300_vm15, 1.0, %v23496_v8 }
 0x874   :  { %21391 = vmatmul.mubr.f32.gmra.mrb[42].mxu1 %v25889_v50  ;;  %v26001_v50 = vsel %vm14298_vm13, 1.0, %v23496_v8 }
 0x875   :  { %21393 = vmatprep.mubr.f32.mxu1 %v25897_v46 }
 0x878   :  { %21394 = vmatmul.mubr.f32.gmra.mrb[44].mxu1 %v25911_v22 }
 0x879   :  { %21396 = vmatprep.mubr.f32.mxu1 %v25922_v15 }
 0x87c   :  { %21397 = vmatmul.mubr.f32.gmra.mrb[46].mxu1 %v25926_v16 }
 0x87d   :  { %21403 = vmatprep.mubr.f32.mxu1 %v14406_v2  ;;  %v14281_v2 = vpop.permute.xlu1 %14280 }
 0x87e   :  { %vm14299_vm14 = vcmp.eq.s32.totalorder %v25821_v56, %v14281_v2 }
 0x87f   :  { %v26005_v46 = vsel %vm14299_vm14, 1.0, %v23496_v8 }
 0x880   :  { %21404 = vmatmul.mubr.f32.vlgmr.msra.gmra.mrb[40].mxu1 %v14416_v0  ;;  %v14290_v0 = vpop.permute.xlu0 %14289  ;;  %v15104_v17 = vsel %vm1193_vm2, %v26005_v46, 0 }
 0x881   :  { %22522 = vmatpush3.bf16.msra.mxu1 %v22519_v10  ;;  %21406 = vmatprep.mubr.f32.mxu1 %v14426_v18  ;;  %v14287_v54 = vpop.permute.xlu1 %14286  ;;  %v15101_v18 = vsel %vm1193_vm2, %v26001_v50, 0  ;;  %vm14302_vm4 = vcmp.eq.s32.totalorder %v25821_v56, %v14290_v0  ;;  %v26032_v55 = vsub.f32 %v15104_v17, %v15104_v17 }
 0x882   :  { %22524 = vmatprep.subr.bf16.mxu1 %v25920_v32  ;;  %vm14301_vm0 = vcmp.eq.s32.totalorder %v25821_v56, %v14287_v54  ;;  %v26020_v22 = vsub.f32 %v15101_v18, %v15101_v18 }
 0x883   :  { %v26023_v35 = vsel %vm14301_vm0, 1.0, %v23496_v8  ;;  %v15211_v5 = vand.u32 4294901760, %v26032_v55 }
 0x884   :  { %21407 = vmatmul.mubr.f32.gmra.mrb[42].mxu1 %v14436_v45  ;;  %v14296_v43 = vpop.permute.xlu0 %14295  ;;  %v15201_v58 = vand.u32 4294901760, %v26020_v22 }
 0x885   :  { %21409 = vmatprep.mubr.f32.mxu1 %v14446_v25  ;;  %v14293_v57 = vpop.permute.xlu1 %14292  ;;  %v26035_v25 = vsel %vm14302_vm4, 1.0, %v23496_v8  ;;  %vm14304_vm6 = vcmp.eq.s32.totalorder %v25821_v56, %v14296_v43 }
 0x886   :  { %vm14303_vm5 = vcmp.eq.s32.totalorder %v25821_v56, %v14293_v57  ;;  %v26051_v56 = vsel %vm14304_vm6, 1.0, %v23496_v8 }
 0x887   :  { %v26044_v53 = vsel %vm14303_vm5, 1.0, %v23496_v8  ;;  %v15202_v8 = vsub.f32 %v26020_v22, %v15201_v58  ;;  %v15119_v7 = vsel %vm1193_vm2, %v26051_v56, 0 }
 0x888   :  { %21410 = vmatmul.mubr.f32.gmra.mrb[44].mxu1 %v14456_v63  ;;  %v15116_v63 = vsel %vm1193_vm2, %v26044_v53, 0  ;;  %v26086_v6 = vsub.f32 %v15119_v7, %v15119_v7 }
 0x889   :  { %21412 = vmatprep.mubr.f32.mxu1 %v14466_v51  ;;  %v26077_v59 = vsub.f32 %v15116_v63, %v15116_v63 }
 0x88a   :  { %v15261_v17 = vand.u32 4294901760, %v26086_v6 }
 0x88b   :  { %v15251_v62 = vand.u32 4294901760, %v26077_v59 }
 0x88c   :  { %21413 = vmatmul.mubr.f32.gmra.mrb[46].mxu1 %v14476_v11 }
 0x88d   :  { %21419 = vmatprep.mubr.msk.f32.mxu1 %vm2852_vm3, %v25831_v3 }
 0x890   :  { %21420 = vmatmul.mubr.msk.f32.vlgmr.msra.gmra.mrb[40].mxu1 %vm2852_vm3, %v25857_v19 }
 0x891   :  { %22526 = vmatpush3.bf16.msra.mxu1 %v25920_v32  ;;  %21422 = vmatprep.mubr.msk.f32.mxu1 %vm2852_vm3, %v25861_v33 }
 0x894   :  { %21423 = vmatmul.mubr.msk.f32.gmra.mrb[42].mxu1 %vm2852_vm3, %v25867_v47 }
 0x895   :  { %21425 = vmatprep.mubr.msk.f32.mxu1 %vm2852_vm3, %v25875_v4 }
 0x898   :  { %21426 = vmatmul.mubr.msk.f32.gmra.mrb[44].mxu1 %vm2852_vm3, %v25883_v60 }
 0x899   :  { %21428 = vmatprep.mubr.msk.f32.mxu1 %vm2852_vm3, %v25892_v41 }
 0x89c   :  { %21429 = vmatmul.mubr.msk.f32.gmra.mrb[46].mxu1 %vm2852_vm3, %v25900_v23 }
 0x89d   :  { %21435 = vmatprep.mubr.msk.f32.mxu1 %vm2852_vm3, %v25831_v3  ;;  %v15107_v3 = vsel %vm1193_vm2, %v26015_v14, 0 }
 0x89e   :  { %v26041_v15 = vsub.f32 %v15107_v3, %v15107_v3 }
 0x8a0   :  { %v14196_v9 = vpop.f32.mrb[18].mxu0  ;;  %21436 = vmatmul.mubr.msk.f32.vlgmr.msra.gmra.mrb[40].mxu1 %vm2852_vm3, %v25857_v19  ;;  %v15110_v19 = vsel %vm1193_vm2, %v26023_v35, 0  ;;  %v15221_v21 = vand.u32 4294901760, %v26041_v15 }
 0x8a1   :  { %v15122_v45 = vand.u32 4294901760, %v14196_v9  ;;  %v21344_v13 = vpop.f32.mrb[19].mxu0  ;;  %21438 = vmatprep.mubr.msk.f32.mxu1 %vm2852_vm3, %v25861_v33  ;;  %v15113_v33 = vsel %vm1193_vm2, %v26035_v25, 0  ;;  %v26055_v12 = vsub.f32 %v15110_v19, %v15110_v19 }
 0x8a2   :  { %v26065_v20 = vsub.f32 %v15113_v33, %v15113_v33  ;;  %v15222_v30 = vsub.f32 %v26041_v15, %v15221_v21 }
 0x8a3   :  { %v15271_v32 = vsub.f32 %v14196_v9, %v15122_v45  ;;  %v15231_v11 = vand.u32 4294901760, %v26055_v12  ;;  %v15252_v9 = vsub.f32 %v26077_v59, %v15251_v62 }
 0x8a4   :  { %v14202_v1 = vpop.f32.mrb[20].mxu0  ;;  %21439 = vmatmul.mubr.msk.f32.gmra.mrb[42].mxu1 %vm2852_vm3, %v25867_v47  ;;  %v15241_v27 = vand.u32 4294901760, %v26065_v20  ;;  %v15223_v0 = vand.u32 4294901760, %v15222_v30 }
 0x8a5   :  { %v15272_v42 = vand.u32 4294901760, %v15271_v32  ;;  %v15125_v16 = vand.u32 4294901760, %v14202_v1  ;;  %v21347_v34 = vpop.f32.mrb[21].mxu0  ;;  %21441 = vmatprep.mubr.msk.f32.mxu1 %vm2852_vm3, %v25875_v4  ;;  %v15232_v2 = vsub.f32 %v26055_v12, %v15231_v11  ;;  %v15253_v13 = vand.u32 4294901760, %v15252_v9 }
 0x8a6   :  { %v15242_v57 = vsub.f32 %v26065_v20, %v15241_v27  ;;  %v15898_v34 = vld [vmem:[%s26686_s13 + $0x18] sm:$0xff] }
 0x8a7   :  { %v26060_v47 = vpack.c.bf16 %v15125_v16, %v15122_v45  ;;  %v15278_v26 = vsub.f32 %v14202_v1, %v15125_v16  ;;  %v15273_v51 = vsub.f32 %v15271_v32, %v15272_v42  ;;  %v15233_v43 = vand.u32 4294901760, %v15232_v2  ;;  %v15897_v16 = vld [vmem:[%s26686_s13 + $0x10] sm:$0xff] }
 0x8a8   :  { %v14208_v4 = vpop.f32.mrb[22].mxu0  ;;  %21442 = vmatmul.mubr.msk.f32.gmra.mrb[44].mxu1 %vm2852_vm3, %v25883_v60  ;;  %v15212_v60 = vsub.f32 %v26032_v55, %v15211_v5  ;;  %v15243_v3 = vand.u32 4294901760, %v15242_v57  ;;  %v15262_v45 = vsub.f32 %v26086_v6, %v15261_v17  ;;  %v15933_v63 = vand.u32 4294901760, %v15898_v34 }
 0x8a9   :  { %v15279_v10 = vand.u32 4294901760, %v15278_v26  ;;  %v26072_v36 = vand.u32 4294901760, %v14208_v4  ;;  %v21350_v29 = vpop.f32.mrb[23].mxu0  ;;  %21444 = vmatprep.mubr.msk.f32.mxu1 %vm2852_vm3, %v25892_v41  ;;  %22528 = vmatprep.subr.bf16.mxu0 %v26060_v47  ;;  %v22535_v28 = vpack.c.bf16 %v15278_v26, %v15271_v32  ;;  %v15203_v41 = vand.u32 4294901760, %v15202_v8 }
 0x8aa   :  { %22530 = vmatpush3.bf16.msra.mxu0 %v26060_v47  ;;  %v15274_v52 = vand.u32 4294901760, %v15273_v51  ;;  %v15213_v61 = vand.u32 4294901760, %v15212_v60  ;;  %v15263_v19 = vand.u32 4294901760, %v15262_v45 }
 0x8ab   :  { %v15280_v49 = vsub.f32 %v15278_v26, %v15279_v10  ;;  %v15285_v48 = vsub.f32 %v14208_v4, %v26072_v36  ;;  %21451 = vmatprep.subr.mxu0 %v26072_v36  ;;  %v22543_v31 = vpack.c.bf16 %v15279_v10, %v15272_v42 }
 0x8ac   :  { %21445 = vmatmul.mubr.msk.f32.gmra.mrb[46].mxu1 %vm2852_vm3, %v25900_v23 }
 0x8ad   :  { %v15281_v40 = vand.u32 4294901760, %v15280_v49  ;;  %v15286_v44 = vand.u32 4294901760, %v15285_v48  ;;  %v16095_v49 = vsub.f32 %v15898_v34, %v15933_v63 }
 0x8ae   :  { %21452 = vmatpush3.msra.mxu0 %v26072_v36 }
 0x8af   :  { %21454 = vmatmul.mubr.f32.vlgmr.msra.gmra.mrb[38].mxu0 %v15203_v41  ;;  %v22531_v23 = vpack.c.bf16 %v15281_v40, %v15274_v52  ;;  %v15287_v54 = vsub.f32 %v15285_v48, %v15286_v44  ;;  %v16096_v52 = vand.u32 4294901760, %v16095_v49 }
 0x8b0   :  { %21456 = vmatprep.mubr.f32.mxu0 %v15213_v61 }
 0x8b1   :  { %22532 = vmatprep.subr.bf16.mxu0 %v22531_v23  ;;  %v15288_v18 = vand.u32 4294901760, %v15287_v54  ;;  %v16097_v2 = vsub.f32 %v16095_v49, %v16096_v52 }
 0x8b2   :  { %22534 = vmatpush3.bf16.msra.mxu0 %v22531_v23 }
 0x8b3   :  { %21457 = vmatmul.mubr.f32.gmra.mrb[40].mxu0 %v15223_v0  ;;  %21469 = vmatprep.subr.mxu0 %v15288_v18  ;;  %v16098_v54 = vand.u32 4294901760, %v16097_v2 }
 0x8b4   :  { %21459 = vmatprep.mubr.f32.mxu0 %v15233_v43 }
 0x8b6   :  { %21470 = vmatpush3.msra.mxu0 %v15288_v18 }
 0x8b7   :  { %21460 = vmatmul.mubr.f32.gmra.mrb[42].mxu0 %v15243_v3  ;;  %22536 = vmatprep.subr.bf16.mxu0 %v22535_v28 }
 0x8b8   :  { %21462 = vmatprep.mubr.f32.mxu0 %v15253_v13 }
 0x8bb   :  { %21463 = vmatmul.mubr.f32.gmra.mrb[44].mxu0 %v15263_v19 }
 0x8bc   :  { %21471 = vmatprep.mubr.msk.f32.mxu0 %vm1193_vm2, %v25909_v39 }
 0x8bf   :  { %21472 = vmatmul.mubr.msk.f32.vlgmr.msra.gmra.mrb[38].mxu0 %vm1193_vm2, %v26001_v50 }
 0x8c0   :  { %22538 = vmatpush3.bf16.msra.mxu0 %v22535_v28  ;;  %21474 = vmatprep.mubr.msk.f32.mxu0 %vm1193_vm2, %v26005_v46 }
 0x8c1   :  { %21487 = vmatprep.subr.mxu0 %v15285_v48 }
 0x8c3   :  { %21475 = vmatmul.mubr.msk.f32.gmra.mrb[40].mxu0 %vm1193_vm2, %v26015_v14 }
 0x8c4   :  { %21488 = vmatpush3.msra.mxu0 %v15285_v48  ;;  %21477 = vmatprep.mubr.msk.f32.mxu0 %vm1193_vm2, %v26023_v35 }
 0x8c5   :  { %22540 = vmatprep.subr.bf16.mxu0 %v26060_v47 }
 0x8c7   :  { %21478 = vmatmul.mubr.msk.f32.gmra.mrb[42].mxu0 %vm1193_vm2, %v26035_v25 }
 0x8c8   :  { %21480 = vmatprep.mubr.msk.f32.mxu0 %vm1193_vm2, %v26044_v53 }
 0x8cb   :  { %21481 = vmatmul.mubr.msk.f32.gmra.mrb[44].mxu0 %vm1193_vm2, %v26051_v56 }
 0x8cc   :  { %21489 = vmatprep.mubr.f32.mxu0 %v25933_v37  ;;  %v15895_v37 = vld [vmem:[%s26686_s13] sm:$0xff] }
 0x8cf   :  { %21490 = vmatmul.mubr.f32.vlgmr.msra.gmra.mrb[38].mxu0 %v26020_v22  ;;  %v18541_v22 = vld [vmem:[%s26686_s13 + $0x20] sm:$0xff] }
 0x8d0   :  { %22542 = vmatpush3.bf16.msra.mxu0 %v26060_v47  ;;  %21492 = vmatprep.mubr.f32.mxu0 %v26032_v55  ;;  %v15924_v55 = vand.u32 4294901760, %v15895_v37 }
 0x8d1   :  { %21505 = vmatprep.subr.mxu0 %v26072_v36 }
 0x8d2   :  { %v16074_v7 = vsub.f32 %v15895_v37, %v15924_v55 }
 0x8d3   :  { %21493 = vmatmul.mubr.f32.gmra.mrb[40].mxu0 %v26041_v15  ;;  %v16767_v15 = vand.u32 4294901760, %v18541_v22 }
 0x8d4   :  { %21506 = vmatpush3.msra.mxu0 %v26072_v36  ;;  %21495 = vmatprep.mubr.f32.mxu0 %v26055_v12  ;;  %v18543_v12 = vld [vmem:[%s26686_s13 + $0x30] sm:$0xff] }
 0x8d5   :  { %22544 = vmatprep.subr.bf16.mxu0 %v22543_v31  ;;  %v16773_v26 = vand.u32 4294901760, %v18543_v12 }
 0x8d7   :  { %21496 = vmatmul.mubr.f32.gmra.mrb[42].mxu0 %v26065_v20  ;;  %v16931_v48 = vsub.f32 %v18543_v12, %v16773_v26 }
 0x8d8   :  { %21498 = vmatprep.mubr.f32.mxu0 %v26077_v59 }
 0x8d9   :  { %v16932_v40 = vand.u32 4294901760, %v16931_v48 }
 0x8db   :  { %21499 = vmatmul.mubr.f32.gmra.mrb[44].mxu0 %v26086_v6 }
 0x8dc   :  { %21507 = vmatprep.mubr.f32.mxu0 %v15191_v24  ;;  %v15896_v24 = vld [vmem:[%s26686_s13 + $0x8] sm:$0xff] }
 0x8dd   :  { %v15927_v32 = vand.u32 4294901760, %v15896_v24 }
 0x8df   :  { %21508 = vmatmul.mubr.f32.vlgmr.msra.gmra.mrb[38].mxu0 %v15201_v58  ;;  %v18542_v58 = vld [vmem:[%s26686_s13 + $0x28] sm:$0xff]  ;;  %v26171_v33 = vpack.c.bf16 %v15927_v32, %v15924_v55  ;;  %v16081_v4 = vsub.f32 %v15896_v24, %v15927_v32 }
 0x8e0   :  { %22546 = vmatpush3.bf16.msra.mxu0 %v22543_v31  ;;  %21510 = vmatprep.mubr.f32.mxu0 %v15211_v5  ;;  %v16770_v1 = vand.u32 4294901760, %v18542_v58  ;;  %v15930_v5 = vand.u32 4294901760, %v15897_v16 }
 0x8e1   :  { %21523 = vmatprep.subr.mxu0 %v15286_v44  ;;  %22552 = vmatprep.subr.bf16.mxu1 %v26171_v33  ;;  %v26227_v43 = vpack.c.bf16 %v16081_v4, %v16074_v7 }
 0x8e2   :  { %v26175_v42 = vpack.c.bf16 %v16770_v1, %v16767_v15  ;;  %22554 = vmatpush3.bf16.msra.mxu1 %v26171_v33  ;;  %v26194_v20 = vpack.c.bf16 %v15933_v63, %v15930_v5  ;;  %v16924_v51 = vsub.f32 %v18542_v58, %v16770_v1 }
 0x8e3   :  { %21511 = vmatmul.mubr.f32.gmra.mrb[40].mxu0 %v15221_v21  ;;  %v16917_v21 = vsub.f32 %v18541_v22, %v16767_v15 }
 0x8e4   :  { %21524 = vmatpush3.msra.mxu0 %v15286_v44  ;;  %21513 = vmatprep.mubr.f32.mxu0 %v15231_v11  ;;  %v16088_v11 = vsub.f32 %v15897_v16, %v15930_v5 }
 0x8e5   :  { %22548 = vmatprep.subr.bf16.mxu0 %v26060_v47  ;;  %22556 = vmatprep.subr.bf16.mxu1 %v26194_v20  ;;  %v16918_v10 = vand.u32 4294901760, %v16917_v21  ;;  %v26229_v9 = vpack.c.bf16 %v16924_v51, %v16917_v21 }
 0x8e6   :  { %22558 = vmatpush3.bf16.msra.mxu1 %v26194_v20  ;;  %v16089_v30 = vand.u32 4294901760, %v16088_v11 }
 0x8e7   :  { %21514 = vmatmul.mubr.f32.gmra.mrb[42].mxu0 %v15241_v27  ;;  %v16919_v59 = vsub.f32 %v16917_v21, %v16918_v10 }
 0x8e8   :  { %21516 = vmatprep.mubr.f32.mxu0 %v15251_v62  ;;  %v16933_v62 = vsub.f32 %v16931_v48, %v16932_v40  ;;  %v26239_v1 = vpack.c.bf16 %v16096_v52, %v16089_v30 }
 0x8e9   :  { %v16920_v41 = vand.u32 4294901760, %v16919_v59 }
 0x8ea   :  { %v16934_v0 = vand.u32 4294901760, %v16933_v62 }
 0x8eb   :  { %21517 = vmatmul.mubr.f32.gmra.mrb[44].mxu0 %v15261_v17 }
 0x8ec   :  { %21525 = vmatprep.mubr.msk.f32.mxu0 %vm1193_vm2, %v25909_v39 }
 0x8ef   :  { %21526 = vmatmul.mubr.msk.f32.vlgmr.msra.gmra.mrb[38].mxu0 %vm1193_vm2, %v26001_v50 }
 0x8f0   :  { %22550 = vmatpush3.bf16.msra.mxu0 %v26060_v47  ;;  %21528 = vmatprep.mubr.msk.f32.mxu0 %vm1193_vm2, %v26005_v46  ;;  %v18544_v47 = vld [vmem:[%s26686_s13 + $0x38] sm:$0xff] }
 0x8f1   :  { %21541 = vmatprep.subr.mxu0 %v26072_v36  ;;  %v16776_v8 = vand.u32 4294901760, %v18544_v47 }
 0x8f3   :  { %21529 = vmatmul.mubr.msk.f32.gmra.mrb[40].mxu0 %vm1193_vm2, %v26015_v14 }
 0x8f4   :  { %21542 = vmatpush3.msra.mxu0 %v26072_v36  ;;  %21531 = vmatprep.mubr.msk.f32.mxu0 %vm1193_vm2, %v26023_v35  ;;  %v16925_v36 = vand.u32 4294901760, %v16924_v51 }
 0x8f5   :  { %22600 = vmatprep.subr.bf16.mxu0 %v26175_v42 }
 0x8f6   :  { %v16926_v60 = vsub.f32 %v16924_v51, %v16925_v36  ;;  %v26237_v15 = vpack.c.bf16 %v16925_v36, %v16918_v10 }
 0x8f7   :  { %21532 = vmatmul.mubr.msk.f32.gmra.mrb[42].mxu0 %vm1193_vm2, %v26035_v25 }
 0x8f8   :  { %21534 = vmatprep.mubr.msk.f32.mxu0 %vm1193_vm2, %v26044_v53  ;;  %v16927_v6 = vand.u32 4294901760, %v16926_v60 }
 0x8fa   :  { %v26217_v61 = vpack.c.bf16 %v16927_v6, %v16920_v41 }
 0x8fb   :  { %21535 = vmatmul.mubr.msk.f32.gmra.mrb[44].mxu0 %vm1193_vm2, %v26051_v56 }
 0x8fc   :  { %21543 = vmatprep.mubr.msk.f32.mxu0 %vm1193_vm2, %v25909_v39  ;;  %v26198_v39 = vpack.c.bf16 %v16776_v8, %v16773_v26 }
 0x8ff   :  { %21544 = vmatmul.mubr.msk.f32.vlgmr.msra.gmra.mrb[38].mxu0 %vm1193_vm2, %v26001_v50  ;;  %v16075_v50 = vand.u32 4294901760, %v16074_v7 }
 0x900   :  { %21546 = vmatprep.mubr.msk.f32.mxu0 %vm1193_vm2, %v26005_v46  ;;  %22602 = vmatpush3.bf16.msra.mxu0 %v26175_v42  ;;  %v16082_v46 = vand.u32 4294901760, %v16081_v4 }
 0x901   :  { %22604 = vmatprep.subr.bf16.mxu0 %v26198_v39  ;;  %v16076_v29 = vsub.f32 %v16074_v7, %v16075_v50 }
 0x902   :  { %v16083_v28 = vsub.f32 %v16081_v4, %v16082_v46  ;;  %v26235_v58 = vpack.c.bf16 %v16082_v46, %v16075_v50 }
 0x903   :  { %21547 = vmatmul.mubr.msk.f32.gmra.mrb[40].mxu0 %vm1193_vm2, %v26015_v14  ;;  %v16938_v14 = vsub.f32 %v18544_v47, %v16776_v8 }
 0x904   :  { %21549 = vmatprep.mubr.msk.f32.mxu0 %vm1193_vm2, %v26023_v35  ;;  %22606 = vmatpush3.bf16.msra.mxu0 %v26198_v39  ;;  %v16077_v35 = vand.u32 4294901760, %v16076_v29  ;;  %v16084_v31 = vand.u32 4294901760, %v16083_v28 }
 0x905   :  { %v16939_v44 = vand.u32 4294901760, %v16938_v14  ;;  %22608 = vmatprep.subr.bf16.mxu0 %v26217_v61  ;;  %v26233_v3 = vpack.c.bf16 %v16938_v14, %v16931_v48 }
 0x906   :  { %v26215_v27 = vpack.c.bf16 %v16084_v31, %v16077_v35 }
 0x907   :  { %21550 = vmatmul.mubr.msk.f32.gmra.mrb[42].mxu0 %vm1193_vm2, %v26035_v25  ;;  %v16090_v25 = vsub.f32 %v16088_v11, %v16089_v30  ;;  %v16940_v23 = vsub.f32 %v16938_v14, %v16939_v44  ;;  %v26241_v16 = vpack.c.bf16 %v16939_v44, %v16932_v40 }
 0x908   :  { %21552 = vmatprep.mubr.msk.f32.mxu0 %vm1193_vm2, %v26044_v53  ;;  %22560 = vmatprep.subr.bf16.mxu1 %v26215_v27 }
 0x909   :  { %v16091_v53 = vand.u32 4294901760, %v16090_v25  ;;  %v16941_v18 = vand.u32 4294901760, %v16940_v23 }
 0x90b   :  { %21553 = vmatmul.mubr.msk.f32.gmra.mrb[44].mxu0 %vm1193_vm2, %v26051_v56  ;;  %v26223_v57 = vpack.c.bf16 %v16098_v54, %v16091_v53  ;;  %v26225_v17 = vpack.c.bf16 %v16941_v18, %v16934_v0  ;;  %v26231_v56 = vpack.c.bf16 %v16095_v49, %v16088_v11 }
 0x92b   :  { %v21357_v45 = vpop.f32.mrb[30].mxu0 }
 0x92c   :  { %v14410_v13 = vpop.f32.mrb[31].mxu0 }
 0x92f   :  { %v21360_v19 = vpop.f32.mrb[32].mxu0 }
 0x930   :  { %v14430_v37 = vpop.f32.mrb[33].mxu0 }
 0x933   :  { %v21363_v24 = vpop.f32.mrb[34].mxu0 }
 0x934   :  { %v14450_v22 = vpop.f32.mrb[35].mxu0 }
 0x937   :  { %v21366_v55 = vpop.f32.mrb[36].mxu0 }
 0x938   :  { %v14470_v32 = vpop.f32.mrb[37].mxu0 }
 0x973   :  { %v21437_v34 = vpop.f32.mrb[40].mxu1 }
 0x974   :  { %v22703_v12 = vadd.f32 %v21437_v34, %v21357_v45  ;;  %v15051_v5 = vpop.f32.mrb[41].mxu1 }
 0x975   :  { %v22704_v63 = vadd.f32 %v15051_v5, %v14410_v13 }
 0x976   :  { %v15903_v47 = vsel %vm63_vm1, %v22703_v12, 0 }
 0x977   :  { %v26244_v26 = vand.u32 4294901760, %v15903_v47  ;;  %v15900_v8 = vsel %vm63_vm1, %v22704_v63, 0  ;;  %v21440_v7 = vpop.f32.mrb[42].mxu1 }
 0x978   :  { %v26247_v4 = vand.u32 4294901760, %v15900_v8  ;;  %v22705_v21 = vadd.f32 %v21440_v7, %v21360_v19  ;;  %v15063_v51 = vpop.f32.mrb[43].mxu1 }
 0x979   :  { %v26250_v50 = vsub.f32 %v15903_v47, %v26244_v26  ;;  %v22706_v46 = vadd.f32 %v15063_v51, %v14430_v37 }
 0x97a   :  { %v26253_v10 = vsub.f32 %v15900_v8, %v26247_v4  ;;  %v15909_v36 = vsel %vm63_vm1, %v22705_v21, 0 }
 0x97b   :  { %v26257_v29 = vand.u32 4294901760, %v26250_v50  ;;  %v26259_v28 = vand.u32 4294901760, %v15909_v36  ;;  %v15906_v59 = vsel %vm63_vm1, %v22706_v46, 0  ;;  %v21443_v60 = vpop.f32.mrb[44].mxu1 }
 0x97c   :  { %v26262_v11 = vand.u32 4294901760, %v15906_v59  ;;  %v22707_v49 = vadd.f32 %v21443_v60, %v21363_v24  ;;  %v15075_v48 = vpop.f32.mrb[45].mxu1  ;;  %v26265_v14 = vand.u32 4294901760, %v26253_v10 }
 0x97d   :  { %v26268_v35 = vsub.f32 %v15909_v36, %v26259_v28  ;;  %v22708_v31 = vadd.f32 %v15075_v48, %v14450_v22  ;;  %v16005_v41 = vsub.f32 %v26250_v50, %v26257_v29 }
 0x97e   :  { %v26273_v6 = vsub.f32 %v15906_v59, %v26262_v11  ;;  %v15915_v30 = vsel %vm63_vm1, %v22707_v49, 0  ;;  %v15995_v52 = vsub.f32 %v26253_v10, %v26265_v14 }
 0x97f   :  { %v26278_v40 = vand.u32 4294901760, %v15915_v30  ;;  %v15912_v44 = vsel %vm63_vm1, %v22708_v31, 0  ;;  %v21446_v25 = vpop.f32.mrb[46].mxu1  ;;  %v26282_v2 = vand.u32 4294901760, %v26268_v35  ;;  %v26294_v13 = vand.u32 4294901760, %v16005_v41 }
 0x980   :  { %v26284_v62 = vand.u32 4294901760, %v15912_v44  ;;  %v22709_v23 = vadd.f32 %v21446_v25, %v21366_v55  ;;  %v15087_v53 = vpop.f32.mrb[47].mxu1  ;;  %v26286_v54 = vand.u32 4294901760, %v15995_v52  ;;  %v26289_v0 = vand.u32 4294901760, %v26273_v6 }
 0x981   :  { %v26292_v18 = vsub.f32 %v15915_v30, %v26278_v40  ;;  %v22710_v45 = vadd.f32 %v15087_v53, %v14470_v32  ;;  %v16025_v19 = vsub.f32 %v26268_v35, %v26282_v2 }
 0x982   :  { %v26299_v37 = vsub.f32 %v15912_v44, %v26284_v62  ;;  %v15921_v24 = vsel %vm63_vm1, %v22709_v23, 0  ;;  %21563 = vmatprep.mubr.f32.mxu1 %v26286_v54  ;;  %21683 = vmatprep.mubr.f32.mxu0 %v26286_v54  ;;  %v16015_v22 = vsub.f32 %v26273_v6, %v26289_v0 }
 0x983   :  { %v26306_v55 = vand.u32 4294901760, %v15921_v24  ;;  %v15918_v32 = vsel %vm63_vm1, %v22710_v45, 0  ;;  %21564 = vmatmul.mubr.f32.vlgmr.msra.gmra.mrb[48].mxu1 %v26294_v13  ;;  %21684 = vmatmul.mubr.f32.vlgmr.msra.gmra.mrb[46].mxu0 %v26294_v13  ;;  %v26312_v34 = vand.u32 4294901760, %v26292_v18  ;;  %v26326_v8 = vand.u32 4294901760, %v16025_v19 }
 0x984   :  { %v26314_v12 = vand.u32 4294901760, %v15918_v32  ;;  %v26316_v5 = vand.u32 4294901760, %v16015_v22  ;;  %v26319_v63 = vand.u32 4294901760, %v26299_v37  ;;  %22562 = vmatpush3.bf16.msra.mxu1 %v26215_v27  ;;  %22610 = vmatpush3.bf16.msra.mxu0 %v26217_v61 }
 0x985   :  { %v26324_v47 = vsub.f32 %v15921_v24, %v26306_v55  ;;  %v16045_v7 = vsub.f32 %v26292_v18, %v26312_v34  ;;  %22564 = vmatprep.subr.bf16.mxu1 %v26223_v57  ;;  %22612 = vmatprep.subr.bf16.mxu0 %v26225_v17 }
 0x986   :  { %v26333_v21 = vsub.f32 %v15918_v32, %v26314_v12  ;;  %21566 = vmatprep.mubr.f32.mxu1 %v26316_v5  ;;  %21686 = vmatprep.mubr.f32.mxu0 %v26316_v5  ;;  %v16035_v27 = vsub.f32 %v26299_v37, %v26319_v63 }
 0x987   :  { %21567 = vmatmul.mubr.f32.gmra.mrb[50].mxu1 %v26326_v8  ;;  %21687 = vmatmul.mubr.f32.gmra.mrb[48].mxu0 %v26326_v8  ;;  %v26342_v61 = vand.u32 4294901760, %v26324_v47  ;;  %v26351_v36 = vand.u32 4294901760, %v16045_v7 }
 0x988   :  { %v26344_v51 = vand.u32 4294901760, %v16035_v27  ;;  %v26347_v46 = vand.u32 4294901760, %v26333_v21  ;;  %22566 = vmatpush3.bf16.msra.mxu1 %v26223_v57  ;;  %22614 = vmatpush3.bf16.msra.mxu0 %v26225_v17 }
 0x989   :  { %v16065_v59 = vsub.f32 %v26324_v47, %v26342_v61  ;;  %22568 = vmatprep.subr.bf16.mxu1 %v26227_v43  ;;  %22616 = vmatprep.subr.bf16.mxu0 %v26229_v9 }
 0x98a   :  { %21569 = vmatprep.mubr.f32.mxu1 %v26344_v51  ;;  %21689 = vmatprep.mubr.f32.mxu0 %v26344_v51  ;;  %v16055_v60 = vsub.f32 %v26333_v21, %v26347_v46 }
 0x98b   :  { %21570 = vmatmul.mubr.f32.gmra.mrb[52].mxu1 %v26351_v36  ;;  %21690 = vmatmul.mubr.f32.gmra.mrb[50].mxu0 %v26351_v36  ;;  %v26365_v17 = vand.u32 4294901760, %v16065_v59 }
 0x98c   :  { %v26363_v57 = vand.u32 4294901760, %v16055_v60 }
 0x98e   :  { %21572 = vmatprep.mubr.f32.mxu1 %v26363_v57  ;;  %21692 = vmatprep.mubr.f32.mxu0 %v26363_v57 }
 0x98f   :  { %21573 = vmatmul.mubr.f32.gmra.mrb[54].mxu1 %v26365_v17  ;;  %21693 = vmatmul.mubr.f32.gmra.mrb[52].mxu0 %v26365_v17 }
 0x990   :  { %21583 = vmatprep.mubr.f32.mxu1 %v26247_v4  ;;  %21703 = vmatprep.mubr.f32.mxu0 %v26247_v4 }
 0x993   :  { %21584 = vmatmul.mubr.f32.vlgmr.msra.gmra.mrb[48].mxu1 %v26244_v26  ;;  %21704 = vmatmul.mubr.f32.vlgmr.msra.gmra.mrb[46].mxu0 %v26244_v26 }
 0x994   :  { %21586 = vmatprep.mubr.f32.mxu1 %v26262_v11  ;;  %21706 = vmatprep.mubr.f32.mxu0 %v26262_v11 }
 0x995   :  { %22570 = vmatpush3.bf16.msra.mxu1 %v26227_v43  ;;  %22618 = vmatpush3.bf16.msra.mxu0 %v26229_v9  ;;  %v18545_v43 = vld [vmem:[%s26686_s13 + $0x40] sm:$0xff]  ;;  %v18546_v9 = vld [vmem:[%s26686_s13 + $0x48] sm:$0xff] }
 0x996   :  { %22572 = vmatprep.subr.bf16.mxu1 %v26231_v56  ;;  %22620 = vmatprep.subr.bf16.mxu0 %v26233_v3 }
 0x997   :  { %21587 = vmatmul.mubr.f32.gmra.mrb[50].mxu1 %v26259_v28  ;;  %21707 = vmatmul.mubr.f32.gmra.mrb[48].mxu0 %v26259_v28 }
 0x998   :  { %21589 = vmatprep.mubr.f32.mxu1 %v26284_v62  ;;  %21709 = vmatprep.mubr.f32.mxu0 %v26284_v62 }
 0x999   :  { %22574 = vmatpush3.bf16.msra.mxu1 %v26231_v56  ;;  %22622 = vmatpush3.bf16.msra.mxu0 %v26233_v3  ;;  %v17610_v56 = vand.u32 4294901760, %v18545_v43  ;;  %v17613_v3 = vand.u32 4294901760, %v18546_v9 }
 0x99a   :  { %22576 = vmatprep.subr.bf16.mxu1 %v26171_v33  ;;  %22624 = vmatprep.subr.bf16.mxu0 %v26175_v42 }
 0x99b   :  { %21590 = vmatmul.mubr.f32.gmra.mrb[52].mxu1 %v26278_v40  ;;  %21710 = vmatmul.mubr.f32.gmra.mrb[50].mxu0 %v26278_v40 }
 0x99c   :  { %21592 = vmatprep.mubr.f32.mxu1 %v26314_v12  ;;  %21712 = vmatprep.mubr.f32.mxu0 %v26314_v12 }
 0x99f   :  { %21593 = vmatmul.mubr.f32.gmra.mrb[54].mxu1 %v26306_v55  ;;  %21713 = vmatmul.mubr.f32.gmra.mrb[52].mxu0 %v26306_v55 }
 0x9a0   :  { %21603 = vmatprep.mubr.f32.mxu1 %v26253_v10  ;;  %21723 = vmatprep.mubr.f32.mxu0 %v26253_v10 }
 0x9a3   :  { %21604 = vmatmul.mubr.f32.vlgmr.msra.gmra.mrb[48].mxu1 %v26250_v50  ;;  %21724 = vmatmul.mubr.f32.vlgmr.msra.gmra.mrb[46].mxu0 %v26250_v50 }
 0x9a4   :  { %21606 = vmatprep.mubr.f32.mxu1 %v26273_v6  ;;  %21726 = vmatprep.mubr.f32.mxu0 %v26273_v6 }
 0x9a5   :  { %22578 = vmatpush3.bf16.msra.mxu1 %v26171_v33  ;;  %22626 = vmatpush3.bf16.msra.mxu0 %v26175_v42 }
 0x9a6   :  { %22580 = vmatprep.subr.bf16.mxu1 %v26194_v20  ;;  %22628 = vmatprep.subr.bf16.mxu0 %v26198_v39 }
 0x9a7   :  { %21607 = vmatmul.mubr.f32.gmra.mrb[50].mxu1 %v26268_v35  ;;  %21727 = vmatmul.mubr.f32.gmra.mrb[48].mxu0 %v26268_v35 }
 0x9a8   :  { %21609 = vmatprep.mubr.f32.mxu1 %v26299_v37  ;;  %21729 = vmatprep.mubr.f32.mxu0 %v26299_v37 }
 0x9a9   :  { %22582 = vmatpush3.bf16.msra.mxu1 %v26194_v20  ;;  %22630 = vmatpush3.bf16.msra.mxu0 %v26198_v39 }
 0x9aa   :  { %22584 = vmatprep.subr.bf16.mxu1 %v26235_v58  ;;  %22632 = vmatprep.subr.bf16.mxu0 %v26237_v15 }
 0x9ab   :  { %21610 = vmatmul.mubr.f32.gmra.mrb[52].mxu1 %v26292_v18  ;;  %21730 = vmatmul.mubr.f32.gmra.mrb[50].mxu0 %v26292_v18 }
 0x9ac   :  { %21612 = vmatprep.mubr.f32.mxu1 %v26333_v21  ;;  %21732 = vmatprep.mubr.f32.mxu0 %v26333_v21 }
 0x9af   :  { %21613 = vmatmul.mubr.f32.gmra.mrb[54].mxu1 %v26324_v47  ;;  %21733 = vmatmul.mubr.f32.gmra.mrb[52].mxu0 %v26324_v47 }
 0x9b0   :  { %21623 = vmatprep.mubr.f32.mxu1 %v26265_v14  ;;  %21743 = vmatprep.mubr.f32.mxu0 %v26265_v14 }
 0x9b3   :  { %21624 = vmatmul.mubr.f32.vlgmr.msra.gmra.mrb[48].mxu1 %v26257_v29  ;;  %21744 = vmatmul.mubr.f32.vlgmr.msra.gmra.mrb[46].mxu0 %v26257_v29 }
 0x9b4   :  { %21626 = vmatprep.mubr.f32.mxu1 %v26289_v0  ;;  %21746 = vmatprep.mubr.f32.mxu0 %v26289_v0 }
 0x9b5   :  { %22586 = vmatpush3.bf16.msra.mxu1 %v26235_v58  ;;  %22634 = vmatpush3.bf16.msra.mxu0 %v26237_v15  ;;  %v26459_v58 = vpack.c.bf16 %v17613_v3, %v17610_v56  ;;  %v26461_v15 = vsub.f32 %v18545_v43, %v17610_v56 }
 0x9b6   :  { %22588 = vmatprep.subr.bf16.mxu1 %v26239_v1  ;;  %22636 = vmatprep.subr.bf16.mxu0 %v26241_v16 }
 0x9b7   :  { %21627 = vmatmul.mubr.f32.gmra.mrb[50].mxu1 %v26282_v2  ;;  %21747 = vmatmul.mubr.f32.gmra.mrb[48].mxu0 %v26282_v2 }
 0x9b8   :  { %21629 = vmatprep.mubr.f32.mxu1 %v26319_v63  ;;  %21749 = vmatprep.mubr.f32.mxu0 %v26319_v63 }
 0x9b9   :  { %22590 = vmatpush3.bf16.msra.mxu1 %v26239_v1  ;;  %22638 = vmatpush3.bf16.msra.mxu0 %v26241_v16  ;;  %v26463_v1 = vsub.f32 %v18546_v9, %v17613_v3  ;;  %v18547_v16 = vld [vmem:[%s26686_s13 + $0x50] sm:$0xff] }
 0x9ba   :  { %22592 = vmatprep.subr.bf16.mxu1 %v26171_v33  ;;  %22640 = vmatprep.subr.bf16.mxu0 %v26175_v42 }
 0x9bb   :  { %21630 = vmatmul.mubr.f32.gmra.mrb[52].mxu1 %v26312_v34  ;;  %21750 = vmatmul.mubr.f32.gmra.mrb[50].mxu0 %v26312_v34 }
 0x9bc   :  { %21632 = vmatprep.mubr.f32.mxu1 %v26347_v46  ;;  %21752 = vmatprep.mubr.f32.mxu0 %v26347_v46 }
 0x9bf   :  { %21633 = vmatmul.mubr.f32.gmra.mrb[54].mxu1 %v26342_v61  ;;  %21753 = vmatmul.mubr.f32.gmra.mrb[52].mxu0 %v26342_v61 }
 0x9c0   :  { %21643 = vmatprep.mubr.f32.mxu1 %v26247_v4  ;;  %21763 = vmatprep.mubr.f32.mxu0 %v26247_v4 }
 0x9c3   :  { %21644 = vmatmul.mubr.f32.vlgmr.msra.gmra.mrb[48].mxu1 %v26244_v26  ;;  %21764 = vmatmul.mubr.f32.vlgmr.msra.gmra.mrb[46].mxu0 %v26244_v26 }
 0x9c4   :  { %21646 = vmatprep.mubr.f32.mxu1 %v26262_v11  ;;  %21766 = vmatprep.mubr.f32.mxu0 %v26262_v11 }
 0x9c5   :  { %22594 = vmatpush3.bf16.msra.mxu1 %v26171_v33  ;;  %22642 = vmatpush3.bf16.msra.mxu0 %v26175_v42  ;;  %v17761_v33 = vand.u32 4294901760, %v26461_v15  ;;  %v17768_v42 = vand.u32 4294901760, %v26463_v1 }
 0x9c6   :  { %22596 = vmatprep.subr.bf16.mxu1 %v26194_v20  ;;  %22644 = vmatprep.subr.bf16.mxu0 %v26198_v39 }
 0x9c7   :  { %21647 = vmatmul.mubr.f32.gmra.mrb[50].mxu1 %v26259_v28  ;;  %21767 = vmatmul.mubr.f32.gmra.mrb[48].mxu0 %v26259_v28  ;;  %v17762_v48 = vsub.f32 %v26461_v15, %v17761_v33  ;;  %v17769_v31 = vsub.f32 %v26463_v1, %v17768_v42 }
 0x9c8   :  { %21649 = vmatprep.mubr.f32.mxu1 %v26284_v62  ;;  %21769 = vmatprep.mubr.f32.mxu0 %v26284_v62 }
 0x9c9   :  { %22598 = vmatpush3.bf16.msra.mxu1 %v26194_v20  ;;  %22646 = vmatpush3.bf16.msra.mxu0 %v26198_v39  ;;  %v18548_v20 = vld [vmem:[%s26686_s13 + $0x58] sm:$0xff]  ;;  %v17616_v39 = vand.u32 4294901760, %v18547_v16  ;;  %v17763_v25 = vand.u32 4294901760, %v17762_v48  ;;  %v17770_v23 = vand.u32 4294901760, %v17769_v31 }
 0x9ca   :  { %22648 = vmatprep.subr.bf16.mxu1 %v26459_v58  ;;  %v17619_v49 = vand.u32 4294901760, %v18548_v20 }
 0x9cb   :  { %21650 = vmatmul.mubr.f32.gmra.mrb[52].mxu1 %v26278_v40  ;;  %21770 = vmatmul.mubr.f32.gmra.mrb[50].mxu0 %v26278_v40  ;;  %v26494_v41 = vsub.f32 %v18547_v16, %v17616_v39  ;;  %v22655_v22 = vpack.c.bf16 %v17770_v23, %v17763_v25 }
 0x9cc   :  { %21652 = vmatprep.mubr.f32.mxu1 %v26314_v12  ;;  %21772 = vmatprep.mubr.f32.mxu0 %v26314_v12  ;;  %v26496_v30 = vsub.f32 %v18548_v20, %v17619_v49  ;;  %v26500_v44 = vpack.c.bf16 %v17619_v49, %v17616_v39  ;;  %v22663_v20 = vpack.c.bf16 %v26463_v1, %v26461_v15 }
 0x9cd   :  { %v17775_v45 = vand.u32 4294901760, %v26494_v41 }
 0x9ce   :  { %v17782_v19 = vand.u32 4294901760, %v26496_v30 }
 0x9cf   :  { %21653 = vmatmul.mubr.f32.gmra.mrb[54].mxu1 %v26306_v55  ;;  %21773 = vmatmul.mubr.f32.gmra.mrb[52].mxu0 %v26306_v55  ;;  %v17776_v7 = vsub.f32 %v26494_v41, %v17775_v45 }
 0x9d0   :  { %21663 = vmatprep.mubr.f32.mxu1 %v26247_v4  ;;  %21783 = vmatprep.mubr.f32.mxu0 %v26247_v4  ;;  %v17783_v27 = vsub.f32 %v26496_v30, %v17782_v19 }
 0x9d1   :  { %v17777_v43 = vand.u32 4294901760, %v17776_v7 }
 0x9d2   :  { %v26498_v52 = vpop.f32.mrb[38].mxu0  ;;  %v17784_v9 = vand.u32 4294901760, %v17783_v27 }
 0x9d3   :  { %v26502_v53 = vpop.f32.mrb[39].mxu0  ;;  %21664 = vmatmul.mubr.f32.vlgmr.msra.gmra.mrb[48].mxu1 %v26244_v26  ;;  %21784 = vmatmul.mubr.f32.vlgmr.msra.gmra.mrb[46].mxu0 %v26244_v26 }
 0x9d4   :  { %21666 = vmatprep.mubr.f32.mxu1 %v26262_v11  ;;  %21786 = vmatprep.mubr.f32.mxu0 %v26262_v11  ;;  %v22659_v16 = vpack.c.bf16 %v17784_v9, %v17777_v43 }
 0x9d5   :  { %22650 = vmatpush3.bf16.msra.mxu1 %v26459_v58 }
 0x9d6   :  { %v26511_v24 = vpop.f32.mrb[40].mxu0  ;;  %22652 = vmatprep.subr.bf16.mxu1 %v26500_v44 }
 0x9d7   :  { %v26514_v32 = vpop.f32.mrb[41].mxu0  ;;  %21667 = vmatmul.mubr.f32.gmra.mrb[50].mxu1 %v26259_v28  ;;  %21787 = vmatmul.mubr.f32.gmra.mrb[48].mxu0 %v26259_v28 }
 0x9d8   :  { %21669 = vmatprep.mubr.f32.mxu1 %v26284_v62  ;;  %21789 = vmatprep.mubr.f32.mxu0 %v26284_v62 }
 0x9d9   :  { %22654 = vmatpush3.bf16.msra.mxu1 %v26500_v44 }
 0x9da   :  { %v26527_v59 = vpop.f32.mrb[42].mxu0  ;;  %22656 = vmatprep.subr.bf16.mxu1 %v22655_v22 }
 0x9db   :  { %v26529_v60 = vpop.f32.mrb[43].mxu0  ;;  %21670 = vmatmul.mubr.f32.gmra.mrb[52].mxu1 %v26278_v40  ;;  %21790 = vmatmul.mubr.f32.gmra.mrb[50].mxu0 %v26278_v40 }
 0x9dc   :  { %21672 = vmatprep.mubr.f32.mxu1 %v26314_v12  ;;  %21792 = vmatprep.mubr.f32.mxu0 %v26314_v12 }
 0x9de   :  { %v26535_v56 = vpop.f32.mrb[44].mxu0 }
 0x9df   :  { %v26537_v3 = vpop.f32.mrb[45].mxu0  ;;  %21673 = vmatmul.mubr.f32.gmra.mrb[54].mxu1 %v26306_v55  ;;  %21793 = vmatmul.mubr.f32.gmra.mrb[52].mxu0 %v26306_v55 }
 0x9e0   :  { %21803 = vmatprep.mubr.f32.mxu1 %v26286_v54  ;;  %v22667_v54 = vpack.c.bf16 %v26496_v30, %v26494_v41 }
 0x9e3   :  { %21804 = vmatmul.mubr.f32.vlgmr.msra.gmra.mrb[56].mxu1 %v26294_v13  ;;  %v22679_v13 = vpack.c.bf16 %v17768_v42, %v17761_v33 }
 0x9e4   :  { %21806 = vmatprep.mubr.f32.mxu1 %v26316_v5  ;;  %22658 = vmatpush3.bf16.msra.mxu1 %v22655_v22 }
 0x9e5   :  { %22660 = vmatprep.subr.bf16.mxu1 %v22659_v16 }
 0x9e7   :  { %21807 = vmatmul.mubr.f32.gmra.mrb[58].mxu1 %v26326_v8 }
 0x9e8   :  { %21809 = vmatprep.mubr.f32.mxu1 %v26344_v51  ;;  %22662 = vmatpush3.bf16.msra.mxu1 %v22659_v16 }
 0x9e9   :  { %22664 = vmatprep.subr.bf16.mxu1 %v22663_v20 }
 0x9eb   :  { %21810 = vmatmul.mubr.f32.gmra.mrb[60].mxu1 %v26351_v36 }
 0x9ec   :  { %21812 = vmatprep.mubr.f32.mxu1 %v26363_v57 }
 0x9ef   :  { %21813 = vmatmul.mubr.f32.gmra.mrb[62].mxu1 %v26365_v17 }
 0x9f0   :  { %21823 = vmatprep.mubr.f32.mxu1 %v26247_v4 }
 0x9f3   :  { %21824 = vmatmul.mubr.f32.vlgmr.msra.gmra.mrb[56].mxu1 %v26244_v26 }
 0x9f4   :  { %21826 = vmatprep.mubr.f32.mxu1 %v26262_v11  ;;  %22666 = vmatpush3.bf16.msra.mxu1 %v22663_v20 }
 0x9f5   :  { %22668 = vmatprep.subr.bf16.mxu1 %v22667_v54 }
 0x9f7   :  { %21827 = vmatmul.mubr.f32.gmra.mrb[58].mxu1 %v26259_v28 }
 0x9f8   :  { %21829 = vmatprep.mubr.f32.mxu1 %v26284_v62  ;;  %22670 = vmatpush3.bf16.msra.mxu1 %v22667_v54 }
 0x9f9   :  { %22672 = vmatprep.subr.bf16.mxu1 %v26459_v58 }
 0x9fb   :  { %21830 = vmatmul.mubr.f32.gmra.mrb[60].mxu1 %v26278_v40 }
 0x9fc   :  { %21832 = vmatprep.mubr.f32.mxu1 %v26314_v12 }
 0x9ff   :  { %21833 = vmatmul.mubr.f32.gmra.mrb[62].mxu1 %v26306_v55 }
 0xa00   :  { %21843 = vmatprep.mubr.f32.mxu1 %v26253_v10 }
 0xa03   :  { %21844 = vmatmul.mubr.f32.vlgmr.msra.gmra.mrb[56].mxu1 %v26250_v50  ;;  %v22683_v50 = vpack.c.bf16 %v17782_v19, %v17775_v45 }
 0xa04   :  { %21846 = vmatprep.mubr.f32.mxu1 %v26273_v6  ;;  %22674 = vmatpush3.bf16.msra.mxu1 %v26459_v58 }
 0xa05   :  { %22676 = vmatprep.subr.bf16.mxu1 %v26500_v44 }
 0xa07   :  { %21847 = vmatmul.mubr.f32.gmra.mrb[58].mxu1 %v26268_v35 }
 0xa08   :  { %21849 = vmatprep.mubr.f32.mxu1 %v26299_v37  ;;  %22678 = vmatpush3.bf16.msra.mxu1 %v26500_v44 }
 0xa09   :  { %22680 = vmatprep.subr.bf16.mxu1 %v22679_v13 }
 0xa0b   :  { %21850 = vmatmul.mubr.f32.gmra.mrb[60].mxu1 %v26292_v18 }
 0xa0c   :  { %21852 = vmatprep.mubr.f32.mxu1 %v26333_v21 }
 0xa0f   :  { %21853 = vmatmul.mubr.f32.gmra.mrb[62].mxu1 %v26324_v47 }
 0xa10   :  { %21863 = vmatprep.mubr.f32.mxu1 %v26265_v14 }
 0xa13   :  { %21864 = vmatmul.mubr.f32.vlgmr.msra.gmra.mrb[56].mxu1 %v26257_v29 }
 0xa14   :  { %21866 = vmatprep.mubr.f32.mxu1 %v26289_v0  ;;  %22682 = vmatpush3.bf16.msra.mxu1 %v22679_v13 }
 0xa15   :  { %22684 = vmatprep.subr.bf16.mxu1 %v22683_v50 }
 0xa17   :  { %21867 = vmatmul.mubr.f32.gmra.mrb[58].mxu1 %v26282_v2 }
 0xa18   :  { %21869 = vmatprep.mubr.f32.mxu1 %v26319_v63  ;;  %22686 = vmatpush3.bf16.msra.mxu1 %v22683_v50 }
 0xa19   :  { %22688 = vmatprep.subr.bf16.mxu1 %v26459_v58 }
 0xa1b   :  { %21870 = vmatmul.mubr.f32.gmra.mrb[60].mxu1 %v26312_v34 }
 0xa1c   :  { %21872 = vmatprep.mubr.f32.mxu1 %v26347_v46 }
 0xa1f   :  { %21873 = vmatmul.mubr.f32.gmra.mrb[62].mxu1 %v26342_v61 }
 0xa20   :  { %21883 = vmatprep.mubr.f32.mxu1 %v26247_v4 }
 0xa23   :  { %21884 = vmatmul.mubr.f32.vlgmr.msra.gmra.mrb[56].mxu1 %v26244_v26 }
 0xa24   :  { %21886 = vmatprep.mubr.f32.mxu1 %v26262_v11  ;;  %22690 = vmatpush3.bf16.msra.mxu1 %v26459_v58 }
 0xa25   :  { %22692 = vmatprep.subr.bf16.mxu1 %v26500_v44 }
 0xa27   :  { %21887 = vmatmul.mubr.f32.gmra.mrb[58].mxu1 %v26259_v28 }
 0xa28   :  { %21889 = vmatprep.mubr.f32.mxu1 %v26284_v62  ;;  %22694 = vmatpush3.bf16.msra.mxu1 %v26500_v44 }
 0xa2b   :  { %21890 = vmatmul.mubr.f32.gmra.mrb[60].mxu1 %v26278_v40 }
 0xa2c   :  { %21892 = vmatprep.mubr.f32.mxu1 %v26314_v12 }
 0xa2f   :  { %21893 = vmatmul.mubr.f32.gmra.mrb[62].mxu1 %v26306_v55 }
 0xa30   :  { %21903 = vmatprep.mubr.f32.mxu1 %v26247_v4 }
 0xa33   :  { %21904 = vmatmul.mubr.f32.vlgmr.msra.gmra.mrb[56].mxu1 %v26244_v26 }
 0xa34   :  { %21906 = vmatprep.mubr.f32.mxu1 %v26262_v11 }
 0xa37   :  { %21907 = vmatmul.mubr.f32.gmra.mrb[58].mxu1 %v26259_v28 }
 0xa38   :  { %21909 = vmatprep.mubr.f32.mxu1 %v26284_v62 }
 0xa3b   :  { %21910 = vmatmul.mubr.f32.gmra.mrb[60].mxu1 %v26278_v40 }
 0xa3c   :  { %21912 = vmatprep.mubr.f32.mxu1 %v26314_v12 }
 0xa3f   :  { %21913 = vmatmul.mubr.f32.gmra.mrb[62].mxu1 %v26306_v55 }
 0xaa6   :  { %v21665_v10 = vpop.f32.mrb[48].mxu1  ;;  %v21785_v29 = vpop.f32.mrb[46].mxu0 }
 0xaa7   :  { %v16710_v14 = vmul.f32 %v21665_v10, %v26498_v52  ;;  %v17553_v4 = vmul.f32 %v21785_v29, %v26498_v52  ;;  %v16663_v35 = vpop.f32.mrb[49].mxu1  ;;  %v17506_v26 = vpop.f32.mrb[47].mxu0 }
 0xaa8   :  { %v16709_v11 = vmul.f32 %v16663_v35, %v26502_v53  ;;  %v17552_v28 = vmul.f32 %v17506_v26, %v26502_v53 }
 0xaa9   :  { %v17563_v6 = vsel %vm63_vm1, %v17553_v4, 0.0  ;;  %v16720_v40 = vsel %vm63_vm1, %v16710_v14, 0.0 }
 0xaaa   :  { %17564 = vadd.xlane.f32.xlu1 %v17563_v6  ;;  %v21788_v2 = vpop.f32.mrb[48].mxu0  ;;  %16721 = vadd.xlane.f32.xlu0 %v16720_v40  ;;  %v21668_v62 = vpop.f32.mrb[50].mxu1  ;;  %v17560_v5 = vsel %vm63_vm1, %v17552_v28, 0.0  ;;  %v16717_v63 = vsel %vm63_vm1, %v16709_v11, 0.0 }
 0xaab   :  { %v17555_v0 = vmul.f32 %v21788_v2, %v26511_v24  ;;  %v16712_v18 = vmul.f32 %v21668_v62, %v26511_v24  ;;  %v16675_v37 = vpop.f32.mrb[51].mxu1  ;;  %v17518_v55 = vpop.f32.mrb[49].mxu0 }
 0xaac   :  { %v16711_v34 = vmul.f32 %v16675_v37, %v26514_v32  ;;  %v17554_v12 = vmul.f32 %v17518_v55, %v26514_v32 }
 0xaad   :  { %v16726_v17 = vsel %vm63_vm1, %v16712_v18, 0.0  ;;  %v17569_v41 = vsel %vm63_vm1, %v17555_v0, 0.0 }
 0xaae   :  { %v21791_v47 = vpop.f32.mrb[50].mxu0  ;;  %17561 = vadd.xlane.f32.xlu0 %v17560_v5  ;;  %16718 = vadd.xlane.f32.xlu1 %v16717_v63  ;;  %v21671_v8 = vpop.f32.mrb[52].mxu1  ;;  %v16723_v58 = vsel %vm63_vm1, %v16711_v34, 0.0  ;;  %v17566_v30 = vsel %vm63_vm1, %v17554_v12, 0.0 }
 0xaaf   :  { %v17557_v21 = vmul.f32 %v21791_v47, %v26527_v59  ;;  %v16714_v61 = vmul.f32 %v21671_v8, %v26527_v59  ;;  %v16687_v51 = vpop.f32.mrb[53].mxu1  ;;  %v17530_v46 = vpop.f32.mrb[51].mxu0  ;;  %v16742_v8 = vshrl.u32 %v14215_v38, 7 }
 0xab0   :  { %v16713_v36 = vmul.f32 %v16687_v51, %v26529_v60  ;;  %v17556_v57 = vmul.f32 %v17530_v46, %v26529_v60  ;;  %v15894_v51 = vld [vmem:[%s26687_s14] sm:$0x7]  ;;  %s23502_s14 = smov [#allocation2]  }
 0xab1   :  { %v16732_v44 = vsel %vm63_vm1, %v16714_v61, 0.0  ;;  %v17575_v23 = vsel %vm63_vm1, %v17557_v21, 0.0  ;;  %v17586_v21 = vsub.s32 1, %v16742_v8  ;;  %v16743_v61 = vsub.s32 0, %v16742_v8  ;;  %s18460_s10 = sshll.u32 %s23502_s14, 4  ;;  %s18461_s10 = int_to_ptr.vmem [resolvable:$true] %s18460_s10 }
 0xab2   :  { %v21794_v15 = vpop.f32.mrb[52].mxu0  ;;  %16727 = vadd.xlane.f32.xlu1 %v16726_v17  ;;  %16724 = vadd.xlane.f32.xlu0 %v16723_v58  ;;  %v21674_v1 = vpop.f32.mrb[54].mxu1  ;;  %v16729_v25 = vsel %vm63_vm1, %v16713_v36, 0.0  ;;  %v17572_v45 = vsel %vm63_vm1, %v17556_v57, 0.0  ;;  %v18429_v58 = vsub.s32 2, %v16742_v8  ;;  %s23470_s27 = scalar_lea.vmem %s18461_s10, 1024  ;;  %p23475_p1 = scmp.lt.s32.totalorder %s18461_s10, %s18461_s10 }
 0xab3   :  { %v17559_v33 = vmul.f32 %v21794_v15, %v26535_v56  ;;  %v16716_v42 = vmul.f32 %v21674_v1, %v26535_v56  ;;  %v16699_v39 = vpop.f32.mrb[55].mxu1  ;;  %v17542_v49 = vpop.f32.mrb[53].mxu0  ;;  %v17587_v57 = vrot.slane %v15894_v51, %v17586_v21  ;;  %v16744_v17 = vrot.slane %v15894_v51, %v16743_v61  ;;  %p23471_p0 = scmp.ne.s32.totalorder %s18461_s10, %s23470_s27  ;;  %p23476_p2 = scmp.lt.s32.totalorder %s23470_s27, %s23470_s27 }
 0xab4   :  { %v16715_v48 = vmul.f32 %v16699_v39, %v26537_v3  ;;  %v17558_v31 = vmul.f32 %v17542_v49, %v26537_v3  ;;  %v18430_v39 = vrot.slane %v15894_v51, %v18429_v58 }
 0xab5   :  { %v16738_v19 = vsel %vm63_vm1, %v16716_v42, 0.0  ;;  %v17581_v7 = vsel %vm63_vm1, %v17559_v33, 0.0  ;;  %p23477_p3 = por %p23476_p2, %p23475_p1 }
 0xab6   :  { %17570 = vadd.xlane.f32.xlu1 %v17569_v41  ;;  %17567 = vadd.xlane.f32.xlu0 %v17566_v30  ;;  %v16735_v22 = vsel %vm63_vm1, %v16715_v48, 0.0  ;;  %v17578_v27 = vsel %vm63_vm1, %v17558_v31, 0.0 }
 0xab7   :  { %p23478_p4 = pnand %p23477_p3, %p23471_p0 }
 0xaba   :  { %16733 = vadd.xlane.f32.xlu1 %v16732_v44  ;;  %16730 = vadd.xlane.f32.xlu0 %v16729_v25 }
 0xabe   :  { %17576 = vadd.xlane.f32.xlu1 %v17575_v23  ;;  %17573 = vadd.xlane.f32.xlu0 %v17572_v45 }
 0xac2   :  { %16739 = vadd.xlane.f32.xlu1 %v16738_v19  ;;  %16736 = vadd.xlane.f32.xlu0 %v16735_v22 }
 0xac6   :  { %17582 = vadd.xlane.f32.xlu1 %v17581_v7  ;;  %17579 = vadd.xlane.f32.xlu0 %v17578_v27 }
 0xb06   :  { %v21905_v43 = vpop.f32.mrb[56].mxu1 }
 0xb07   :  { %v18396_v9 = vmul.f32 %v21905_v43, %v26498_v52  ;;  %v18349_v16 = vpop.f32.mrb[57].mxu1 }
 0xb08   :  { %v18395_v20 = vmul.f32 %v18349_v16, %v26502_v53 }
 0xb09   :  { %v18406_v54 = vsel %vm63_vm1, %v18396_v9, 0.0 }
 0xb0a   :  { %18407 = vadd.xlane.f32.xlu1 %v18406_v54  ;;  %v21908_v13 = vpop.f32.mrb[58].mxu1  ;;  %v18403_v50 = vsel %vm63_vm1, %v18395_v20, 0.0 }
 0xb0b   :  { %v18398_v10 = vmul.f32 %v21908_v13, %v26511_v24  ;;  %v18361_v29 = vpop.f32.mrb[59].mxu1  ;;  %18404 = vadd.xlane.f32.xlu0 %v18403_v50 }
 0xb0c   :  { %v18397_v14 = vmul.f32 %v18361_v29, %v26514_v32 }
 0xb0d   :  { %v18412_v4 = vsel %vm63_vm1, %v18398_v10, 0.0 }
 0xb0e   :  { %18413 = vadd.xlane.f32.xlu1 %v18412_v4  ;;  %v21911_v35 = vpop.f32.mrb[60].mxu1  ;;  %v18409_v52 = vsel %vm63_vm1, %v18397_v14, 0.0 }
 0xb0f   :  { %v18400_v53 = vmul.f32 %v21911_v35, %v26527_v59  ;;  %v18373_v26 = vpop.f32.mrb[61].mxu1  ;;  %18410 = vadd.xlane.f32.xlu0 %v18409_v52 }
 0xb10   :  { %v18399_v11 = vmul.f32 %v18373_v26, %v26529_v60 }
 0xb11   :  { %v18418_v28 = vsel %vm63_vm1, %v18400_v53, 0.0 }
 0xb12   :  { %18419 = vadd.xlane.f32.xlu1 %v18418_v28  ;;  %v21914_v24 = vpop.f32.mrb[62].mxu1  ;;  %v18415_v6 = vsel %vm63_vm1, %v18399_v11, 0.0 }
 0xb13   :  { %v18402_v32 = vmul.f32 %v21914_v24, %v26535_v56  ;;  %v18385_v40 = vpop.f32.mrb[63].mxu1  ;;  %18416 = vadd.xlane.f32.xlu0 %v18415_v6 }
 0xb14   :  { %v18401_v2 = vmul.f32 %v18385_v40, %v26537_v3 }
 0xb15   :  { %v18424_v62 = vsel %vm63_vm1, %v18402_v32, 0.0 }
 0xb16   :  { %18425 = vadd.xlane.f32.xlu1 %v18424_v62  ;;  %v18421_v59 = vsel %vm63_vm1, %v18401_v2, 0.0 }
 0xb17   :  { %18422 = vadd.xlane.f32.xlu0 %v18421_v59 }
 0xb37   :  { %v17565_v0 = vpop.xlane.xlu1 %17564  ;;  %v16722_v60 = vpop.xlane.xlu0 %16721 }
 0xb38   :  { %v17589_v1 = vmul.f32 %v17587_v57, %v17565_v0  ;;  %v16746_v33 = vmul.f32 %v16744_v17, %v16722_v60 }
 0xb3a   :  { %v17597_v31 = vadd.f32 %v17589_v1, %v16746_v33 }
 0xb3b   :  { %v16719_v18 = vpop.xlane.xlu1 %16718  ;;  %v17562_v37 = vpop.xlane.xlu0 %17561 }
 0xb3c   :  { %v17588_v49 = vmul.f32 %v17587_v57, %v17562_v37  ;;  %v16745_v48 = vmul.f32 %v16744_v17, %v16719_v18 }
 0xb3e   :  { %v17596_v25 = vadd.f32 %v17588_v49, %v16745_v48 }
 0xb3f   :  { %v16728_v55 = vpop.xlane.xlu1 %16727  ;;  %v16725_v34 = vpop.xlane.xlu0 %16724 }
 0xb40   :  { %v16748_v19 = vmul.f32 %v16744_v17, %v16728_v55  ;;  %v16747_v7 = vmul.f32 %v16744_v17, %v16725_v34 }
 0xb43   :  { %v17571_v12 = vpop.xlane.xlu1 %17570  ;;  %v17568_v5 = vpop.xlane.xlu0 %17567 }
 0xb44   :  { %v17591_v41 = vmul.f32 %v17587_v57, %v17571_v12  ;;  %v17590_v23 = vmul.f32 %v17587_v57, %v17568_v5 }
 0xb46   :  { %v17599_v9 = vadd.f32 %v17591_v41, %v16748_v19  ;;  %v17598_v13 = vadd.f32 %v17590_v23, %v16747_v7 }
 0xb47   :  { %v16734_v63 = vpop.xlane.xlu1 %16733  ;;  %v16731_v56 = vpop.xlane.xlu0 %16730 }
 0xb48   :  { %v16750_v29 = vmul.f32 %v16744_v17, %v16734_v63  ;;  %v16749_v4 = vmul.f32 %v16744_v17, %v16731_v56 }
 0xb4b   :  { %v17577_v47 = vpop.xlane.xlu1 %17576  ;;  %v17574_v3 = vpop.xlane.xlu0 %17573 }
 0xb4c   :  { %v17593_v16 = vmul.f32 %v17587_v57, %v17577_v47  ;;  %v17592_v50 = vmul.f32 %v17587_v57, %v17574_v3 }
 0xb4e   :  { %v17601_v53 = vadd.f32 %v17593_v16, %v16750_v29  ;;  %v17600_v24 = vadd.f32 %v17592_v50, %v16749_v4 }
 0xb4f   :  { %v16740_v46 = vpop.xlane.xlu1 %16739  ;;  %v16737_v36 = vpop.xlane.xlu0 %16736 }
 0xb50   :  { %v16752_v40 = vmul.f32 %v16744_v17, %v16740_v46  ;;  %v16751_v62 = vmul.f32 %v16744_v17, %v16737_v36 }
 0xb53   :  { %v17583_v15 = vpop.xlane.xlu1 %17582  ;;  %v17580_v42 = vpop.xlane.xlu0 %17579 }
 0xb54   :  { %v17595_v26 = vmul.f32 %v17587_v57, %v17583_v15  ;;  %v17594_v6 = vmul.f32 %v17587_v57, %v17580_v42 }
 0xb56   :  { %v17603_v60 = vadd.f32 %v17595_v26, %v16752_v40  ;;  %v17602_v55 = vadd.f32 %v17594_v6, %v16751_v62 }
 0xb97   :  { %v18408_v38 = vpop.xlane.xlu1 %18407 }
 0xb98   :  { %v18432_v30 = vmul.f32 %v18430_v39, %v18408_v38  ;;  %v18405_v44 = vpop.xlane.xlu0 %18404 }
 0xb99   :  { %v18431_v45 = vmul.f32 %v18430_v39, %v18405_v44 }
 0xb9a   :  { %v18440_v22 = vadd.f32 %v18432_v30, %v17597_v31 }
 0xb9b   :  { %v18439_v27 = vadd.f32 %v18431_v45, %v17596_v25  ;;  %v18414_v43 = vpop.xlane.xlu1 %18413 }
 0xb9c   :  { %18448 = vst [vmem:[#allocation2 + $0x8] sm:$0xff] %v18440_v22  ;;  %v18434_v20 = vmul.f32 %v18430_v39, %v18414_v43  ;;  %v18411_v54 = vpop.xlane.xlu0 %18410 }
 0xb9d   :  { %18447 = vst [vmem:[#allocation2] sm:$0xff] %v18439_v27  ;;  %v18433_v10 = vmul.f32 %v18430_v39, %v18411_v54 }
 0xb9e   :  { %v18442_v14 = vadd.f32 %v18434_v20, %v17599_v9 }
 0xb9f   :  { %v18441_v35 = vadd.f32 %v18433_v10, %v17598_v13  ;;  %v18420_v52 = vpop.xlane.xlu1 %18419 }
 0xba0   :  { %18450 = vst [vmem:[#allocation2 + $0x18] sm:$0xff] %v18442_v14  ;;  %v18436_v11 = vmul.f32 %v18430_v39, %v18420_v52  ;;  %v18417_v28 = vpop.xlane.xlu0 %18416 }
 0xba1   :  { %18449 = vst [vmem:[#allocation2 + $0x10] sm:$0xff] %v18441_v35  ;;  %v18435_v32 = vmul.f32 %v18430_v39, %v18417_v28 }
 0xba2   :  { %v18444_v2 = vadd.f32 %v18436_v11, %v17601_v53 }
 0xba3   :  { %v18443_v59 = vadd.f32 %v18435_v32, %v17600_v24  ;;  %v18426_v0 = vpop.xlane.xlu1 %18425 }
 0xba4   :  { %18452 = vst [vmem:[#allocation2 + $0x28] sm:$0xff] %v18444_v2  ;;  %v18438_v18 = vmul.f32 %v18430_v39, %v18426_v0  ;;  %v18423_v37 = vpop.xlane.xlu0 %18422 }
 0xba5   :  { %18451 = vst [vmem:[#allocation2 + $0x20] sm:$0xff] %v18443_v59  ;;  %v18437_v34 = vmul.f32 %v18430_v39, %v18423_v37 }
 0xba6   :  { %v18446_v12 = vadd.f32 %v18438_v18, %v17603_v60 }
 0xba7   :  { %v18445_v5 = vadd.f32 %v18437_v34, %v17602_v55 }
 0xba8   :  { %18454 = vst [vmem:[#allocation2 + $0x38] sm:$0xff] %v18446_v12 }
 0xba9   :  { %18453 = vst [vmem:[#allocation2 + $0x30] sm:$0xff] %v18445_v5 }
 0xbaa   :  { %23481 = shalt.err (!%p23478_p4)
}
 0xbab   :  { %s23482_s29 = scalar_lea.hbm %s26690_s17, 1024 }
 0xbac   :  { %p23483_p5 = scmp.ne.s32.totalorder %s26690_s17, %s23482_s29  ;;  %p23486_p6 = scmp.lt.u32.totalorder %s23482_s29, %s26690_s17 }
 0xbae   :  { %p23488_p7 = pnand %p23486_p6, %p23483_p5 }
 0xbb0   :  { %23491 = shalt.err (!%p23488_p7)
}
 0xbb1   :  { %s23503_s18 = smov 128   ;;  %s23504_s19 = smov 8  }
 0xbb2   :  { %18466 = dma.vmem_to_hbm [thread:$0]  %s18461_s10, 1024, %s26690_s17, [#allocation3], %s23503_s18, %s23503_s18, %s23504_s19  }
 0xbb3   :  { %23492 = dma.done.wait [#allocation3], 1024  }
 0xbb4   :  { %23493 = vsyncadd [#allocation3], 4294966272 }
 0xbb5   :  { %18470 = vsyncpa [#allocation3], 1 }

</bundles_post_ra>
